<compile_context>
chip_gen: v6e
topology: v6e:2x2x1
jax: 0.10.0
libtpu: 0.0.40
codegen_flags: <defaults>
</compile_context>

<pallas_src>
import functools
import math

import jax
import jax.numpy as jnp
from jax.experimental import pallas as pl
from jax.experimental.pallas import tpu as pltpu


_VMEM_LIMIT = 48 * 1024 * 1024  # stays inside v7x's 64 MiB physical VMEM


def _round_up(x, m):
    return ((x + m - 1) // m) * m


def _pick_tile(dim, targets):
    """Largest target tile that evenly divides `dim` (dim is 128-aligned)."""
    for t in targets:
        if dim % t == 0:
            return t
    raise ValueError(f"{dim} is not divisible by any of {targets}")


# ---------------------------------------------------------------------------
# Tiled, pipelined matmul (bf16 operands, f32 accumulation on the MXU)
# ---------------------------------------------------------------------------
def _matmul_kernel(x_ref, w_ref, o_ref, acc_ref):
    @pl.when(pl.program_id(2) == 0)
    def _init():
        acc_ref[...] = jnp.zeros_like(acc_ref)

    acc_ref[...] += jnp.dot(
        x_ref[...], w_ref[...], preferred_element_type=jnp.float32
    )

    @pl.when(pl.program_id(2) == pl.num_programs(2) - 1)
    def _store():
        o_ref[...] = acc_ref[...].astype(o_ref.dtype)


def pallas_matmul(x, w):
    """x: [M, K] @ w: [K, N] -> [M, N]."""
    M, K = x.shape
    K2, N = w.shape
    assert K == K2 and K % 128 == 0 and N % 128 == 0

    Mp = _round_up(M, 128)
    if Mp != M:
        x = jnp.pad(x, ((0, Mp - M), (0, 0)))

    tm = _pick_tile(Mp, (512, 256, 128))
    tn = _pick_tile(N, (512, 256, 128))
    tk = _pick_tile(K, (512, 256, 128))
    # Guarantee >=2 "parallel" output blocks so v7x's second TensorCore has work.
    while (Mp // tm) * (N // tn) < 2 and tm > 128:
        tm //= 2
    while (Mp // tm) * (N // tn) < 2 and tn > 128:
        tn //= 2

    grid = (Mp // tm, N // tn, K // tk)
    cost = pl.CostEstimate(
        flops=2 * Mp * N * K,
        transcendentals=0,
        bytes_accessed=(Mp * K + K * N + Mp * N) * x.dtype.itemsize,
    )
    out = pl.pallas_call(
        _matmul_kernel,
        out_shape=jax.ShapeDtypeStruct((Mp, N), x.dtype),
        grid=grid,
        in_specs=[
            pl.BlockSpec((tm, tk), lambda i, j, k: (i, k)),
            pl.BlockSpec((tk, tn), lambda i, j, k: (k, j)),
        ],
        out_specs=pl.BlockSpec((tm, tn), lambda i, j, k: (i, j)),
        scratch_shapes=[pltpu.VMEM((tm, tn), jnp.float32)],
        compiler_params=pltpu.CompilerParams(
            dimension_semantics=("parallel", "parallel", "arbitrary"),
            vmem_limit_bytes=_VMEM_LIMIT,
        ),
        cost_estimate=cost,
    )(x, w)
    return out[:M] if Mp != M else out


# ---------------------------------------------------------------------------
# Head-major matmul: x @ w -> [n_heads, M, head_dim] (no wrapper transposes;
# attention consumes contiguous (tile, head_dim) blocks).
# ---------------------------------------------------------------------------
def _matmul_heads_kernel(x_ref, w_ref, o_ref, acc_ref):
    @pl.when(pl.program_id(2) == 0)
    def _init():
        acc_ref[...] = jnp.zeros_like(acc_ref)

    acc_ref[...] += jnp.dot(
        x_ref[...], w_ref[...], preferred_element_type=jnp.float32
    )

    @pl.when(pl.program_id(2) == pl.num_programs(2) - 1)
    def _store():
        o_ref[0] = acc_ref[...].astype(o_ref.dtype)


def pallas_matmul_heads(x, w, head_dim):
    """x: [M, K] @ w: [K, n_heads*head_dim] -> [n_heads, M, head_dim]."""
    M, K = x.shape
    K2, HN = w.shape
    assert K == K2 and K % 128 == 0
    assert head_dim % 128 == 0 and HN % head_dim == 0
    n_heads = HN // head_dim

    Mp = _round_up(M, 128)
    if Mp != M:
        x = jnp.pad(x, ((0, Mp - M), (0, 0)))

    tm = _pick_tile(Mp, (512, 256, 128))
    tk = _pick_tile(K, (512, 256, 128))
    while (Mp // tm) * n_heads < 2 and tm > 128:
        tm //= 2

    grid = (Mp // tm, n_heads, K // tk)
    cost = pl.CostEstimate(
        flops=2 * Mp * HN * K,
        transcendentals=0,
        bytes_accessed=(Mp * K + K * HN + Mp * HN) * x.dtype.itemsize,
    )
    out = pl.pallas_call(
        _matmul_heads_kernel,
        out_shape=jax.ShapeDtypeStruct((n_heads, Mp, head_dim), x.dtype),
        grid=grid,
        in_specs=[
            # x block index is constant across the head axis (h is inner of i),
            # so Pallas skips the redundant x DMA between heads.
            pl.BlockSpec((tm, tk), lambda i, h, k: (i, k)),
            pl.BlockSpec((tk, head_dim), lambda i, h, k: (k, h)),
        ],
        out_specs=pl.BlockSpec((1, tm, head_dim), lambda i, h, k: (h, i, 0)),
        scratch_shapes=[pltpu.VMEM((tm, head_dim), jnp.float32)],
        compiler_params=pltpu.CompilerParams(
            dimension_semantics=("parallel", "parallel", "arbitrary"),
            vmem_limit_bytes=_VMEM_LIMIT,
        ),
        cost_estimate=cost,
    )(x, w)
    return out[:, :M] if Mp != M else out


# ---------------------------------------------------------------------------
# Output projection: [H, M, dh] x [H*dh, D] -> [M, D], contracting over heads.
# ---------------------------------------------------------------------------
def _out_proj_kernel(a_ref, w_ref, o_ref, acc_ref):
    h = pl.program_id(2)

    @pl.when(h == 0)
    def _init():
        acc_ref[...] = jnp.zeros_like(acc_ref)

    acc_ref[...] += jnp.dot(
        a_ref[0], w_ref[...], preferred_element_type=jnp.float32
    )

    @pl.when(h == pl.num_programs(2) - 1)
    def _store():
        o_ref[...] = acc_ref[...].astype(o_ref.dtype)


def pallas_out_proj(attn_heads, w_o):
    H, M, dh = attn_heads.shape
    HD, D = w_o.shape
    assert HD == H * dh and dh % 128 == 0 and D % 128 == 0 and M % 128 == 0

    tm = _pick_tile(M, (512, 256, 128))
    tn = _pick_tile(D, (512, 256, 128))
    while (M // tm) * (D // tn) < 2 and tm > 128:
        tm //= 2
    while (M // tm) * (D // tn) < 2 and tn > 128:
        tn //= 2

    grid = (M // tm, D // tn, H)
    cost = pl.CostEstimate(
        flops=2 * M * D * HD,
        transcendentals=0,
        bytes_accessed=(M * HD + HD * D + M * D) * attn_heads.dtype.itemsize,
    )
    return pl.pallas_call(
        _out_proj_kernel,
        out_shape=jax.ShapeDtypeStruct((M, D), attn_heads.dtype),
        grid=grid,
        in_specs=[
            pl.BlockSpec((1, tm, dh), lambda i, j, h: (h, i, 0)),
            pl.BlockSpec((dh, tn), lambda i, j, h: (h, j)),
        ],
        out_specs=pl.BlockSpec((tm, tn), lambda i, j, h: (i, j)),
        scratch_shapes=[pltpu.VMEM((tm, tn), jnp.float32)],
        compiler_params=pltpu.CompilerParams(
            dimension_semantics=("parallel", "parallel", "arbitrary"),
            vmem_limit_bytes=_VMEM_LIMIT,
        ),
        cost_estimate=cost,
    )(attn_heads, w_o)


# ---------------------------------------------------------------------------
# Flash-style causal attention over head-major [H, B*S, dh] tensors.
# ---------------------------------------------------------------------------
def _flash_attn_kernel(q_ref, k_ref, v_ref, o_ref, m_sc, l_sc, acc_sc, *, scale):
    qi = pl.program_id(2)
    ki = pl.program_id(3)

    @pl.when(ki == 0)
    def _init():
        m_sc[...] = jnp.full_like(m_sc, -jnp.inf)
        l_sc[...] = jnp.zeros_like(l_sc)
        acc_sc[...] = jnp.zeros_like(acc_sc)

    def _step(masked):
        q = q_ref[0]
        k = k_ref[0]
        v = v_ref[0]
        # Contract last dims directly -> no explicit K-tile transpose.
        s = jax.lax.dot_general(
            q, k,
            dimension_numbers=(((1,), (1,)), ((), ())),
            preferred_element_type=jnp.float32,
        ) * scale
        if masked:  # only the diagonal block builds / applies the causal mask
            tq, tk = s.shape
            row = jax.lax.broadcasted_iota(jnp.int32, (tq, tk), 0)
            col = jax.lax.broadcasted_iota(jnp.int32, (tq, tk), 1)
            s = jnp.where(col <= row, s, jnp.float32(-1e30))
        m_prev = m_sc[...]
        m_new = jnp.maximum(m_prev, jnp.max(s, axis=-1, keepdims=True))
        alpha = jnp.exp(m_prev - m_new)
        p = jnp.exp(s - m_new)
        l_sc[...] = alpha * l_sc[...] + jnp.sum(p, axis=-1, keepdims=True)
        acc_sc[...] = alpha * acc_sc[...] + jnp.dot(
            p.astype(v.dtype), v, preferred_element_type=jnp.float32
        )
        m_sc[...] = m_new

    @pl.when(ki < qi)       # interior block: fully unmasked
    def _interior():
        _step(masked=False)

    @pl.when(ki == qi)      # diagonal block: causal mask (tq == tk)
    def _diag():
        _step(masked=True)

    @pl.when(ki == pl.num_programs(3) - 1)
    def _finalize():
        inv_l = pl.reciprocal(l_sc[...], approx=True)   # EUP slot, ~free
        o_ref[0] = (acc_sc[...] * inv_l).astype(o_ref.dtype)


def pallas_causal_mla_attention(q_heads, kv_heads, batch, seq, num_heads,
                                head_dim, scale):
    """q_heads: [H, B*S, dh]; kv_heads: [2H, B*S, dh] (K heads, then V heads)."""
    H, M, dh = q_heads.shape
    assert H == num_heads and M == batch * seq and dh == head_dim
    assert kv_heads.shape == (2 * num_heads, M, dh)
    assert seq % 128 == 0 and dh % 128 == 0

    t = _pick_tile(seq, (512, 256, 128))   # tq == tk (diag-mask / clamp logic)
    nb = seq // t

    def q_map(b, h, qi, ki):
        return (h, b * nb + qi, 0)

    # Clamp to the causal bound: skipped upper-triangle blocks keep the same
    # block index, so Pallas does not DMA K/V for them at all.
    def k_map(b, h, qi, ki):
        return (h, b * nb + jnp.minimum(ki, qi), 0)

    def v_map(b, h, qi, ki):
        return (h + num_heads, b * nb + jnp.minimum(ki, qi), 0)

    grid = (batch, num_heads, nb, nb)
    kernel = functools.partial(_flash_attn_kernel, scale=scale)
    itemsize = q_heads.dtype.itemsize
    cost = pl.CostEstimate(
        flops=2 * batch * num_heads * seq * seq * dh,   # causal ~halves QK^T + PV
        transcendentals=batch * num_heads * seq * seq // 2,
        bytes_accessed=4 * batch * seq * num_heads * dh * itemsize,
    )
    return pl.pallas_call(
        kernel,
        out_shape=jax.ShapeDtypeStruct((num_heads, M, dh), q_heads.dtype),
        grid=grid,
        in_specs=[
            pl.BlockSpec((1, t, dh), q_map),
            pl.BlockSpec((1, t, dh), k_map),
            pl.BlockSpec((1, t, dh), v_map),
        ],
        out_specs=pl.BlockSpec((1, t, dh), q_map),
        scratch_shapes=[
            pltpu.VMEM((t, 1), jnp.float32),    # running max
            pltpu.VMEM((t, 1), jnp.float32),    # running sum
            pltpu.VMEM((t, dh), jnp.float32),   # output accumulator
        ],
        compiler_params=pltpu.CompilerParams(
            dimension_semantics=("parallel", "parallel", "parallel", "arbitrary"),
            vmem_limit_bytes=_VMEM_LIMIT,
        ),
        cost_estimate=cost,
    )(q_heads, kv_heads, kv_heads)


# ---------------------------------------------------------------------------
# DaoMLA forward (wrapper glue: reshapes / pads / column slices only)
# ---------------------------------------------------------------------------
def init_mla_params(key, cfg, dtype=jnp.bfloat16):
    D = cfg["hidden_size"]
    H = cfg["num_heads"]
    dh = cfg["head_dim"]
    qr = cfg["q_lora_rank"]
    kvr = cfg["kv_lora_rank"]

    ks = jax.random.split(key, 4)
    s = 0.02

    def w(k, shape):
        return (jax.random.normal(k, shape, jnp.float32) * s).astype(dtype)

    return {
        # fused down-projection: Q-latent columns then KV-latent columns
        "w_dqkv": w(ks[0], (D, qr + kvr)),
        "w_uq": w(ks[1], (qr, H * dh)),
        # fused up-projection: first H*dh columns -> K heads, next H*dh -> V heads
        "w_ukv": w(ks[2], (kvr, 2 * H * dh)),
        "w_o": w(ks[3], (H * dh, D)),
    }


def dao_mla_forward(x, params, cfg):
    B, S, D = x.shape
    H = cfg["num_heads"]
    dh = cfg["head_dim"]
    qr = cfg["q_lora_rank"]
    scale = 1.0 / math.sqrt(dh)

    # Pad the sequence once up front so every kernel sees 128-aligned tiles.
    Sp = _round_up(S, 128)
    if Sp != S:
        x = jnp.pad(x, ((0, 0), (0, Sp - S), (0, 0)))
    x2 = x.reshape(B * Sp, D)

    # Fused low-rank down-projection (single pass over x).
    latents = pallas_matmul(x2, params["w_dqkv"])          # [B*Sp, qr+kvr]
    q_latent = latents[:, :qr]
    kv_latent = latents[:, qr:]

    # Head-major up-projections; K and V come out of one fused kernel.
    q_heads = pallas_matmul_heads(q_latent, params["w_uq"], dh)      # [H, B*Sp, dh]
    kv_heads = pallas_matmul_heads(kv_latent, params["w_ukv"], dh)   # [2H, B*Sp, dh]

    attn = pallas_causal_mla_attention(q_heads, kv_heads, B, Sp, H, dh, scale)

    y = pallas_out_proj(attn, params["w_o"]).reshape(B, Sp, D)
    return y[:, :S] if Sp != S else y


# ---------------------------------------------------------------------------
if __name__ == "__main__":
    attention_config = {
        "hidden_size": 256,
        "num_heads": 2,
        "head_dim": 128,      # lane-dense head dim (multiple of 128)
        "q_lora_rank": 128,
        "kv_lora_rank": 128,
    }

    key = jax.random.PRNGKey(0)
    k_param, k_x = jax.random.split(key)

    B, S, D = 2, 128, attention_config["hidden_size"]
    x = jax.random.normal(k_x, (B, S, D), jnp.float32).astype(jnp.bfloat16)
    params = init_mla_params(k_param, attention_config)

    fwd = jax.jit(functools.partial(dao_mla_forward, cfg=attention_config))
    out = jax.block_until_ready(fwd(x, params))

    assert out.shape == (B, S, D)
    assert bool(jnp.isfinite(out.astype(jnp.float32)).all())
    print("KERNEL_OK")
</pallas_src>

<mosaic_0001>
module attributes {stable_mosaic.version = 11 : i64} {
  func.func @_matmul_heads_kernel(%arg0: i32, %arg1: i32, %arg2: i32, %arg3: memref<256x128xbf16, #tpu.memory_space<vmem>>, %arg4: memref<128x128xbf16, #tpu.memory_space<vmem>>, %arg5: memref<1x256x128xbf16, #tpu.memory_space<vmem>>, %arg6: memref<256x128xf32, #tpu.memory_space<vmem>>) attributes {dimension_semantics = [#tpu.dimension_semantics<parallel>, #tpu.dimension_semantics<parallel>, #tpu.dimension_semantics<arbitrary>], iteration_bounds = array<i64: 1, 4, 1>, scalar_prefetch = 0 : i64, scratch_operands = 1 : i64, tpu.core_type = #tpu.core_type<tc>, window_params = [{transform_indices = @transform_0, window_bounds = array<i64: 256, 128>}, {transform_indices = @transform_1, window_bounds = array<i64: 128, 128>}, {transform_indices = @transform_2, window_bounds = array<i64: 1, 256, 128>}]} {
    %c0_i32 = arith.constant 0 : i32
    %0 = arith.cmpi eq, %arg2, %c0_i32 : i32
    %1 = arith.extui %0 : i1 to i32
    %c0_i32_0 = arith.constant 0 : i32
    %2 = arith.cmpi ne, %1, %c0_i32_0 : i32
    scf.if %2 {
      %cst_10 = arith.constant 0.000000e+00 : f32
      %12 = vector.broadcast %cst_10 : f32 to vector<256x128xf32>
      %c0_11 = arith.constant 0 : index
      %c0_12 = arith.constant 0 : index
      %13 = vector.load %arg6[%c0_11, %c0_12] : memref<256x128xf32, #tpu.memory_space<vmem>>, vector<256x128xf32>
      tpu.vector_store %arg6[%c0_11, %c0_12], %12 {strides = array<i32>} : memref<256x128xf32, #tpu.memory_space<vmem>>, vector<256x128xf32>,
    } else {
    }
    %c0 = arith.constant 0 : index
    %c0_1 = arith.constant 0 : index
    %3 = vector.load %arg6[%c0, %c0_1] : memref<256x128xf32, #tpu.memory_space<vmem>>, vector<256x128xf32>
    %c0_2 = arith.constant 0 : index
    %c0_3 = arith.constant 0 : index
    %4 = vector.load %arg3[%c0_2, %c0_3] : memref<256x128xbf16, #tpu.memory_space<vmem>>, vector<256x128xbf16>
    %c0_4 = arith.constant 0 : index
    %c0_5 = arith.constant 0 : index
    %5 = vector.load %arg4[%c0_4, %c0_5] : memref<128x128xbf16, #tpu.memory_space<vmem>>, vector<128x128xbf16>
    %cst = arith.constant dense<0.000000e+00> : vector<256x128xf32>
    %6 = tpu.matmul %4, %5, %cst {dimension_numbers = #tpu.dot_dimension_numbers<[1], [0], [0], [1], [0, 0, 1, 1], [], []>} : vector<256x128xbf16>, vector<128x128xbf16>, vector<256x128xf32> -> vector<256x128xf32>
    %7 = arith.addf %3, %6 : vector<256x128xf32>
    %c0_6 = arith.constant 0 : index
    %c0_7 = arith.constant 0 : index
    %8 = vector.load %arg6[%c0_6, %c0_7] : memref<256x128xf32, #tpu.memory_space<vmem>>, vector<256x128xf32>
    tpu.vector_store %arg6[%c0_6, %c0_7], %7 {strides = array<i32>} : memref<256x128xf32, #tpu.memory_space<vmem>>, vector<256x128xf32>,
    %c0_i32_8 = arith.constant 0 : i32
    %9 = arith.cmpi eq, %arg2, %c0_i32_8 : i32
    %10 = arith.extui %9 : i1 to i32
    %c0_i32_9 = arith.constant 0 : i32
    %11 = arith.cmpi ne, %10, %c0_i32_9 : i32
    scf.if %11 {
      %c0_10 = arith.constant 0 : index
      %c0_11 = arith.constant 0 : index
      %12 = vector.load %arg6[%c0_10, %c0_11] : memref<256x128xf32, #tpu.memory_space<vmem>>, vector<256x128xf32>
      %13 = arith.truncf %12 : vector<256x128xf32> to vector<256x128xbf16>
      %c0_12 = arith.constant 0 : index
      %c0_13 = arith.constant 0 : index
      %c0_14 = arith.constant 0 : index
      %14 = vector.load %arg5[%c0_12, %c0_13, %c0_14] : memref<1x256x128xbf16, #tpu.memory_space<vmem>>, vector<1x256x128xbf16>
      %15 = vector.shape_cast %14 : vector<1x256x128xbf16> to vector<256x128xbf16>
      %16 = vector.shape_cast %13 : vector<256x128xbf16> to vector<1x256x128xbf16>
      tpu.vector_store %arg5[%c0_12, %c0_13, %c0_14], %16 {strides = array<i32>} : memref<1x256x128xbf16, #tpu.memory_space<vmem>>, vector<1x256x128xbf16>,
    } else {
    }
    return
  }
  func.func @transform_0(%arg0: i32, %arg1: i32, %arg2: i32) -> (i32, i32) {
    %c0_i32 = arith.constant 0 : i32
    return %arg0, %arg2 : i32, i32
  }
  func.func @transform_1(%arg0: i32, %arg1: i32, %arg2: i32) -> (i32, i32) {
    %c0_i32 = arith.constant 0 : i32
    return %arg2, %arg1 : i32, i32
  }
  func.func @transform_2(%arg0: i32, %arg1: i32, %arg2: i32) -> (i32, i32, i32) {
    %c0_i32 = arith.constant 0 : i32
    %c0_i32_0 = arith.constant 0 : i32
    return %arg1, %arg0, %c0_i32 : i32, i32, i32
  }
}

module attributes {stable_mosaic.version = 11 : i64} {
  func.func @_matmul_heads_kernel(%arg0: i32, %arg1: i32, %arg2: i32, %arg3: memref<256x128xbf16, #tpu.memory_space<vmem>>, %arg4: memref<128x128xbf16, #tpu.memory_space<vmem>>, %arg5: memref<1x256x128xbf16, #tpu.memory_space<vmem>>, %arg6: memref<256x128xf32, #tpu.memory_space<vmem>>) attributes {dimension_semantics = [#tpu.dimension_semantics<parallel>, #tpu.dimension_semantics<parallel>, #tpu.dimension_semantics<arbitrary>], iteration_bounds = array<i64: 1, 2, 1>, scalar_prefetch = 0 : i64, scratch_operands = 1 : i64, tpu.core_type = #tpu.core_type<tc>, window_params = [{transform_indices = @transform_0, window_bounds = array<i64: 256, 128>}, {transform_indices = @transform_1, window_bounds = array<i64: 128, 128>}, {transform_indices = @transform_2, window_bounds = array<i64: 1, 256, 128>}]} {
    %c0_i32 = arith.constant 0 : i32
    %0 = arith.cmpi eq, %arg2, %c0_i32 : i32
    %1 = arith.extui %0 : i1 to i32
    %c0_i32_0 = arith.constant 0 : i32
    %2 = arith.cmpi ne, %1, %c0_i32_0 : i32
    scf.if %2 {
      %cst_10 = arith.constant 0.000000e+00 : f32
      %12 = vector.broadcast %cst_10 : f32 to vector<256x128xf32>
      %c0_11 = arith.constant 0 : index
      %c0_12 = arith.constant 0 : index
      %13 = vector.load %arg6[%c0_11, %c0_12] : memref<256x128xf32, #tpu.memory_space<vmem>>, vector<256x128xf32>
      tpu.vector_store %arg6[%c0_11, %c0_12], %12 {strides = array<i32>} : memref<256x128xf32, #tpu.memory_space<vmem>>, vector<256x128xf32>,
    } else {
    }
    %c0 = arith.constant 0 : index
    %c0_1 = arith.constant 0 : index
    %3 = vector.load %arg6[%c0, %c0_1] : memref<256x128xf32, #tpu.memory_space<vmem>>, vector<256x128xf32>
    %c0_2 = arith.constant 0 : index
    %c0_3 = arith.constant 0 : index
    %4 = vector.load %arg3[%c0_2, %c0_3] : memref<256x128xbf16, #tpu.memory_space<vmem>>, vector<256x128xbf16>
    %c0_4 = arith.constant 0 : index
    %c0_5 = arith.constant 0 : index
    %5 = vector.load %arg4[%c0_4, %c0_5] : memref<128x128xbf16, #tpu.memory_space<vmem>>, vector<128x128xbf16>
    %cst = arith.constant dense<0.000000e+00> : vector<256x128xf32>
    %6 = tpu.matmul %4, %5, %cst {dimension_numbers = #tpu.dot_dimension_numbers<[1], [0], [0], [1], [0, 0, 1, 1], [], []>} : vector<256x128xbf16>, vector<128x128xbf16>, vector<256x128xf32> -> vector<256x128xf32>
    %7 = arith.addf %3, %6 : vector<256x128xf32>
    %c0_6 = arith.constant 0 : index
    %c0_7 = arith.constant 0 : index
    %8 = vector.load %arg6[%c0_6, %c0_7] : memref<256x128xf32, #tpu.memory_space<vmem>>, vector<256x128xf32>
    tpu.vector_store %arg6[%c0_6, %c0_7], %7 {strides = array<i32>} : memref<256x128xf32, #tpu.memory_space<vmem>>, vector<256x128xf32>,
    %c0_i32_8 = arith.constant 0 : i32
    %9 = arith.cmpi eq, %arg2, %c0_i32_8 : i32
    %10 = arith.extui %9 : i1 to i32
    %c0_i32_9 = arith.constant 0 : i32
    %11 = arith.cmpi ne, %10, %c0_i32_9 : i32
    scf.if %11 {
      %c0_10 = arith.constant 0 : index
      %c0_11 = arith.constant 0 : index
      %12 = vector.load %arg6[%c0_10, %c0_11] : memref<256x128xf32, #tpu.memory_space<vmem>>, vector<256x128xf32>
      %13 = arith.truncf %12 : vector<256x128xf32> to vector<256x128xbf16>
      %c0_12 = arith.constant 0 : index
      %c0_13 = arith.constant 0 : index
      %c0_14 = arith.constant 0 : index
      %14 = vector.load %arg5[%c0_12, %c0_13, %c0_14] : memref<1x256x128xbf16, #tpu.memory_space<vmem>>, vector<1x256x128xbf16>
      %15 = vector.shape_cast %14 : vector<1x256x128xbf16> to vector<256x128xbf16>
      %16 = vector.shape_cast %13 : vector<256x128xbf16> to vector<1x256x128xbf16>
      tpu.vector_store %arg5[%c0_12, %c0_13, %c0_14], %16 {strides = array<i32>} : memref<1x256x128xbf16, #tpu.memory_space<vmem>>, vector<1x256x128xbf16>,
    } else {
    }
    return
  }
  func.func @transform_0(%arg0: i32, %arg1: i32, %arg2: i32) -> (i32, i32) {
    %c0_i32 = arith.constant 0 : i32
    return %arg0, %arg2 : i32, i32
  }
  func.func @transform_1(%arg0: i32, %arg1: i32, %arg2: i32) -> (i32, i32) {
    %c0_i32 = arith.constant 0 : i32
    return %arg2, %arg1 : i32, i32
  }
  func.func @transform_2(%arg0: i32, %arg1: i32, %arg2: i32) -> (i32, i32, i32) {
    %c0_i32 = arith.constant 0 : i32
    %c0_i32_0 = arith.constant 0 : i32
    return %arg1, %arg0, %c0_i32 : i32, i32, i32
  }
}

module attributes {stable_mosaic.version = 11 : i64} {
  func.func @_matmul_kernel(%arg0: i32, %arg1: i32, %arg2: i32, %arg3: memref<128x256xbf16, #tpu.memory_space<vmem>>, %arg4: memref<256x256xbf16, #tpu.memory_space<vmem>>, %arg5: memref<128x256xbf16, #tpu.memory_space<vmem>>, %arg6: memref<128x256xf32, #tpu.memory_space<vmem>>) attributes {dimension_semantics = [#tpu.dimension_semantics<parallel>, #tpu.dimension_semantics<parallel>, #tpu.dimension_semantics<arbitrary>], iteration_bounds = array<i64: 2, 1, 1>, scalar_prefetch = 0 : i64, scratch_operands = 1 : i64, tpu.core_type = #tpu.core_type<tc>, window_params = [{transform_indices = @transform_0, window_bounds = array<i64: 128, 256>}, {transform_indices = @transform_1, window_bounds = array<i64: 256, 256>}, {transform_indices = @transform_2, window_bounds = array<i64: 128, 256>}]} {
    %c0_i32 = arith.constant 0 : i32
    %0 = arith.cmpi eq, %arg2, %c0_i32 : i32
    %1 = arith.extui %0 : i1 to i32
    %c0_i32_0 = arith.constant 0 : i32
    %2 = arith.cmpi ne, %1, %c0_i32_0 : i32
    scf.if %2 {
      %cst_10 = arith.constant 0.000000e+00 : f32
      %12 = vector.broadcast %cst_10 : f32 to vector<128x256xf32>
      %c0_11 = arith.constant 0 : index
      %c0_12 = arith.constant 0 : index
      %13 = vector.load %arg6[%c0_11, %c0_12] : memref<128x256xf32, #tpu.memory_space<vmem>>, vector<128x256xf32>
      tpu.vector_store %arg6[%c0_11, %c0_12], %12 {strides = array<i32>} : memref<128x256xf32, #tpu.memory_space<vmem>>, vector<128x256xf32>,
    } else {
    }
    %c0 = arith.constant 0 : index
    %c0_1 = arith.constant 0 : index
    %3 = vector.load %arg6[%c0, %c0_1] : memref<128x256xf32, #tpu.memory_space<vmem>>, vector<128x256xf32>
    %c0_2 = arith.constant 0 : index
    %c0_3 = arith.constant 0 : index
    %4 = vector.load %arg3[%c0_2, %c0_3] : memref<128x256xbf16, #tpu.memory_space<vmem>>, vector<128x256xbf16>
    %c0_4 = arith.constant 0 : index
    %c0_5 = arith.constant 0 : index
    %5 = vector.load %arg4[%c0_4, %c0_5] : memref<256x256xbf16, #tpu.memory_space<vmem>>, vector<256x256xbf16>
    %cst = arith.constant dense<0.000000e+00> : vector<128x256xf32>
    %6 = tpu.matmul %4, %5, %cst {dimension_numbers = #tpu.dot_dimension_numbers<[1], [0], [0], [1], [0, 0, 1, 1], [], []>} : vector<128x256xbf16>, vector<256x256xbf16>, vector<128x256xf32> -> vector<128x256xf32>
    %7 = arith.addf %3, %6 : vector<128x256xf32>
    %c0_6 = arith.constant 0 : index
    %c0_7 = arith.constant 0 : index
    %8 = vector.load %arg6[%c0_6, %c0_7] : memref<128x256xf32, #tpu.memory_space<vmem>>, vector<128x256xf32>
    tpu.vector_store %arg6[%c0_6, %c0_7], %7 {strides = array<i32>} : memref<128x256xf32, #tpu.memory_space<vmem>>, vector<128x256xf32>,
    %c0_i32_8 = arith.constant 0 : i32
    %9 = arith.cmpi eq, %arg2, %c0_i32_8 : i32
    %10 = arith.extui %9 : i1 to i32
    %c0_i32_9 = arith.constant 0 : i32
    %11 = arith.cmpi ne, %10, %c0_i32_9 : i32
    scf.if %11 {
      %c0_10 = arith.constant 0 : index
      %c0_11 = arith.constant 0 : index
      %12 = vector.load %arg6[%c0_10, %c0_11] : memref<128x256xf32, #tpu.memory_space<vmem>>, vector<128x256xf32>
      %13 = arith.truncf %12 : vector<128x256xf32> to vector<128x256xbf16>
      %c0_12 = arith.constant 0 : index
      %c0_13 = arith.constant 0 : index
      %14 = vector.load %arg5[%c0_12, %c0_13] : memref<128x256xbf16, #tpu.memory_space<vmem>>, vector<128x256xbf16>
      tpu.vector_store %arg5[%c0_12, %c0_13], %13 {strides = array<i32>} : memref<128x256xbf16, #tpu.memory_space<vmem>>, vector<128x256xbf16>,
    } else {
    }
    return
  }
  func.func @transform_0(%arg0: i32, %arg1: i32, %arg2: i32) -> (i32, i32) {
    %c0_i32 = arith.constant 0 : i32
    return %arg0, %arg2 : i32, i32
  }
  func.func @transform_1(%arg0: i32, %arg1: i32, %arg2: i32) -> (i32, i32) {
    %c0_i32 = arith.constant 0 : i32
    return %arg2, %arg1 : i32, i32
  }
  func.func @transform_2(%arg0: i32, %arg1: i32, %arg2: i32) -> (i32, i32) {
    %c0_i32 = arith.constant 0 : i32
    return %arg0, %arg1 : i32, i32
  }
}

module attributes {stable_mosaic.version = 11 : i64} {
  func.func @_flash_attn_kernel(%arg0: i32, %arg1: i32, %arg2: i32, %arg3: i32, %arg4: memref<1x128x128xbf16, #tpu.memory_space<vmem>>, %arg5: memref<1x128x128xbf16, #tpu.memory_space<vmem>>, %arg6: memref<1x128x128xbf16, #tpu.memory_space<vmem>>, %arg7: memref<1x128x128xbf16, #tpu.memory_space<vmem>>, %arg8: memref<128x1xf32, #tpu.memory_space<vmem>>, %arg9: memref<128x1xf32, #tpu.memory_space<vmem>>, %arg10: memref<128x128xf32, #tpu.memory_space<vmem>>) attributes {dimension_semantics = [#tpu.dimension_semantics<parallel>, #tpu.dimension_semantics<parallel>, #tpu.dimension_semantics<parallel>, #tpu.dimension_semantics<arbitrary>], iteration_bounds = array<i64: 2, 2, 1, 1>, scalar_prefetch = 0 : i64, scratch_operands = 3 : i64, tpu.core_type = #tpu.core_type<tc>, window_params = [{transform_indices = @transform_0, window_bounds = array<i64: 1, 128, 128>}, {transform_indices = @transform_1, window_bounds = array<i64: 1, 128, 128>}, {transform_indices = @transform_2, window_bounds = array<i64: 1, 128, 128>}, {transform_indices = @transform_3, window_bounds = array<i64: 1, 128, 128>}]} {
    %c0_i32 = arith.constant 0 : i32
    %0 = arith.cmpi eq, %arg3, %c0_i32 : i32
    %1 = arith.extui %0 : i1 to i32
    %c0_i32_0 = arith.constant 0 : i32
    %2 = arith.cmpi ne, %1, %c0_i32_0 : i32
    scf.if %2 {
      %cst = arith.constant 0xFF800000 : f32
      %12 = vector.broadcast %cst : f32 to vector<128x1xf32>
      %c0 = arith.constant 0 : index
      %c0_5 = arith.constant 0 : index
      %13 = vector.load %arg8[%c0, %c0_5] : memref<128x1xf32, #tpu.memory_space<vmem>>, vector<128x1xf32>
      tpu.vector_store %arg8[%c0, %c0_5], %12 {strides = array<i32>} : memref<128x1xf32, #tpu.memory_space<vmem>>, vector<128x1xf32>,
      %cst_6 = arith.constant 0.000000e+00 : f32
      %14 = vector.broadcast %cst_6 : f32 to vector<128x1xf32>
      %c0_7 = arith.constant 0 : index
      %c0_8 = arith.constant 0 : index
      %15 = vector.load %arg9[%c0_7, %c0_8] : memref<128x1xf32, #tpu.memory_space<vmem>>, vector<128x1xf32>
      tpu.vector_store %arg9[%c0_7, %c0_8], %14 {strides = array<i32>} : memref<128x1xf32, #tpu.memory_space<vmem>>, vector<128x1xf32>,
      %cst_9 = arith.constant 0.000000e+00 : f32
      %16 = vector.broadcast %cst_9 : f32 to vector<128x128xf32>
      %c0_10 = arith.constant 0 : index
      %c0_11 = arith.constant 0 : index
      %17 = vector.load %arg10[%c0_10, %c0_11] : memref<128x128xf32, #tpu.memory_space<vmem>>, vector<128x128xf32>
      tpu.vector_store %arg10[%c0_10, %c0_11], %16 {strides = array<i32>} : memref<128x128xf32, #tpu.memory_space<vmem>>, vector<128x128xf32>,
    } else {
    }
    %3 = arith.cmpi slt, %arg3, %arg2 : i32
    %4 = arith.extui %3 : i1 to i32
    %c0_i32_1 = arith.constant 0 : i32
    %5 = arith.cmpi ne, %4, %c0_i32_1 : i32
    scf.if %5 {
      %c0 = arith.constant 0 : index
      %c0_5 = arith.constant 0 : index
      %c0_6 = arith.constant 0 : index
      %12 = vector.load %arg4[%c0, %c0_5, %c0_6] : memref<1x128x128xbf16, #tpu.memory_space<vmem>>, vector<1x128x128xbf16>
      %13 = vector.shape_cast %12 : vector<1x128x128xbf16> to vector<128x128xbf16>
      %c0_7 = arith.constant 0 : index
      %c0_8 = arith.constant 0 : index
      %c0_9 = arith.constant 0 : index
      %14 = vector.load %arg5[%c0_7, %c0_8, %c0_9] : memref<1x128x128xbf16, #tpu.memory_space<vmem>>, vector<1x128x128xbf16>
      %15 = vector.shape_cast %14 : vector<1x128x128xbf16> to vector<128x128xbf16>
      %c0_10 = arith.constant 0 : index
      %c0_11 = arith.constant 0 : index
      %c0_12 = arith.constant 0 : index
      %16 = vector.load %arg6[%c0_10, %c0_11, %c0_12] : memref<1x128x128xbf16, #tpu.memory_space<vmem>>, vector<1x128x128xbf16>
      %17 = vector.shape_cast %16 : vector<1x128x128xbf16> to vector<128x128xbf16>
      %cst = arith.constant dense<0.000000e+00> : vector<128x128xf32>
      %18 = tpu.matmul %13, %15, %cst {dimension_numbers = #tpu.dot_dimension_numbers<[1], [1], [0], [0], [0, 0, 1, 0], [], []>} : vector<128x128xbf16>, vector<128x128xbf16>, vector<128x128xf32> -> vector<128x128xf32>
      %cst_13 = arith.constant 0.0883883461 : f32
      %19 = vector.broadcast %cst_13 : f32 to vector<128x128xf32>
      %20 = arith.mulf %18, %19 : vector<128x128xf32>
      %c0_14 = arith.constant 0 : index
      %c0_15 = arith.constant 0 : index
      %21 = vector.load %arg8[%c0_14, %c0_15] : memref<128x1xf32, #tpu.memory_space<vmem>>, vector<128x1xf32>
      %cst_16 = arith.constant dense<0xFF800000> : vector<128xf32>
      %22 = vector.multi_reduction <maximumf>, %20, %cst_16 [1] : vector<128x128xf32> to vector<128xf32>
      %23 = vector.shape_cast %22 : vector<128xf32> to vector<128x1xf32>
      %24 = arith.maximumf %21, %23 : vector<128x1xf32>
      %25 = arith.subf %21, %24 : vector<128x1xf32>
      %26 = math.exp %25 : vector<128x1xf32>
      %27 = vector.broadcast %24 : vector<128x1xf32> to vector<128x128xf32>
      %28 = arith.subf %20, %27 : vector<128x128xf32>
      %29 = math.exp %28 : vector<128x128xf32>
      %c0_17 = arith.constant 0 : index
      %c0_18 = arith.constant 0 : index
      %30 = vector.load %arg9[%c0_17, %c0_18] : memref<128x1xf32, #tpu.memory_space<vmem>>, vector<128x1xf32>
      %31 = arith.mulf %26, %30 : vector<128x1xf32>
      %cst_19 = arith.constant dense<0.000000e+00> : vector<128xf32>
      %32 = vector.multi_reduction <add>, %29, %cst_19 [1] : vector<128x128xf32> to vector<128xf32>
      %33 = vector.shape_cast %32 : vector<128xf32> to vector<128x1xf32>
      %34 = arith.addf %31, %33 : vector<128x1xf32>
      %c0_20 = arith.constant 0 : index
      %c0_21 = arith.constant 0 : index
      %35 = vector.load %arg9[%c0_20, %c0_21] : memref<128x1xf32, #tpu.memory_space<vmem>>, vector<128x1xf32>
      tpu.vector_store %arg9[%c0_20, %c0_21], %34 {strides = array<i32>} : memref<128x1xf32, #tpu.memory_space<vmem>>, vector<128x1xf32>,
      %c0_22 = arith.constant 0 : index
      %c0_23 = arith.constant 0 : index
      %36 = vector.load %arg10[%c0_22, %c0_23] : memref<128x128xf32, #tpu.memory_space<vmem>>, vector<128x128xf32>
      %37 = vector.broadcast %26 : vector<128x1xf32> to vector<128x128xf32>
      %38 = arith.mulf %37, %36 : vector<128x128xf32>
      %39 = arith.truncf %29 : vector<128x128xf32> to vector<128x128xbf16>
      %cst_24 = arith.constant dense<0.000000e+00> : vector<128x128xf32>
      %40 = tpu.matmul %39, %17, %cst_24 {dimension_numbers = #tpu.dot_dimension_numbers<[1], [0], [0], [1], [0, 0, 1, 1], [], []>} : vector<128x128xbf16>, vector<128x128xbf16>, vector<128x128xf32> -> vector<128x128xf32>
      %41 = arith.addf %38, %40 : vector<128x128xf32>
      %c0_25 = arith.constant 0 : index
      %c0_26 = arith.constant 0 : index
      %42 = vector.load %arg10[%c0_25, %c0_26] : memref<128x128xf32, #tpu.memory_space<vmem>>, vector<128x128xf32>
      tpu.vector_store %arg10[%c0_25, %c0_26], %41 {strides = array<i32>} : memref<128x128xf32, #tpu.memory_space<vmem>>, vector<128x128xf32>,
      %c0_27 = arith.constant 0 : index
      %c0_28 = arith.constant 0 : index
      %43 = vector.load %arg8[%c0_27, %c0_28] : memref<128x1xf32, #tpu.memory_space<vmem>>, vector<128x1xf32>
      tpu.vector_store %arg8[%c0_27, %c0_28], %24 {strides = array<i32>} : memref<128x1xf32, #tpu.memory_space<vmem>>, vector<128x1xf32>,
    } else {
    }
    %6 = arith.cmpi eq, %arg3, %arg2 : i32
    %7 = arith.extui %6 : i1 to i32
    %c0_i32_2 = arith.constant 0 : i32
    %8 = arith.cmpi ne, %7, %c0_i32_2 : i32
    scf.if %8 {
      %c0 = arith.constant 0 : index
      %c0_5 = arith.constant 0 : index
      %c0_6 = arith.constant 0 : index
      %12 = vector.load %arg4[%c0, %c0_5, %c0_6] : memref<1x128x128xbf16, #tpu.memory_space<vmem>>, vector<1x128x128xbf16>
      %13 = vector.shape_cast %12 : vector<1x128x128xbf16> to vector<128x128xbf16>
      %c0_7 = arith.constant 0 : index
      %c0_8 = arith.constant 0 : index
      %c0_9 = arith.constant 0 : index
      %14 = vector.load %arg5[%c0_7, %c0_8, %c0_9] : memref<1x128x128xbf16, #tpu.memory_space<vmem>>, vector<1x128x128xbf16>
      %15 = vector.shape_cast %14 : vector<1x128x128xbf16> to vector<128x128xbf16>
      %c0_10 = arith.constant 0 : index
      %c0_11 = arith.constant 0 : index
      %c0_12 = arith.constant 0 : index
      %16 = vector.load %arg6[%c0_10, %c0_11, %c0_12] : memref<1x128x128xbf16, #tpu.memory_space<vmem>>, vector<1x128x128xbf16>
      %17 = vector.shape_cast %16 : vector<1x128x128xbf16> to vector<128x128xbf16>
      %cst = arith.constant dense<0.000000e+00> : vector<128x128xf32>
      %18 = tpu.matmul %13, %15, %cst {dimension_numbers = #tpu.dot_dimension_numbers<[1], [1], [0], [0], [0, 0, 1, 0], [], []>} : vector<128x128xbf16>, vector<128x128xbf16>, vector<128x128xf32> -> vector<128x128xf32>
      %cst_13 = arith.constant 0.0883883461 : f32
      %19 = vector.broadcast %cst_13 : f32 to vector<128x128xf32>
      %20 = arith.mulf %18, %19 : vector<128x128xf32>
      %21 = tpu.iota {dimensions = array<i32: 0>} : vector<128x128xi32>
      %22 = tpu.iota {dimensions = array<i32: 1>} : vector<128x128xi32>
      %23 = arith.cmpi sle, %22, %21 : vector<128x128xi32>
      %cst_14 = arith.constant -1.000000e+30 : f32
      %24 = vector.broadcast %cst_14 : f32 to vector<128x128xf32>
      %25 = arith.select %23, %20, %24 : vector<128x128xi1>, vector<128x128xf32>
      %c0_15 = arith.constant 0 : index
      %c0_16 = arith.constant 0 : index
      %26 = vector.load %arg8[%c0_15, %c0_16] : memref<128x1xf32, #tpu.memory_space<vmem>>, vector<128x1xf32>
      %cst_17 = arith.constant dense<0xFF800000> : vector<128xf32>
      %27 = vector.multi_reduction <maximumf>, %25, %cst_17 [1] : vector<128x128xf32> to vector<128xf32>
      %28 = vector.shape_cast %27 : vector<128xf32> to vector<128x1xf32>
      %29 = arith.maximumf %26, %28 : vector<128x1xf32>
      %30 = arith.subf %26, %29 : vector<128x1xf32>
      %31 = math.exp %30 : vector<128x1xf32>
      %32 = vector.broadcast %29 : vector<128x1xf32> to vector<128x128xf32>
      %33 = arith.subf %25, %32 : vector<128x128xf32>
      %34 = math.exp %33 : vector<128x128xf32>
      %c0_18 = arith.constant 0 : index
      %c0_19 = arith.constant 0 : index
      %35 = vector.load %arg9[%c0_18, %c0_19] : memref<128x1xf32, #tpu.memory_space<vmem>>, vector<128x1xf32>
      %36 = arith.mulf %31, %35 : vector<128x1xf32>
      %cst_20 = arith.constant dense<0.000000e+00> : vector<128xf32>
      %37 = vector.multi_reduction <add>, %34, %cst_20 [1] : vector<128x128xf32> to vector<128xf32>
      %38 = vector.shape_cast %37 : vector<128xf32> to vector<128x1xf32>
      %39 = arith.addf %36, %38 : vector<128x1xf32>
      %c0_21 = arith.constant 0 : index
      %c0_22 = arith.constant 0 : index
      %40 = vector.load %arg9[%c0_21, %c0_22] : memref<128x1xf32, #tpu.memory_space<vmem>>, vector<128x1xf32>
      tpu.vector_store %arg9[%c0_21, %c0_22], %39 {strides = array<i32>} : memref<128x1xf32, #tpu.memory_space<vmem>>, vector<128x1xf32>,
      %c0_23 = arith.constant 0 : index
      %c0_24 = arith.constant 0 : index
      %41 = vector.load %arg10[%c0_23, %c0_24] : memref<128x128xf32, #tpu.memory_space<vmem>>, vector<128x128xf32>
      %42 = vector.broadcast %31 : vector<128x1xf32> to vector<128x128xf32>
      %43 = arith.mulf %42, %41 : vector<128x128xf32>
      %44 = arith.truncf %34 : vector<128x128xf32> to vector<128x128xbf16>
      %cst_25 = arith.constant dense<0.000000e+00> : vector<128x128xf32>
      %45 = tpu.matmul %44, %17, %cst_25 {dimension_numbers = #tpu.dot_dimension_numbers<[1], [0], [0], [1], [0, 0, 1, 1], [], []>} : vector<128x128xbf16>, vector<128x128xbf16>, vector<128x128xf32> -> vector<128x128xf32>
      %46 = arith.addf %43, %45 : vector<128x128xf32>
      %c0_26 = arith.constant 0 : index
      %c0_27 = arith.constant 0 : index
      %47 = vector.load %arg10[%c0_26, %c0_27] : memref<128x128xf32, #tpu.memory_space<vmem>>, vector<128x128xf32>
      tpu.vector_store %arg10[%c0_26, %c0_27], %46 {strides = array<i32>} : memref<128x128xf32, #tpu.memory_space<vmem>>, vector<128x128xf32>,
      %c0_28 = arith.constant 0 : index
      %c0_29 = arith.constant 0 : index
      %48 = vector.load %arg8[%c0_28, %c0_29] : memref<128x1xf32, #tpu.memory_space<vmem>>, vector<128x1xf32>
      tpu.vector_store %arg8[%c0_28, %c0_29], %29 {strides = array<i32>} : memref<128x1xf32, #tpu.memory_space<vmem>>, vector<128x1xf32>,
    } else {
    }
    %c0_i32_3 = arith.constant 0 : i32
    %9 = arith.cmpi eq, %arg3, %c0_i32_3 : i32
    %10 = arith.extui %9 : i1 to i32
    %c0_i32_4 = arith.constant 0 : i32
    %11 = arith.cmpi ne, %10, %c0_i32_4 : i32
    scf.if %11 {
      %c0 = arith.constant 0 : index
      %c0_5 = arith.constant 0 : index
      %12 = vector.load %arg9[%c0, %c0_5] : memref<128x1xf32, #tpu.memory_space<vmem>>, vector<128x1xf32>
      %13 = tpu.reciprocal %12 {approx = true} : vector<128x1xf32> -> vector<128x1xf32>
      %c0_6 = arith.constant 0 : index
      %c0_7 = arith.constant 0 : index
      %14 = vector.load %arg10[%c0_6, %c0_7] : memref<128x128xf32, #tpu.memory_space<vmem>>, vector<128x128xf32>
      %15 = vector.broadcast %13 : vector<128x1xf32> to vector<128x128xf32>
      %16 = arith.mulf %14, %15 : vector<128x128xf32>
      %17 = arith.truncf %16 : vector<128x128xf32> to vector<128x128xbf16>
      %c0_8 = arith.constant 0 : index
      %c0_9 = arith.constant 0 : index
      %c0_10 = arith.constant 0 : index
      %18 = vector.load %arg7[%c0_8, %c0_9, %c0_10] : memref<1x128x128xbf16, #tpu.memory_space<vmem>>, vector<1x128x128xbf16>
      %19 = vector.shape_cast %18 : vector<1x128x128xbf16> to vector<128x128xbf16>
      %20 = vector.shape_cast %17 : vector<128x128xbf16> to vector<1x128x128xbf16>
      tpu.vector_store %arg7[%c0_8, %c0_9, %c0_10], %20 {strides = array<i32>} : memref<1x128x128xbf16, #tpu.memory_space<vmem>>, vector<1x128x128xbf16>,
    } else {
    }
    return
  }
  func.func @transform_0(%arg0: i32, %arg1: i32, %arg2: i32, %arg3: i32) -> (i32, i32, i32) {
    %c1_i32 = arith.constant 1 : i32
    %0 = arith.muli %arg0, %c1_i32 : i32
    %1 = arith.addi %0, %arg2 : i32
    %c0_i32 = arith.constant 0 : i32
    %c0_i32_0 = arith.constant 0 : i32
    return %arg1, %1, %c0_i32 : i32, i32, i32
  }
  func.func @transform_1(%arg0: i32, %arg1: i32, %arg2: i32, %arg3: i32) -> (i32, i32, i32) {
    %c1_i32 = arith.constant 1 : i32
    %0 = arith.muli %arg0, %c1_i32 : i32
    %1 = arith.minsi %arg3, %arg2 : i32
    %2 = arith.addi %0, %1 : i32
    %c0_i32 = arith.constant 0 : i32
    %c0_i32_0 = arith.constant 0 : i32
    return %arg1, %2, %c0_i32 : i32, i32, i32
  }
  func.func @transform_2(%arg0: i32, %arg1: i32, %arg2: i32, %arg3: i32) -> (i32, i32, i32) {
    %c2_i32 = arith.constant 2 : i32
    %0 = arith.addi %arg1, %c2_i32 : i32
    %c1_i32 = arith.constant 1 : i32
    %1 = arith.muli %arg0, %c1_i32 : i32
    %2 = arith.minsi %arg3, %arg2 : i32
    %3 = arith.addi %1, %2 : i32
    %c0_i32 = arith.constant 0 : i32
    %c0_i32_0 = arith.constant 0 : i32
    return %0, %3, %c0_i32 : i32, i32, i32
  }
  func.func @transform_3(%arg0: i32, %arg1: i32, %arg2: i32, %arg3: i32) -> (i32, i32, i32) {
    %c1_i32 = arith.constant 1 : i32
    %0 = arith.muli %arg0, %c1_i32 : i32
    %1 = arith.addi %0, %arg2 : i32
    %c0_i32 = arith.constant 0 : i32
    %c0_i32_0 = arith.constant 0 : i32
    return %arg1, %1, %c0_i32 : i32, i32, i32
  }
}

module attributes {stable_mosaic.version = 11 : i64} {
  func.func @_out_proj_kernel(%arg0: i32, %arg1: i32, %arg2: i32, %arg3: memref<1x128x128xbf16, #tpu.memory_space<vmem>>, %arg4: memref<128x256xbf16, #tpu.memory_space<vmem>>, %arg5: memref<128x256xbf16, #tpu.memory_space<vmem>>, %arg6: memref<128x256xf32, #tpu.memory_space<vmem>>) attributes {dimension_semantics = [#tpu.dimension_semantics<parallel>, #tpu.dimension_semantics<parallel>, #tpu.dimension_semantics<arbitrary>], iteration_bounds = array<i64: 2, 1, 2>, scalar_prefetch = 0 : i64, scratch_operands = 1 : i64, tpu.core_type = #tpu.core_type<tc>, window_params = [{transform_indices = @transform_0, window_bounds = array<i64: 1, 128, 128>}, {transform_indices = @transform_1, window_bounds = array<i64: 128, 256>}, {transform_indices = @transform_2, window_bounds = array<i64: 128, 256>}]} {
    %c0_i32 = arith.constant 0 : i32
    %0 = arith.cmpi eq, %arg2, %c0_i32 : i32
    %1 = arith.extui %0 : i1 to i32
    %c0_i32_0 = arith.constant 0 : i32
    %2 = arith.cmpi ne, %1, %c0_i32_0 : i32
    scf.if %2 {
      %cst_10 = arith.constant 0.000000e+00 : f32
      %13 = vector.broadcast %cst_10 : f32 to vector<128x256xf32>
      %c0_11 = arith.constant 0 : index
      %c0_12 = arith.constant 0 : index
      %14 = vector.load %arg6[%c0_11, %c0_12] : memref<128x256xf32, #tpu.memory_space<vmem>>, vector<128x256xf32>
      tpu.vector_store %arg6[%c0_11, %c0_12], %13 {strides = array<i32>} : memref<128x256xf32, #tpu.memory_space<vmem>>, vector<128x256xf32>,
    } else {
    }
    %c0 = arith.constant 0 : index
    %c0_1 = arith.constant 0 : index
    %3 = vector.load %arg6[%c0, %c0_1] : memref<128x256xf32, #tpu.memory_space<vmem>>, vector<128x256xf32>
    %c0_2 = arith.constant 0 : index
    %c0_3 = arith.constant 0 : index
    %c0_4 = arith.constant 0 : index
    %4 = vector.load %arg3[%c0_2, %c0_3, %c0_4] : memref<1x128x128xbf16, #tpu.memory_space<vmem>>, vector<1x128x128xbf16>
    %5 = vector.shape_cast %4 : vector<1x128x128xbf16> to vector<128x128xbf16>
    %c0_5 = arith.constant 0 : index
    %c0_6 = arith.constant 0 : index
    %6 = vector.load %arg4[%c0_5, %c0_6] : memref<128x256xbf16, #tpu.memory_space<vmem>>, vector<128x256xbf16>
    %cst = arith.constant dense<0.000000e+00> : vector<128x256xf32>
    %7 = tpu.matmul %5, %6, %cst {dimension_numbers = #tpu.dot_dimension_numbers<[1], [0], [0], [1], [0, 0, 1, 1], [], []>} : vector<128x128xbf16>, vector<128x256xbf16>, vector<128x256xf32> -> vector<128x256xf32>
    %8 = arith.addf %3, %7 : vector<128x256xf32>
    %c0_7 = arith.constant 0 : index
    %c0_8 = arith.constant 0 : index
    %9 = vector.load %arg6[%c0_7, %c0_8] : memref<128x256xf32, #tpu.memory_space<vmem>>, vector<128x256xf32>
    tpu.vector_store %arg6[%c0_7, %c0_8], %8 {strides = array<i32>} : memref<128x256xf32, #tpu.memory_space<vmem>>, vector<128x256xf32>,
    %c1_i32 = arith.constant 1 : i32
    %10 = arith.cmpi eq, %arg2, %c1_i32 : i32
    %11 = arith.extui %10 : i1 to i32
    %c0_i32_9 = arith.constant 0 : i32
    %12 = arith.cmpi ne, %11, %c0_i32_9 : i32
    scf.if %12 {
      %c0_10 = arith.constant 0 : index
      %c0_11 = arith.constant 0 : index
      %13 = vector.load %arg6[%c0_10, %c0_11] : memref<128x256xf32, #tpu.memory_space<vmem>>, vector<128x256xf32>
      %14 = arith.truncf %13 : vector<128x256xf32> to vector<128x256xbf16>
      %c0_12 = arith.constant 0 : index
      %c0_13 = arith.constant 0 : index
      %15 = vector.load %arg5[%c0_12, %c0_13] : memref<128x256xbf16, #tpu.memory_space<vmem>>, vector<128x256xbf16>
      tpu.vector_store %arg5[%c0_12, %c0_13], %14 {strides = array<i32>} : memref<128x256xbf16, #tpu.memory_space<vmem>>, vector<128x256xbf16>,
    } else {
    }
    return
  }
  func.func @transform_0(%arg0: i32, %arg1: i32, %arg2: i32) -> (i32, i32, i32) {
    %c0_i32 = arith.constant 0 : i32
    %c0_i32_0 = arith.constant 0 : i32
    return %arg2, %arg0, %c0_i32 : i32, i32, i32
  }
  func.func @transform_1(%arg0: i32, %arg1: i32, %arg2: i32) -> (i32, i32) {
    %c0_i32 = arith.constant 0 : i32
    return %arg2, %arg1 : i32, i32
  }
  func.func @transform_2(%arg0: i32, %arg1: i32, %arg2: i32) -> (i32, i32) {
    %c0_i32 = arith.constant 0 : i32
    return %arg0, %arg1 : i32, i32
  }
}

</mosaic_0001>

<bundles_post_ra>
// kernel: dao_mla_forward.6
= control target key start
LH: loop header
LB: loop body
LE: loop exit
PB: predicated region body
PF: predicated region fallthrough
CT: control target
= control target key end

     0   :  { %s1511_s9 = smov 0   ;;  %s1513_s10 = smov 0   ;;  %s1671_s0 = inlined_call_operand.vmem [shape: bf16[256,128], index: 0, kind: input, shape index: {}]   ;;  %s1672_s1 = inlined_call_operand.vmem [shape: bf16[128,256], index: 1, kind: input, shape index: {}]   ;;  %s1673_s2 = inlined_call_operand.vmem [shape: bf16[2,256,128], index: 2, kind: output, shape index: {}]  }
   0x1   :  { %s1515_s11 = smov 0   ;;  %s1517_s12 = smov 0  }
   0x2   :  { %s1519_s13 = smov 0  }
   0x3 LB: > { %s27_s14 = sadd.s32 1, %s1490_s12  ;;  %p75_p1 = scmp.ne.s32.totalorder %s1482_s10, %s1478_s9  ;;  %s1494_s13 = sphi %s1519_s13, %s12_s13   ;;  %s1490_s12 = sphi %s1517_s12, %s1677_s12   ;;  %s1486_s11 = sphi %s1515_s11, %s1676_s11   ;;  %s1482_s10 = sphi %s1513_s10, %s1675_s10   ;;  %s1478_s9 = sphi %s1511_s9, %s1674_s9  }
   0x4   : > { %p29_p0 = scmp.ge.s32.totalorder %s27_s14, 2  ;;  %p76_p2 = scmp.eq.s32.totalorder %s1494_s13, 0 }
   0x5   : > { %s68_s16 = sadd.s32 1, %s1482_s10  ;;  %p1111_p5 = scmp.ge.s32.totalorder %s1494_s13, 2 }
   0x6   : > { %s1679_s14 = smov (%p29_p0, %s27_s14), 0  ;;  %p77_p3 = por %p76_p2, %p75_p1 }
   0x7   : > { %s64_s15 = ssub.s32 %s1490_s12, %s1679_s14  ;;  %141 = sbr.rel (%p1111_p5) target bundleno = 26 (0x1a), region = 20 }
   0x8   : > { %p66_p4 = scmp.eq.s32.totalorder %s64_s15, 0 }
   0xa   : > { %s1546_s17 = scalar_select %p66_p4, %s1482_s10, %s68_s16  }
   0xc   : > { %144 = sbr.rel (!%p77_p3) target bundleno = 26 (0x1a), region = 24  ;;  %s146_s18 = sand.u32 (%p77_p3), 1, %s1482_s10  }
   0xd   : > { %s1113_s19 = sshll.u32 (%p77_p3), %s1490_s12, 2  ;;  %s1112_s20 = sshll.u32 (%p77_p3), %s146_s18, 6 }
   0xe   : > { %s1554_s23 = scalar_lea.vmem (%p77_p3), %s1672_s1, %s1113_s19  ;;  %s148_s24 = scalar_lea.vmem (%p77_p3), [#allocation3], %s1112_s20 }
   0xf   : > { %v170_v0 = vld [vmem:[%s1554_s23] sm:$0xf] (%p77_p3)  ;;  %v172_v1 = vld [vmem:[%s1554_s23 + $0x8] sm:$0xf] (%p77_p3)  ;;  %v174_v2 = vld [vmem:[%s1554_s23 + $0x10] sm:$0xf] (%p77_p3) }
  0x10   : > { %171 = vst [vmem:[%s148_s24] sm:$0xf] (%p77_p3), %v170_v0  ;;  %173 = vst [vmem:[%s148_s24 + $0x4] sm:$0xf] (%p77_p3), %v172_v1  ;;  %v176_v3 = vld [vmem:[%s1554_s23 + $0x18] sm:$0xf] (%p77_p3) }
  0x11   : > { %v178_v4 = vld [vmem:[%s1554_s23 + $0x20] sm:$0xf]  ;;  %175 = vst [vmem:[%s148_s24 + $0x8] sm:$0xf] %v174_v2  ;;  %177 = vst [vmem:[%s148_s24 + $0xc] sm:$0xf] %v176_v3 }
  0x12   : > { %179 = vst [vmem:[%s148_s24 + $0x10] sm:$0xf] %v178_v4  ;;  %v180_v5 = vld [vmem:[%s1554_s23 + $0x28] sm:$0xf]  ;;  %v182_v6 = vld [vmem:[%s1554_s23 + $0x30] sm:$0xf] }
  0x13   : > { %v184_v7 = vld [vmem:[%s1554_s23 + $0x38] sm:$0xf]  ;;  %181 = vst [vmem:[%s148_s24 + $0x14] sm:$0xf] %v180_v5  ;;  %183 = vst [vmem:[%s148_s24 + $0x18] sm:$0xf] %v182_v6 }
  0x14   : > { %185 = vst [vmem:[%s148_s24 + $0x1c] sm:$0xf] %v184_v7  ;;  %v186_v8 = vld [vmem:[%s1554_s23 + $0x40] sm:$0xf]  ;;  %v188_v9 = vld [vmem:[%s1554_s23 + $0x48] sm:$0xf] }
  0x15   : > { %v190_v10 = vld [vmem:[%s1554_s23 + $0x50] sm:$0xf]  ;;  %187 = vst [vmem:[%s148_s24 + $0x20] sm:$0xf] %v186_v8  ;;  %189 = vst [vmem:[%s148_s24 + $0x24] sm:$0xf] %v188_v9 }
  0x16   : > { %191 = vst [vmem:[%s148_s24 + $0x28] sm:$0xf] %v190_v10  ;;  %v192_v11 = vld [vmem:[%s1554_s23 + $0x58] sm:$0xf]  ;;  %v194_v12 = vld [vmem:[%s1554_s23 + $0x60] sm:$0xf] }
  0x17   : > { %v196_v13 = vld [vmem:[%s1554_s23 + $0x68] sm:$0xf]  ;;  %193 = vst [vmem:[%s148_s24 + $0x2c] sm:$0xf] %v192_v11  ;;  %195 = vst [vmem:[%s148_s24 + $0x30] sm:$0xf] %v194_v12 }
  0x18   : > { %197 = vst [vmem:[%s148_s24 + $0x34] sm:$0xf] %v196_v13  ;;  %v198_v14 = vld [vmem:[%s1554_s23 + $0x70] sm:$0xf]  ;;  %v200_v15 = vld [vmem:[%s1554_s23 + $0x78] sm:$0xf] }
  0x19   : > { %199 = vst [vmem:[%s148_s24 + $0x38] sm:$0xf] %v198_v14  ;;  %201 = vst [vmem:[%s148_s24 + $0x3c] sm:$0xf] %v200_v15 }
  0x1a PF: > { %p1114_p6 = scmp.ge.s32.totalorder %s1494_s13, 1  ;;  %p256_p7 = scmp.lt.s32.totalorder %s1494_s13, 3 }
  0x1c   : > { %p257_p8 = pnand %p1114_p6, %p256_p7 }
  0x1d   : > { %s263_s25 = sand.u32 (!%p257_p8), 1, %s1478_s9   ;;  %p307_p9 = scmp.lt.s32.totalorder (!%p257_p8), %s1486_s11, 1 }
  0x1e   : > { %260 = sbr.rel (%p257_p8) target bundleno = 295 (0x127), region = 65  ;;  %s1115_s28 = sshll.u32 (!%p257_p8), %s263_s25, 6 }
  0x1f   : > { %s1581_s3 = scalar_lea.vmem (!%p257_p8), [#allocation3], %s1115_s28 }
  0x23   : > { %v1440_v16 = vld [vmem:[%s1671_s0] sm:$0xff]   ;;  %v1432_v18 = vld [vmem:[%s1581_s3 + $0x38] sm:$0xff]   ;;  %v1433_v19 = vld [vmem:[%s1581_s3 + $0x30] sm:$0xff]   ;;  %s1681_s11 = smov (!%p307_p9, %s1486_s11), 1 }
  0x24   : > { %v1441_v17 = vld [vmem:[%s1671_s0 + $0x40] sm:$0xff]   ;;  %1344 = vmatprep.mubr.bf16.mxu0 %v1440_v16  ;;  %1328 = vmatprep.subr.bf16.mxu0 %v1432_v18  ;;  %v1434_v20 = vld [vmem:[%s1581_s3 + $0x28] sm:$0xff]   ;;  %v1436_v22 = vld [vmem:[%s1581_s3 + $0x18] sm:$0xff]   ;;  %s1176_s15 = sshll.u32 %s1681_s11, 7 }
  0x25   : > { %1360 = vmatprep.mubr.bf16.mxu1 %v1441_v17  ;;  %1376 = vmatprep.subr.bf16.mxu1 %v1432_v18  ;;  %v1435_v21 = vld [vmem:[%s1581_s3 + $0x20] sm:$0xff]   ;;  %v1437_v23 = vld [vmem:[%s1581_s3 + $0x10] sm:$0xff]   ;;  %v1438_v24 = vld [vmem:[%s1581_s3 + $0x8] sm:$0xff]   ;;  %s1638_s19 = scalar_lea.vmem %s1673_s2, %s1176_s15 }
  0x26   : > { %1329 = vmatpush3.bf16.msra.mxu0 %v1432_v18  ;;  %1384 = vmatpush3.bf16.msra.mxu1 %v1432_v18  ;;  %v1439_v25 = vld [vmem:[%s1581_s3] sm:$0xff]   ;;  %v1442_v26 = vld [vmem:[%s1671_s0 + $0x8] sm:$0xff]   ;;  %v1444_v28 = vld [vmem:[%s1671_s0 + $0x10] sm:$0xff]  }
  0x27   : > { %1330 = vmatprep.subr.bf16.mxu0 %v1433_v19  ;;  %1377 = vmatprep.subr.bf16.mxu1 %v1433_v19  ;;  %v1443_v27 = vld [vmem:[%s1671_s0 + $0x48] sm:$0xff]   ;;  %v1445_v29 = vld [vmem:[%s1671_s0 + $0x50] sm:$0xff]   ;;  %v1446_v30 = vld [vmem:[%s1671_s0 + $0x18] sm:$0xff]  }
  0x28   : > { %v1447_v31 = vld [vmem:[%s1671_s0 + $0x58] sm:$0xff]   ;;  %v1448_v32 = vld [vmem:[%s1671_s0 + $0x20] sm:$0xff]   ;;  %v1450_v34 = vld [vmem:[%s1671_s0 + $0x28] sm:$0xff]  }
  0x29   : > { %v1449_v33 = vld [vmem:[%s1671_s0 + $0x60] sm:$0xff]   ;;  %v1451_v35 = vld [vmem:[%s1671_s0 + $0x68] sm:$0xff]   ;;  %v1452_v36 = vld [vmem:[%s1671_s0 + $0x30] sm:$0xff]  }
  0x2a   : > { %1331 = vmatpush3.bf16.msra.mxu0 %v1433_v19  ;;  %1385 = vmatpush3.bf16.msra.mxu1 %v1433_v19  ;;  %v1453_v37 = vld [vmem:[%s1671_s0 + $0x70] sm:$0xff]   ;;  %v1454_v38 = vld [vmem:[%s1671_s0 + $0x38] sm:$0xff]  }
  0x2b   : > { %1332 = vmatprep.subr.bf16.mxu0 %v1434_v20  ;;  %1378 = vmatprep.subr.bf16.mxu1 %v1434_v20  ;;  %v1455_v39 = vld [vmem:[%s1671_s0 + $0x78] sm:$0xff]  }
  0x2e   : > { %1333 = vmatpush3.bf16.msra.mxu0 %v1434_v20  ;;  %1386 = vmatpush3.bf16.msra.mxu1 %v1434_v20 }
  0x2f   : > { %1334 = vmatprep.subr.bf16.mxu0 %v1435_v21  ;;  %1379 = vmatprep.subr.bf16.mxu1 %v1435_v21 }
  0x32   : > { %1335 = vmatpush3.bf16.msra.mxu0 %v1435_v21  ;;  %1387 = vmatpush3.bf16.msra.mxu1 %v1435_v21 }
  0x33   : > { %1336 = vmatprep.subr.bf16.mxu0 %v1436_v22  ;;  %1380 = vmatprep.subr.bf16.mxu1 %v1436_v22 }
  0x36   : > { %1337 = vmatpush3.bf16.msra.mxu0 %v1436_v22  ;;  %1388 = vmatpush3.bf16.msra.mxu1 %v1436_v22 }
  0x37   : > { %1338 = vmatprep.subr.bf16.mxu0 %v1437_v23  ;;  %1381 = vmatprep.subr.bf16.mxu1 %v1437_v23 }
  0x3a   : > { %1339 = vmatpush3.bf16.msra.mxu0 %v1437_v23  ;;  %1389 = vmatpush3.bf16.msra.mxu1 %v1437_v23 }
  0x3b   : > { %1340 = vmatprep.subr.bf16.mxu0 %v1438_v24  ;;  %1382 = vmatprep.subr.bf16.mxu1 %v1438_v24 }
  0x3e   : > { %1341 = vmatpush3.bf16.msra.mxu0 %v1438_v24  ;;  %1390 = vmatpush3.bf16.msra.mxu1 %v1438_v24 }
  0x3f   : > { %1342 = vmatprep.subr.bf16.mxu0 %v1439_v25  ;;  %1383 = vmatprep.subr.bf16.mxu1 %v1439_v25 }
  0x42   : > { %1343 = vmatpush3.bf16.msra.mxu0 %v1439_v25  ;;  %1391 = vmatpush3.bf16.msra.mxu1 %v1439_v25 }
  0x45   : > { %1345 = vmatmul.mubr.bf16.vlgmr.msra.gmra.mxu0 %v1442_v26  ;;  %1361 = vmatmul.mubr.bf16.vlgmr.msra.gmra.mxu1 %v1443_v27 }
  0x46   : > { %1348 = vmatprep.mubr.bf16.mxu0 %v1444_v28  ;;  %1364 = vmatprep.mubr.bf16.mxu1 %v1445_v29 }
  0x4d   : > { %1349 = vmatmul.mubr.bf16.gmra.mxu0 %v1446_v30  ;;  %1365 = vmatmul.mubr.bf16.gmra.mxu1 %v1447_v31 }
  0x4e   : > { %1352 = vmatprep.mubr.bf16.mxu0 %v1448_v32  ;;  %1368 = vmatprep.mubr.bf16.mxu1 %v1449_v33 }
  0x55   : > { %1353 = vmatmul.mubr.bf16.gmra.mxu0 %v1450_v34  ;;  %1369 = vmatmul.mubr.bf16.gmra.mxu1 %v1451_v35 }
  0x56   : > { %1356 = vmatprep.mubr.bf16.mxu0 %v1452_v36  ;;  %1372 = vmatprep.mubr.bf16.mxu1 %v1453_v37 }
  0x5d   : > { %1357 = vmatmul.mubr.bf16.gmra.mxu0 %v1454_v38  ;;  %1373 = vmatmul.mubr.bf16.gmra.mxu1 %v1455_v39 }
 0x105   : > { %v1346_v40 = vpop.f32.mrf.mxu0  ;;  %v1362_v41 = vpop.f32.mrf.mxu1 }
 0x107   : > { %v611_v42 = vpop.f32.mrf.mxu0  ;;  %v675_v43 = vpop.f32.mrf.mxu1 }
 0x109   : > { %v1347_v44 = vpop.f32.mrf.mxu0  ;;  %v1363_v45 = vpop.f32.mrf.mxu1 }
 0x10a   : > { %v1217_v46 = vpack.c.bf16 %v1347_v44, %v1346_v40  ;;  %v1257_v47 = vpack.c.bf16 %v1363_v45, %v1362_v41 }
 0x10b   : > { %v614_v48 = vpop.f32.mrf.mxu0  ;;  %v678_v49 = vpop.f32.mrf.mxu1 }
 0x10c   : > { %1289 = vst [vmem:[%s1638_s19 + $0x8] sm:$0xff] %v1217_v46   ;;  %1297 = vst [vmem:[%s1638_s19 + $0x48] sm:$0xff] %v1257_v47   ;;  %v1212_v50 = vpack.c.bf16 %v614_v48, %v611_v42  ;;  %v1252_v51 = vpack.c.bf16 %v678_v49, %v675_v43 }
 0x10d   : > { %v1350_v52 = vpop.f32.mrf.mxu0  ;;  %v1366_v53 = vpop.f32.mrf.mxu1 }
 0x10e   : > { %1213 = vst [vmem:[%s1638_s19] sm:$0xff] %v1212_v50   ;;  %1296 = vst [vmem:[%s1638_s19 + $0x40] sm:$0xff] %v1252_v51  }
 0x10f   : > { %v627_v54 = vpop.f32.mrf.mxu0  ;;  %v691_v55 = vpop.f32.mrf.mxu1 }
 0x111   : > { %v1351_v56 = vpop.f32.mrf.mxu0  ;;  %v1367_v57 = vpop.f32.mrf.mxu1 }
 0x112   : > { %v1227_v58 = vpack.c.bf16 %v1351_v56, %v1350_v52  ;;  %v1267_v59 = vpack.c.bf16 %v1367_v57, %v1366_v53 }
 0x113   : > { %v630_v60 = vpop.f32.mrf.mxu0  ;;  %v694_v61 = vpop.f32.mrf.mxu1 }
 0x114   : > { %1291 = vst [vmem:[%s1638_s19 + $0x18] sm:$0xff] %v1227_v58   ;;  %1299 = vst [vmem:[%s1638_s19 + $0x58] sm:$0xff] %v1267_v59   ;;  %v1222_v62 = vpack.c.bf16 %v630_v60, %v627_v54  ;;  %v1262_v63 = vpack.c.bf16 %v694_v61, %v691_v55 }
 0x115   : > { %v1354_v0 = vpop.f32.mrf.mxu0  ;;  %v1370_v1 = vpop.f32.mrf.mxu1 }
 0x116   : > { %1290 = vst [vmem:[%s1638_s19 + $0x10] sm:$0xff] %v1222_v62   ;;  %1298 = vst [vmem:[%s1638_s19 + $0x50] sm:$0xff] %v1262_v63  }
 0x117   : > { %v643_v2 = vpop.f32.mrf.mxu0  ;;  %v707_v3 = vpop.f32.mrf.mxu1 }
 0x119   : > { %v1355_v4 = vpop.f32.mrf.mxu0  ;;  %v1371_v5 = vpop.f32.mrf.mxu1 }
 0x11a   : > { %v1237_v6 = vpack.c.bf16 %v1355_v4, %v1354_v0  ;;  %v1277_v7 = vpack.c.bf16 %v1371_v5, %v1370_v1 }
 0x11b   : > { %v646_v8 = vpop.f32.mrf.mxu0  ;;  %v710_v9 = vpop.f32.mrf.mxu1 }
 0x11c   : > { %1293 = vst [vmem:[%s1638_s19 + $0x28] sm:$0xff] %v1237_v6   ;;  %1301 = vst [vmem:[%s1638_s19 + $0x68] sm:$0xff] %v1277_v7   ;;  %v1232_v10 = vpack.c.bf16 %v646_v8, %v643_v2  ;;  %v1272_v11 = vpack.c.bf16 %v710_v9, %v707_v3 }
 0x11d   : > { %v1358_v12 = vpop.f32.mrf.mxu0  ;;  %v1374_v13 = vpop.f32.mrf.mxu1 }
 0x11e   : > { %1292 = vst [vmem:[%s1638_s19 + $0x20] sm:$0xff] %v1232_v10   ;;  %1300 = vst [vmem:[%s1638_s19 + $0x60] sm:$0xff] %v1272_v11  }
 0x11f   : > { %v659_v14 = vpop.f32.mrf.mxu0  ;;  %v723_v15 = vpop.f32.mrf.mxu1 }
 0x121   : > { %v1359_v16 = vpop.f32.mrf.mxu0  ;;  %v1375_v17 = vpop.f32.mrf.mxu1 }
 0x122   : > { %v1247_v18 = vpack.c.bf16 %v1359_v16, %v1358_v12  ;;  %v1287_v19 = vpack.c.bf16 %v1375_v17, %v1374_v13 }
 0x123   : > { %v662_v20 = vpop.f32.mrf.mxu0  ;;  %v726_v21 = vpop.f32.mrf.mxu1 }
 0x124   : > { %1295 = vst [vmem:[%s1638_s19 + $0x38] sm:$0xff] %v1247_v18   ;;  %1303 = vst [vmem:[%s1638_s19 + $0x78] sm:$0xff] %v1287_v19   ;;  %v1242_v22 = vpack.c.bf16 %v662_v20, %v659_v14  ;;  %v1282_v23 = vpack.c.bf16 %v726_v21, %v723_v15 }
 0x126   : > { %1294 = vst [vmem:[%s1638_s19 + $0x30] sm:$0xff] %v1242_v22   ;;  %1302 = vst [vmem:[%s1638_s19 + $0x70] sm:$0xff] %v1282_v23  }
 0x127 PF: > { %s12_s13 = sadd.s32 1, %s1494_s13   ;;  %s1674_s9 = smov %s1482_s10 }
 0x128   : > { %p9_p10 = scmp.ge.s32.totalorder %s12_s13, 4   ;;  %s1675_s10 = smov %s1546_s17 }
 0x129   : > { %s1676_s11 = smov %s1490_s12  ;;  %s1677_s12 = smov %s1679_s14 }
 0x12a   :  { %11 = sbr.rel (!%p9_p10) target bundleno = 3 (0x3), region = 115 }

// kernel: dao_mla_forward.5
= control target key start
LH: loop header
LB: loop body
LE: loop exit
PB: predicated region body
PF: predicated region fallthrough
CT: control target
= control target key end

     0   :  { %7 = vsyncpa [#allocation4], 0  ;;  %s1593_s0 = inlined_call_operand.hbm [shape: bf16[256,256], index: 0, kind: input, shape index: {}]   ;;  %s1594_s1 = inlined_call_operand.hbm [shape: bf16[256,256], index: 1, kind: input, shape index: {}]   ;;  %s1595_s2 = inlined_call_operand.vmem [shape: bf16[256,256], index: 2, kind: output, shape index: {}]  }
   0x1   :  { %9 = vsyncpa [#allocation4 + $0x1], 0 }
   0x2   :  { %10 = vsyncpa [#allocation6], 0  ;;  %s1431_s9 = smov 0   ;;  %s1433_s10 = smov 0  }
   0x3   :  { %s1435_s11 = smov 0   ;;  %s1437_s12 = smov 0  }
   0x4   :  { %s1439_s13 = smov 0   ;;  %s1441_s14 = smov 0  }
   0x5 LB: > { %s1030_s15 = sadd.s32 4294967295, %s1410_s14   ;;  %p57_p0 = scmp.ne.s32.totalorder %s1394_s10, %s1390_s9  ;;  %s1410_s14 = sphi %s1441_s14, %s16_s14   ;;  %s1406_s13 = sphi %s1439_s13, %s1605_s13   ;;  %s1402_s12 = sphi %s1437_s12, %s1604_s12   ;;  %s1398_s11 = sphi %s1435_s11, %s1603_s11   ;;  %s1394_s10 = sphi %s1433_s10, %s1602_s10   ;;  %s1390_s9 = sphi %s1431_s9, %s1601_s9  }
   0x6   : > { %p1461_p1 = scmp.eq.s32.totalorder %s1030_s15, 0  ;;  %p1032_p2 = scmp.ge.s32.totalorder %s1410_s14, 1 }
   0x7   : > { %p124_p3 = scmp.lt.s32.totalorder %s1410_s14, 3  ;;  %s1412_s19 = smov [#allocation5]  }
   0x8   : > { %p1469_p4 = por %p1461_p1, %p57_p0  ;;  %s142_s20 = sshll.u32 %s1412_s19, 4  ;;  %s143_s20 = int_to_ptr.vmem [resolvable:$true] %s142_s20 }
   0x9   : > { %p1473_p5 = pnand %p1032_p2, %p124_p3  ;;  %s35_s22 = sadd.s32 1, %s1406_s13 }
   0xa   : > { %s1313_s23 = scalar_lea.vmem %s143_s20, 4096  ;;  %p1321_p12 = scmp.lt.s32.totalorder %s143_s20, %s143_s20 }
   0xb   : > { %p1168_p6 = pneg %p1473_p5  ;;  %p1314_p9 = scmp.ne.s32.totalorder %s143_s20, %s1313_s23 }
   0xc   : > { %p1322_p13 = scmp.lt.s32.totalorder %s1313_s23, %s1313_s23 }
   0xd   : > { %p1481_p7 = pnand %p1168_p6, %p1461_p1 }
   0xe   : > { %p1323_p0 = por %p1322_p13, %p1321_p12 }
   0xf   : > { %p1304_p8 = pneg %p1481_p7 }
  0x11   : > { %p1316_p10 = pnand %p1314_p9, %p1304_p8 }
  0x13   : > { %p1317_p11 = pneg %p1316_p10 }
  0x15   : > { %p1324_p2 = pnand %p1323_p0, %p1317_p11 }
  0x17   : > { %1327 = shalt.err (!%p1324_p2)
}
  0x18   : > { %s1413_s24 = smov 128   ;;  %s1414_s25 = smov 8  }
  0x19   : > { %1171 = dma.hbm_to_vmem [thread:$0]  (!%p1481_p7), %s1594_s1, 4096, %s143_s20, [#allocation6], %s1413_s24, %s1413_s24, %s1414_s25  }
  0x1a   : > { %p37_p3 = scmp.ge.s32.totalorder %s35_s22, 2  ;;  %s44_s28 = sadd.s32 1, %s1398_s11 }
  0x1b   : > { %p51_p6 = scmp.ne.s32.totalorder %s1398_s11, %s1394_s10  ;;  %p52_p8 = scmp.eq.s32.totalorder %s1410_s14, 0 }
  0x1c   : > { %s1607_s22 = smov (%p37_p3, %s35_s22), 0  ;;  %p1177_p10 = scmp.lt.s32.totalorder %s1410_s14, 2 }
  0x1d   : > { %p53_p9 = por %p52_p8, %p51_p6  ;;  %s39_s29 = ssub.s32 %s1406_s13, %s1607_s22 }
  0x1e   : > { %s156_s30 = sand.u32 1, %s1398_s11   ;;  %p42_p11 = scmp.eq.s32.totalorder %s39_s29, 0 }
  0x1f   : > { %s1035_s3 = sshll.u32 %s156_s30, 7  ;;  %s1112_s4 = sshll.u32 %s1406_s13, 11 }
  0x20   : > { %s1508_s5 = scalar_select %p42_p11, %s1398_s11, %s44_s28  }
  0x21   : > { %s169_s8 = scalar_lea.hbm %s1593_s0, %s1112_s4  ;;  %s160_s9 = scalar_lea.vmem [#allocation3], %s1035_s3 }
  0x22   : > { %s170_s15 = sshll.u32 %s160_s9, 4  ;;  %p1513_p7 = pnand %p1177_p10, %p53_p9  ;;  %s171_s15 = int_to_ptr.vmem [resolvable:$true] %s170_s15 }
  0x23   : > { %s157_s20 = scalar_lea.sflag [#allocation4], %s156_s30  ;;  %s1341_s21 = scalar_lea.vmem %s171_s15, 2048 }
  0x24   : > { %p1330_p12 = pneg %p1513_p7  ;;  %p1342_p13 = scmp.ne.s32.totalorder %s171_s15, %s1341_s21 }
  0x25   : > { %s1415_s23 = smov [#allocation3]  }
  0x26   : > { %p1344_p0 = pnand %p1342_p13, %p1330_p12  ;;  %s1346_s26 = sshll.u32 %s1415_s23, 4  ;;  %s1347_s26 = int_to_ptr.vmem [resolvable:$false] %s1346_s26 }
  0x27   : > { %s1348_s27 = scalar_lea.vmem %s1347_s26, 4096  ;;  %p1349_p3 = scmp.lt.s32.totalorder %s171_s15, %s1347_s26 }
  0x28   : > { %p1345_p2 = pneg %p1344_p0  ;;  %p1350_p6 = scmp.lt.s32.totalorder %s1348_s27, %s1341_s21 }
  0x2a   : > { %p1351_p8 = por %p1350_p6, %p1349_p3 }
  0x2c   : > { %p1352_p9 = pnand %p1351_p8, %p1345_p2 }
  0x2e   : > { %1355 = shalt.err (!%p1352_p9)
}
  0x2f   : > { %1175 = dma.hbm_to_vmem [thread:$0]  (!%p1513_p7), %s169_s8, 2048, %s171_s15, %s157_s20, %s1413_s24, %s1413_s24, %s1414_s25  }
  0x30   : > { %182 = sbr.rel (%p1473_p5) target bundleno = 347 (0x15b), region = 28  ;;  %s184_s28 = sand.u32 (!%p1473_p5), 1, %s1394_s10  }
  0x31   : > { %s1040_s29 = sshll.u32 (!%p1473_p5), %s184_s28, 7  ;;  %s185_s30 = scalar_lea.sflag (!%p1473_p5), [#allocation4], %s184_s28 }
  0x32   : > { %s1527_s3 = scalar_lea.vmem (!%p1473_p5), [#allocation3], %s1040_s29 }
  0x35   : > { %1381 = dma.done.wait (%p1469_p4), %s185_s30, 2048  }
  0x36   : > { %1383 = vsyncadd (%p1469_p4), %s185_s30, 4294965248 }
  0x37   : > { %1385 = dma.done.wait (%p1461_p1), [#allocation6], 4096  }
  0x38   : > { %1387 = vsyncadd (%p1461_p1), [#allocation6], 4294963200  ;;  %v1230_v0 = vld [vmem:[#allocation5 + $0x74] ss:$8 sps:$4 sm:$0xff]   ;;  %v1232_v1 = vld [vmem:[#allocation5 + $0x70] ss:$8 sps:$4 sm:$0xff]  }
  0x39   : > { %590 = vmatprep.subr.bf16.mxu0 %v1230_v0  ;;  %1130 = vmatprep.subr.bf16.mxu1 %v1230_v0  ;;  %v1233_v2 = vld [vmem:[#allocation5 + $0x64] ss:$8 sps:$4 sm:$0xff]   ;;  %v1235_v3 = vld [vmem:[#allocation5 + $0x60] ss:$8 sps:$4 sm:$0xff]   ;;  %v1236_v4 = vld [vmem:[#allocation5 + $0x54] ss:$8 sps:$4 sm:$0xff]  }
  0x3a   : > { %591 = vmatpush1.bf16.msra.mxu0 %v1232_v1  ;;  %1146 = vmatpush1.bf16.msra.mxu1 %v1232_v1  ;;  %v1238_v5 = vld [vmem:[#allocation5 + $0x50] ss:$8 sps:$4 sm:$0xff]   ;;  %v1239_v6 = vld [vmem:[#allocation5 + $0x44] ss:$8 sps:$4 sm:$0xff]   ;;  %v1241_v7 = vld [vmem:[#allocation5 + $0x40] ss:$8 sps:$4 sm:$0xff]  }
  0x3b   : > { %592 = vmatprep.subr.bf16.mxu0 %v1233_v2  ;;  %1131 = vmatprep.subr.bf16.mxu1 %v1233_v2  ;;  %v1242_v8 = vld [vmem:[#allocation5 + $0x34] ss:$8 sps:$4 sm:$0xff]   ;;  %v1244_v9 = vld [vmem:[#allocation5 + $0x30] ss:$8 sps:$4 sm:$0xff]   ;;  %v1245_v10 = vld [vmem:[#allocation5 + $0x24] ss:$8 sps:$4 sm:$0xff]  }
  0x3c   : > { %v1247_v11 = vld [vmem:[#allocation5 + $0x20] ss:$8 sps:$4 sm:$0xff]   ;;  %v1248_v12 = vld [vmem:[#allocation5 + $0x14] ss:$8 sps:$4 sm:$0xff]   ;;  %v1280_v13 = vld [vmem:[%s1527_s3 + $0x4] ss:$8 sps:$4 sm:$0xff]  }
  0x3d   : > { %v1250_v14 = vld [vmem:[#allocation5 + $0x10] ss:$8 sps:$4 sm:$0xff]   ;;  %v1283_v15 = vld [vmem:[%s1527_s3 + $0x44] ss:$8 sps:$4 sm:$0xff]   ;;  %622 = vmatprep.mubr.bf16.mxu0 %v1280_v13  ;;  %v1253_v17 = vld [vmem:[#allocation5] ss:$8 sps:$4 sm:$0xff]  }
  0x3e   : > { %593 = vmatpush1.bf16.msra.mxu0 %v1235_v3  ;;  %1147 = vmatpush1.bf16.msra.mxu1 %v1235_v3  ;;  %v1251_v16 = vld [vmem:[#allocation5 + $0x4] ss:$8 sps:$4 sm:$0xff]   ;;  %v1254_v18 = vld [vmem:[#allocation5 + $0xf4] ss:$8 sps:$4 sm:$0xff]   ;;  %v1256_v19 = vld [vmem:[#allocation5 + $0xf0] ss:$8 sps:$4 sm:$0xff]  }
  0x3f   : > { %594 = vmatprep.subr.bf16.mxu0 %v1236_v4  ;;  %1132 = vmatprep.subr.bf16.mxu1 %v1236_v4  ;;  %v1257_v20 = vld [vmem:[#allocation5 + $0xe4] ss:$8 sps:$4 sm:$0xff]   ;;  %v1259_v21 = vld [vmem:[#allocation5 + $0xe0] ss:$8 sps:$4 sm:$0xff]   ;;  %v1260_v22 = vld [vmem:[#allocation5 + $0xd4] ss:$8 sps:$4 sm:$0xff]  }
  0x40   : > { %662 = vmatprep.mubr.bf16.mxu1 %v1283_v15  ;;  %v1262_v23 = vld [vmem:[#allocation5 + $0xd0] ss:$8 sps:$4 sm:$0xff]   ;;  %v1263_v24 = vld [vmem:[#allocation5 + $0xc4] ss:$8 sps:$4 sm:$0xff]   ;;  %v1265_v25 = vld [vmem:[#allocation5 + $0xc0] ss:$8 sps:$4 sm:$0xff]  }
  0x41   : > { %v1266_v26 = vld [vmem:[#allocation5 + $0xb4] ss:$8 sps:$4 sm:$0xff]   ;;  %v1268_v27 = vld [vmem:[#allocation5 + $0xb0] ss:$8 sps:$4 sm:$0xff]   ;;  %v1269_v28 = vld [vmem:[#allocation5 + $0xa4] ss:$8 sps:$4 sm:$0xff]  }
  0x42   : > { %595 = vmatpush1.bf16.msra.mxu0 %v1238_v5  ;;  %1148 = vmatpush1.bf16.msra.mxu1 %v1238_v5  ;;  %v1271_v29 = vld [vmem:[#allocation5 + $0xa0] ss:$8 sps:$4 sm:$0xff]   ;;  %v1272_v30 = vld [vmem:[#allocation5 + $0x94] ss:$8 sps:$4 sm:$0xff]   ;;  %v1274_v31 = vld [vmem:[#allocation5 + $0x90] ss:$8 sps:$4 sm:$0xff]  }
  0x43   : > { %596 = vmatprep.subr.bf16.mxu0 %v1239_v6  ;;  %1133 = vmatprep.subr.bf16.mxu1 %v1239_v6  ;;  %v1275_v32 = vld [vmem:[#allocation5 + $0x84] ss:$8 sps:$4 sm:$0xff]   ;;  %v1277_v33 = vld [vmem:[#allocation5 + $0x80] ss:$8 sps:$4 sm:$0xff]   ;;  %v1284_v36 = vld [vmem:[%s1527_s3 + $0x14] ss:$8 sps:$4 sm:$0xff]  }
  0x44   : > { %v1278_v34 = vld [vmem:[%s1527_s3] ss:$8 sps:$4 sm:$0xff]   ;;  %v1286_v37 = vld [vmem:[%s1527_s3 + $0x54] ss:$8 sps:$4 sm:$0xff]   ;;  %v1288_v38 = vld [vmem:[%s1527_s3 + $0x10] ss:$8 sps:$4 sm:$0xff]  }
  0x45   : > { %v1281_v35 = vld [vmem:[%s1527_s3 + $0x40] ss:$8 sps:$4 sm:$0xff]   ;;  %v1289_v39 = vld [vmem:[%s1527_s3 + $0x50] ss:$8 sps:$4 sm:$0xff]   ;;  %v1290_v40 = vld [vmem:[%s1527_s3 + $0x24] ss:$8 sps:$4 sm:$0xff]  }
  0x46   : > { %597 = vmatpush1.bf16.msra.mxu0 %v1241_v7  ;;  %1149 = vmatpush1.bf16.msra.mxu1 %v1241_v7  ;;  %v1292_v41 = vld [vmem:[%s1527_s3 + $0x64] ss:$8 sps:$4 sm:$0xff]   ;;  %v1294_v42 = vld [vmem:[%s1527_s3 + $0x20] ss:$8 sps:$4 sm:$0xff]   ;;  %v1296_v44 = vld [vmem:[%s1527_s3 + $0x34] ss:$8 sps:$4 sm:$0xff]  }
  0x47   : > { %598 = vmatprep.subr.bf16.mxu0 %v1242_v8  ;;  %1134 = vmatprep.subr.bf16.mxu1 %v1242_v8  ;;  %v1295_v43 = vld [vmem:[%s1527_s3 + $0x60] ss:$8 sps:$4 sm:$0xff]   ;;  %v1298_v45 = vld [vmem:[%s1527_s3 + $0x74] ss:$8 sps:$4 sm:$0xff]   ;;  %v1300_v46 = vld [vmem:[%s1527_s3 + $0x30] ss:$8 sps:$4 sm:$0xff]  }
  0x48   : > { %v1301_v47 = vld [vmem:[%s1527_s3 + $0x70] ss:$8 sps:$4 sm:$0xff]   ;;  %s1042_s16 = sshll.u32 %s1402_s12, 4 }
  0x49   : > { %p224_p1 = scmp.lt.s32.totalorder %s1042_s16, 31 }
  0x4a   : > { %599 = vmatpush1.bf16.msra.mxu0 %v1244_v9  ;;  %1150 = vmatpush1.bf16.msra.mxu1 %v1244_v9 }
  0x4b   : > { %600 = vmatprep.subr.bf16.mxu0 %v1245_v10  ;;  %1135 = vmatprep.subr.bf16.mxu1 %v1245_v10  ;;  %s1609_s16 = smov (!%p224_p1, %s1042_s16), 31 }
  0x4c   : > { %s1113_s17 = sshll.u32 %s1609_s16, 3 }
  0x4d   : > { %s1557_s25 = scalar_lea.vmem %s1595_s2, %s1113_s17 }
  0x4e   : > { %601 = vmatpush1.bf16.msra.mxu0 %v1247_v11  ;;  %1151 = vmatpush1.bf16.msra.mxu1 %v1247_v11 }
  0x4f   : > { %602 = vmatprep.subr.bf16.mxu0 %v1248_v12  ;;  %1136 = vmatprep.subr.bf16.mxu1 %v1248_v12 }
  0x52   : > { %603 = vmatpush1.bf16.msra.mxu0 %v1250_v14  ;;  %1152 = vmatpush1.bf16.msra.mxu1 %v1250_v14 }
  0x53   : > { %604 = vmatprep.subr.bf16.mxu0 %v1251_v16  ;;  %1137 = vmatprep.subr.bf16.mxu1 %v1251_v16 }
  0x56   : > { %605 = vmatpush1.bf16.msra.mxu0 %v1253_v17  ;;  %1153 = vmatpush1.bf16.msra.mxu1 %v1253_v17 }
  0x57   : > { %606 = vmatprep.subr.bf16.mxu0 %v1254_v18  ;;  %1138 = vmatprep.subr.bf16.mxu1 %v1254_v18 }
  0x5a   : > { %607 = vmatpush2.bf16.msra.mxu0 %v1256_v19  ;;  %1154 = vmatpush2.bf16.msra.mxu1 %v1256_v19 }
  0x5b   : > { %608 = vmatprep.subr.bf16.mxu0 %v1257_v20  ;;  %1139 = vmatprep.subr.bf16.mxu1 %v1257_v20 }
  0x5e   : > { %609 = vmatpush2.bf16.msra.mxu0 %v1259_v21  ;;  %1155 = vmatpush2.bf16.msra.mxu1 %v1259_v21 }
  0x5f   : > { %610 = vmatprep.subr.bf16.mxu0 %v1260_v22  ;;  %1140 = vmatprep.subr.bf16.mxu1 %v1260_v22 }
  0x62   : > { %611 = vmatpush2.bf16.msra.mxu0 %v1262_v23  ;;  %1156 = vmatpush2.bf16.msra.mxu1 %v1262_v23 }
  0x63   : > { %612 = vmatprep.subr.bf16.mxu0 %v1263_v24  ;;  %1141 = vmatprep.subr.bf16.mxu1 %v1263_v24 }
  0x66   : > { %613 = vmatpush2.bf16.msra.mxu0 %v1265_v25  ;;  %1157 = vmatpush2.bf16.msra.mxu1 %v1265_v25 }
  0x67   : > { %614 = vmatprep.subr.bf16.mxu0 %v1266_v26  ;;  %1142 = vmatprep.subr.bf16.mxu1 %v1266_v26 }
  0x6a   : > { %615 = vmatpush2.bf16.msra.mxu0 %v1268_v27  ;;  %1158 = vmatpush2.bf16.msra.mxu1 %v1268_v27 }
  0x6b   : > { %616 = vmatprep.subr.bf16.mxu0 %v1269_v28  ;;  %1143 = vmatprep.subr.bf16.mxu1 %v1269_v28 }
  0x6e   : > { %617 = vmatpush2.bf16.msra.mxu0 %v1271_v29  ;;  %1159 = vmatpush2.bf16.msra.mxu1 %v1271_v29 }
  0x6f   : > { %618 = vmatprep.subr.bf16.mxu0 %v1272_v30  ;;  %1144 = vmatprep.subr.bf16.mxu1 %v1272_v30 }
  0x72   : > { %619 = vmatpush2.bf16.msra.mxu0 %v1274_v31  ;;  %1160 = vmatpush2.bf16.msra.mxu1 %v1274_v31 }
  0x73   : > { %620 = vmatprep.subr.bf16.mxu0 %v1275_v32  ;;  %1145 = vmatprep.subr.bf16.mxu1 %v1275_v32 }
  0x76   : > { %621 = vmatpush2.bf16.msra.mxu0 %v1277_v33  ;;  %1161 = vmatpush2.bf16.msra.mxu1 %v1277_v33 }
  0x79   : > { %623 = vmatmul.mubr.bf16.vlgmr.msra.gmra.mxu0 %v1278_v34  ;;  %663 = vmatmul.mubr.bf16.vlgmr.msra.gmra.mxu1 %v1281_v35 }
  0x7a   : > { %632 = vmatprep.mubr.bf16.mxu0 %v1284_v36  ;;  %672 = vmatprep.mubr.bf16.mxu1 %v1286_v37 }
  0x81   : > { %633 = vmatmul.mubr.bf16.gmra.mxu0 %v1288_v38  ;;  %673 = vmatmul.mubr.bf16.gmra.mxu1 %v1289_v39 }
  0x82   : > { %642 = vmatprep.mubr.bf16.mxu0 %v1290_v40  ;;  %682 = vmatprep.mubr.bf16.mxu1 %v1292_v41 }
  0x89   : > { %643 = vmatmul.mubr.bf16.gmra.mxu0 %v1294_v42  ;;  %683 = vmatmul.mubr.bf16.gmra.mxu1 %v1295_v43 }
  0x8a   : > { %652 = vmatprep.mubr.bf16.mxu0 %v1296_v44  ;;  %692 = vmatprep.mubr.bf16.mxu1 %v1298_v45 }
  0x91   : > { %653 = vmatmul.mubr.bf16.gmra.mxu0 %v1300_v46  ;;  %693 = vmatmul.mubr.bf16.gmra.mxu1 %v1301_v47 }
 0x139   : > { %v624_v48 = vpop.f32.mrf.mxu0  ;;  %v664_v49 = vpop.f32.mrf.mxu1 }
 0x13b   : > { %v626_v50 = vpop.f32.mrf.mxu0  ;;  %v666_v51 = vpop.f32.mrf.mxu1 }
 0x13c   : > { %v1114_v52 = vpack.c.bf16 %v626_v50, %v624_v48  ;;  %v1122_v53 = vpack.c.bf16 %v666_v51, %v664_v49 }
 0x13d   : > { %v628_v54 = vpop.f32.mrf.mxu0  ;;  %v668_v55 = vpop.f32.mrf.mxu1 }
 0x13e   : > { %898 = vst [vmem:[%s1557_s25] sm:$0xff] %v1114_v52  ;;  %906 = vst [vmem:[%s1557_s25 + $0x40] sm:$0xff] %v1122_v53 }
 0x13f   : > { %v630_v56 = vpop.f32.mrf.mxu0  ;;  %v670_v57 = vpop.f32.mrf.mxu1 }
 0x140   : > { %v1115_v58 = vpack.c.bf16 %v630_v56, %v628_v54  ;;  %v1123_v59 = vpack.c.bf16 %v670_v57, %v668_v55 }
 0x141   : > { %v634_v60 = vpop.f32.mrf.mxu0  ;;  %v674_v61 = vpop.f32.mrf.mxu1 }
 0x142   : > { %899 = vst [vmem:[%s1557_s25 + $0x8] sm:$0xff] %v1115_v58  ;;  %907 = vst [vmem:[%s1557_s25 + $0x48] sm:$0xff] %v1123_v59 }
 0x143   : > { %v636_v62 = vpop.f32.mrf.mxu0  ;;  %v676_v63 = vpop.f32.mrf.mxu1 }
 0x144   : > { %v1116_v0 = vpack.c.bf16 %v636_v62, %v634_v60  ;;  %v1124_v1 = vpack.c.bf16 %v676_v63, %v674_v61 }
 0x145   : > { %v638_v2 = vpop.f32.mrf.mxu0  ;;  %v678_v3 = vpop.f32.mrf.mxu1 }
 0x146   : > { %900 = vst [vmem:[%s1557_s25 + $0x10] sm:$0xff] %v1116_v0  ;;  %908 = vst [vmem:[%s1557_s25 + $0x50] sm:$0xff] %v1124_v1 }
 0x147   : > { %v640_v4 = vpop.f32.mrf.mxu0  ;;  %v680_v5 = vpop.f32.mrf.mxu1 }
 0x148   : > { %v1117_v6 = vpack.c.bf16 %v640_v4, %v638_v2  ;;  %v1125_v7 = vpack.c.bf16 %v680_v5, %v678_v3 }
 0x149   : > { %v644_v8 = vpop.f32.mrf.mxu0  ;;  %v684_v9 = vpop.f32.mrf.mxu1 }
 0x14a   : > { %901 = vst [vmem:[%s1557_s25 + $0x18] sm:$0xff] %v1117_v6  ;;  %909 = vst [vmem:[%s1557_s25 + $0x58] sm:$0xff] %v1125_v7 }
 0x14b   : > { %v646_v10 = vpop.f32.mrf.mxu0  ;;  %v686_v11 = vpop.f32.mrf.mxu1 }
 0x14c   : > { %v1118_v12 = vpack.c.bf16 %v646_v10, %v644_v8  ;;  %v1126_v13 = vpack.c.bf16 %v686_v11, %v684_v9 }
 0x14d   : > { %v648_v14 = vpop.f32.mrf.mxu0  ;;  %v688_v15 = vpop.f32.mrf.mxu1 }
 0x14e   : > { %902 = vst [vmem:[%s1557_s25 + $0x20] sm:$0xff] %v1118_v12  ;;  %910 = vst [vmem:[%s1557_s25 + $0x60] sm:$0xff] %v1126_v13 }
 0x14f   : > { %v650_v16 = vpop.f32.mrf.mxu0  ;;  %v690_v17 = vpop.f32.mrf.mxu1 }
 0x150   : > { %v1119_v18 = vpack.c.bf16 %v650_v16, %v648_v14  ;;  %v1127_v19 = vpack.c.bf16 %v690_v17, %v688_v15 }
 0x151   : > { %v654_v20 = vpop.f32.mrf.mxu0  ;;  %v694_v21 = vpop.f32.mrf.mxu1 }
 0x152   : > { %903 = vst [vmem:[%s1557_s25 + $0x28] sm:$0xff] %v1119_v18  ;;  %911 = vst [vmem:[%s1557_s25 + $0x68] sm:$0xff] %v1127_v19 }
 0x153   : > { %v656_v22 = vpop.f32.mrf.mxu0  ;;  %v696_v23 = vpop.f32.mrf.mxu1 }
 0x154   : > { %v1120_v24 = vpack.c.bf16 %v656_v22, %v654_v20  ;;  %v1128_v25 = vpack.c.bf16 %v696_v23, %v694_v21 }
 0x155   : > { %v658_v26 = vpop.f32.mrf.mxu0  ;;  %v698_v27 = vpop.f32.mrf.mxu1 }
 0x156   : > { %904 = vst [vmem:[%s1557_s25 + $0x30] sm:$0xff] %v1120_v24  ;;  %912 = vst [vmem:[%s1557_s25 + $0x70] sm:$0xff] %v1128_v25 }
 0x157   : > { %v660_v28 = vpop.f32.mrf.mxu0  ;;  %v700_v29 = vpop.f32.mrf.mxu1 }
 0x158   : > { %v1121_v30 = vpack.c.bf16 %v660_v28, %v658_v26  ;;  %v1129_v31 = vpack.c.bf16 %v700_v29, %v698_v27 }
 0x15a   : > { %905 = vst [vmem:[%s1557_s25 + $0x38] sm:$0xff] %v1121_v30  ;;  %913 = vst [vmem:[%s1557_s25 + $0x78] sm:$0xff] %v1129_v31 }
 0x15b PF: > { %s16_s14 = sadd.s32 1, %s1410_s14   ;;  %s1601_s9 = smov %s1394_s10 }
 0x15c   : > { %p13_p4 = scmp.ge.s32.totalorder %s16_s14, 4   ;;  %s1602_s10 = smov %s1398_s11 }
 0x15d   : > { %s1603_s11 = smov %s1508_s5  ;;  %s1604_s12 = smov %s1406_s13 }
 0x15e   : > { %s1605_s13 = smov %s1607_s22  ;;  %15 = sbr.rel (!%p13_p4) target bundleno = 5 (0x5), region = 81 }
 0x163   :  { %947 = vsyncpa [#allocation4], 1 }
 0x164   :  { %949 = vsyncpa [#allocation4 + $0x1], 1 }
 0x165   :  { %950 = vsyncpa [#allocation6], 1 }

// kernel: dao_mla_forward.7
= control target key start
LH: loop header
LB: loop body
LE: loop exit
PB: predicated region body
PF: predicated region fallthrough
CT: control target
= control target key end

     0   :  { %s1511_s9 = smov 0   ;;  %s1513_s10 = smov 0   ;;  %s1671_s0 = inlined_call_operand.vmem [shape: bf16[256,128], index: 0, kind: input, shape index: {}]   ;;  %s1672_s1 = inlined_call_operand.vmem [shape: bf16[128,512], index: 1, kind: input, shape index: {}]   ;;  %s1673_s2 = inlined_call_operand.vmem [shape: bf16[4,256,128], index: 2, kind: output, shape index: {}]  }
   0x1   :  { %s1515_s11 = smov 0   ;;  %s1517_s12 = smov 0  }
   0x2   :  { %s1519_s13 = smov 0  }
   0x3 LB: > { %s27_s14 = sadd.s32 1, %s1490_s12  ;;  %p75_p1 = scmp.ne.s32.totalorder %s1482_s10, %s1478_s9  ;;  %s1494_s13 = sphi %s1519_s13, %s12_s13   ;;  %s1490_s12 = sphi %s1517_s12, %s1677_s12   ;;  %s1486_s11 = sphi %s1515_s11, %s1676_s11   ;;  %s1482_s10 = sphi %s1513_s10, %s1675_s10   ;;  %s1478_s9 = sphi %s1511_s9, %s1674_s9  }
   0x4   : > { %p29_p0 = scmp.ge.s32.totalorder %s27_s14, 4  ;;  %p76_p2 = scmp.eq.s32.totalorder %s1494_s13, 0 }
   0x5   : > { %s68_s16 = sadd.s32 1, %s1482_s10  ;;  %p1111_p5 = scmp.ge.s32.totalorder %s1494_s13, 4 }
   0x6   : > { %s1679_s14 = smov (%p29_p0, %s27_s14), 0  ;;  %p77_p3 = por %p76_p2, %p75_p1 }
   0x7   : > { %s64_s15 = ssub.s32 %s1490_s12, %s1679_s14  ;;  %141 = sbr.rel (%p1111_p5) target bundleno = 27 (0x1b), region = 20 }
   0x8   : > { %p66_p4 = scmp.eq.s32.totalorder %s64_s15, 0 }
   0xa   : > { %s1546_s17 = scalar_select %p66_p4, %s1482_s10, %s68_s16  }
   0xc   : > { %144 = sbr.rel (!%p77_p3) target bundleno = 27 (0x1b), region = 24  ;;  %s146_s18 = sand.u32 (%p77_p3), 1, %s1482_s10  }
   0xd   : > { %s1113_s19 = sshll.u32 (%p77_p3), %s1490_s12, 2  ;;  %s1112_s20 = sshll.u32 (%p77_p3), %s146_s18, 6 }
   0xe   : > { %s1554_s23 = scalar_lea.vmem (%p77_p3), %s1672_s1, %s1113_s19  ;;  %s148_s24 = scalar_lea.vmem (%p77_p3), [#allocation3], %s1112_s20 }
   0xf   : > { %v170_v0 = vld [vmem:[%s1554_s23] sm:$0xf] (%p77_p3)  ;;  %v172_v1 = vld [vmem:[%s1554_s23 + $0x10] sm:$0xf] (%p77_p3) }
  0x10   : > { %171 = vst [vmem:[%s148_s24] sm:$0xf] (%p77_p3), %v170_v0  ;;  %173 = vst [vmem:[%s148_s24 + $0x4] sm:$0xf] (%p77_p3), %v172_v1  ;;  %v174_v2 = vld [vmem:[%s1554_s23 + $0x20] sm:$0xf] (%p77_p3) }
  0x11   : > { %v176_v3 = vld [vmem:[%s1554_s23 + $0x30] sm:$0xf]  ;;  %v178_v4 = vld [vmem:[%s1554_s23 + $0x40] sm:$0xf]  ;;  %175 = vst [vmem:[%s148_s24 + $0x8] sm:$0xf] %v174_v2 }
  0x12   : > { %177 = vst [vmem:[%s148_s24 + $0xc] sm:$0xf] %v176_v3  ;;  %179 = vst [vmem:[%s148_s24 + $0x10] sm:$0xf] %v178_v4  ;;  %v180_v5 = vld [vmem:[%s1554_s23 + $0x50] sm:$0xf] }
  0x13   : > { %v182_v6 = vld [vmem:[%s1554_s23 + $0x60] sm:$0xf]  ;;  %v184_v7 = vld [vmem:[%s1554_s23 + $0x70] sm:$0xf]  ;;  %181 = vst [vmem:[%s148_s24 + $0x14] sm:$0xf] %v180_v5 }
  0x14   : > { %183 = vst [vmem:[%s148_s24 + $0x18] sm:$0xf] %v182_v6  ;;  %185 = vst [vmem:[%s148_s24 + $0x1c] sm:$0xf] %v184_v7  ;;  %v186_v8 = vld [vmem:[%s1554_s23 + $0x80] sm:$0xf] }
  0x15   : > { %v188_v9 = vld [vmem:[%s1554_s23 + $0x90] sm:$0xf]  ;;  %v190_v10 = vld [vmem:[%s1554_s23 + $0xa0] sm:$0xf]  ;;  %187 = vst [vmem:[%s148_s24 + $0x20] sm:$0xf] %v186_v8 }
  0x16   : > { %189 = vst [vmem:[%s148_s24 + $0x24] sm:$0xf] %v188_v9  ;;  %191 = vst [vmem:[%s148_s24 + $0x28] sm:$0xf] %v190_v10  ;;  %v192_v11 = vld [vmem:[%s1554_s23 + $0xb0] sm:$0xf] }
  0x17   : > { %v194_v12 = vld [vmem:[%s1554_s23 + $0xc0] sm:$0xf]  ;;  %v196_v13 = vld [vmem:[%s1554_s23 + $0xd0] sm:$0xf]  ;;  %193 = vst [vmem:[%s148_s24 + $0x2c] sm:$0xf] %v192_v11 }
  0x18   : > { %195 = vst [vmem:[%s148_s24 + $0x30] sm:$0xf] %v194_v12  ;;  %197 = vst [vmem:[%s148_s24 + $0x34] sm:$0xf] %v196_v13  ;;  %v198_v14 = vld [vmem:[%s1554_s23 + $0xe0] sm:$0xf] }
  0x19   : > { %v200_v15 = vld [vmem:[%s1554_s23 + $0xf0] sm:$0xf]  ;;  %199 = vst [vmem:[%s148_s24 + $0x38] sm:$0xf] %v198_v14 }
  0x1a   : > { %201 = vst [vmem:[%s148_s24 + $0x3c] sm:$0xf] %v200_v15 }
  0x1b PF: > { %p1114_p6 = scmp.ge.s32.totalorder %s1494_s13, 1  ;;  %p256_p7 = scmp.lt.s32.totalorder %s1494_s13, 5 }
  0x1d   : > { %p257_p8 = pnand %p1114_p6, %p256_p7 }
  0x1e   : > { %s263_s25 = sand.u32 (!%p257_p8), 1, %s1478_s9   ;;  %p307_p9 = scmp.lt.s32.totalorder (!%p257_p8), %s1486_s11, 3 }
  0x1f   : > { %260 = sbr.rel (%p257_p8) target bundleno = 296 (0x128), region = 65  ;;  %s1115_s28 = sshll.u32 (!%p257_p8), %s263_s25, 6 }
  0x20   : > { %s1581_s3 = scalar_lea.vmem (!%p257_p8), [#allocation3], %s1115_s28 }
  0x24   : > { %v1440_v16 = vld [vmem:[%s1671_s0] sm:$0xff]   ;;  %v1432_v18 = vld [vmem:[%s1581_s3 + $0x38] sm:$0xff]   ;;  %v1433_v19 = vld [vmem:[%s1581_s3 + $0x30] sm:$0xff]   ;;  %s1681_s11 = smov (!%p307_p9, %s1486_s11), 3 }
  0x25   : > { %v1441_v17 = vld [vmem:[%s1671_s0 + $0x40] sm:$0xff]   ;;  %1344 = vmatprep.mubr.bf16.mxu0 %v1440_v16  ;;  %1328 = vmatprep.subr.bf16.mxu0 %v1432_v18  ;;  %v1434_v20 = vld [vmem:[%s1581_s3 + $0x28] sm:$0xff]   ;;  %v1436_v22 = vld [vmem:[%s1581_s3 + $0x18] sm:$0xff]   ;;  %s1176_s15 = sshll.u32 %s1681_s11, 7 }
  0x26   : > { %1360 = vmatprep.mubr.bf16.mxu1 %v1441_v17  ;;  %1376 = vmatprep.subr.bf16.mxu1 %v1432_v18  ;;  %v1435_v21 = vld [vmem:[%s1581_s3 + $0x20] sm:$0xff]   ;;  %v1437_v23 = vld [vmem:[%s1581_s3 + $0x10] sm:$0xff]   ;;  %v1438_v24 = vld [vmem:[%s1581_s3 + $0x8] sm:$0xff]   ;;  %s1638_s19 = scalar_lea.vmem %s1673_s2, %s1176_s15 }
  0x27   : > { %1329 = vmatpush3.bf16.msra.mxu0 %v1432_v18  ;;  %1384 = vmatpush3.bf16.msra.mxu1 %v1432_v18  ;;  %v1439_v25 = vld [vmem:[%s1581_s3] sm:$0xff]   ;;  %v1442_v26 = vld [vmem:[%s1671_s0 + $0x8] sm:$0xff]   ;;  %v1444_v28 = vld [vmem:[%s1671_s0 + $0x10] sm:$0xff]  }
  0x28   : > { %1330 = vmatprep.subr.bf16.mxu0 %v1433_v19  ;;  %1377 = vmatprep.subr.bf16.mxu1 %v1433_v19  ;;  %v1443_v27 = vld [vmem:[%s1671_s0 + $0x48] sm:$0xff]   ;;  %v1445_v29 = vld [vmem:[%s1671_s0 + $0x50] sm:$0xff]   ;;  %v1446_v30 = vld [vmem:[%s1671_s0 + $0x18] sm:$0xff]  }
  0x29   : > { %v1447_v31 = vld [vmem:[%s1671_s0 + $0x58] sm:$0xff]   ;;  %v1448_v32 = vld [vmem:[%s1671_s0 + $0x20] sm:$0xff]   ;;  %v1450_v34 = vld [vmem:[%s1671_s0 + $0x28] sm:$0xff]  }
  0x2a   : > { %v1449_v33 = vld [vmem:[%s1671_s0 + $0x60] sm:$0xff]   ;;  %v1451_v35 = vld [vmem:[%s1671_s0 + $0x68] sm:$0xff]   ;;  %v1452_v36 = vld [vmem:[%s1671_s0 + $0x30] sm:$0xff]  }
  0x2b   : > { %1331 = vmatpush3.bf16.msra.mxu0 %v1433_v19  ;;  %1385 = vmatpush3.bf16.msra.mxu1 %v1433_v19  ;;  %v1453_v37 = vld [vmem:[%s1671_s0 + $0x70] sm:$0xff]   ;;  %v1454_v38 = vld [vmem:[%s1671_s0 + $0x38] sm:$0xff]  }
  0x2c   : > { %1332 = vmatprep.subr.bf16.mxu0 %v1434_v20  ;;  %1378 = vmatprep.subr.bf16.mxu1 %v1434_v20  ;;  %v1455_v39 = vld [vmem:[%s1671_s0 + $0x78] sm:$0xff]  }
  0x2f   : > { %1333 = vmatpush3.bf16.msra.mxu0 %v1434_v20  ;;  %1386 = vmatpush3.bf16.msra.mxu1 %v1434_v20 }
  0x30   : > { %1334 = vmatprep.subr.bf16.mxu0 %v1435_v21  ;;  %1379 = vmatprep.subr.bf16.mxu1 %v1435_v21 }
  0x33   : > { %1335 = vmatpush3.bf16.msra.mxu0 %v1435_v21  ;;  %1387 = vmatpush3.bf16.msra.mxu1 %v1435_v21 }
  0x34   : > { %1336 = vmatprep.subr.bf16.mxu0 %v1436_v22  ;;  %1380 = vmatprep.subr.bf16.mxu1 %v1436_v22 }
  0x37   : > { %1337 = vmatpush3.bf16.msra.mxu0 %v1436_v22  ;;  %1388 = vmatpush3.bf16.msra.mxu1 %v1436_v22 }
  0x38   : > { %1338 = vmatprep.subr.bf16.mxu0 %v1437_v23  ;;  %1381 = vmatprep.subr.bf16.mxu1 %v1437_v23 }
  0x3b   : > { %1339 = vmatpush3.bf16.msra.mxu0 %v1437_v23  ;;  %1389 = vmatpush3.bf16.msra.mxu1 %v1437_v23 }
  0x3c   : > { %1340 = vmatprep.subr.bf16.mxu0 %v1438_v24  ;;  %1382 = vmatprep.subr.bf16.mxu1 %v1438_v24 }
  0x3f   : > { %1341 = vmatpush3.bf16.msra.mxu0 %v1438_v24  ;;  %1390 = vmatpush3.bf16.msra.mxu1 %v1438_v24 }
  0x40   : > { %1342 = vmatprep.subr.bf16.mxu0 %v1439_v25  ;;  %1383 = vmatprep.subr.bf16.mxu1 %v1439_v25 }
  0x43   : > { %1343 = vmatpush3.bf16.msra.mxu0 %v1439_v25  ;;  %1391 = vmatpush3.bf16.msra.mxu1 %v1439_v25 }
  0x46   : > { %1345 = vmatmul.mubr.bf16.vlgmr.msra.gmra.mxu0 %v1442_v26  ;;  %1361 = vmatmul.mubr.bf16.vlgmr.msra.gmra.mxu1 %v1443_v27 }
  0x47   : > { %1348 = vmatprep.mubr.bf16.mxu0 %v1444_v28  ;;  %1364 = vmatprep.mubr.bf16.mxu1 %v1445_v29 }
  0x4e   : > { %1349 = vmatmul.mubr.bf16.gmra.mxu0 %v1446_v30  ;;  %1365 = vmatmul.mubr.bf16.gmra.mxu1 %v1447_v31 }
  0x4f   : > { %1352 = vmatprep.mubr.bf16.mxu0 %v1448_v32  ;;  %1368 = vmatprep.mubr.bf16.mxu1 %v1449_v33 }
  0x56   : > { %1353 = vmatmul.mubr.bf16.gmra.mxu0 %v1450_v34  ;;  %1369 = vmatmul.mubr.bf16.gmra.mxu1 %v1451_v35 }
  0x57   : > { %1356 = vmatprep.mubr.bf16.mxu0 %v1452_v36  ;;  %1372 = vmatprep.mubr.bf16.mxu1 %v1453_v37 }
  0x5e   : > { %1357 = vmatmul.mubr.bf16.gmra.mxu0 %v1454_v38  ;;  %1373 = vmatmul.mubr.bf16.gmra.mxu1 %v1455_v39 }
 0x106   : > { %v1346_v40 = vpop.f32.mrf.mxu0  ;;  %v1362_v41 = vpop.f32.mrf.mxu1 }
 0x108   : > { %v611_v42 = vpop.f32.mrf.mxu0  ;;  %v675_v43 = vpop.f32.mrf.mxu1 }
 0x10a   : > { %v1347_v44 = vpop.f32.mrf.mxu0  ;;  %v1363_v45 = vpop.f32.mrf.mxu1 }
 0x10b   : > { %v1217_v46 = vpack.c.bf16 %v1347_v44, %v1346_v40  ;;  %v1257_v47 = vpack.c.bf16 %v1363_v45, %v1362_v41 }
 0x10c   : > { %v614_v48 = vpop.f32.mrf.mxu0  ;;  %v678_v49 = vpop.f32.mrf.mxu1 }
 0x10d   : > { %1289 = vst [vmem:[%s1638_s19 + $0x8] sm:$0xff] %v1217_v46   ;;  %1297 = vst [vmem:[%s1638_s19 + $0x48] sm:$0xff] %v1257_v47   ;;  %v1212_v50 = vpack.c.bf16 %v614_v48, %v611_v42  ;;  %v1252_v51 = vpack.c.bf16 %v678_v49, %v675_v43 }
 0x10e   : > { %v1350_v52 = vpop.f32.mrf.mxu0  ;;  %v1366_v53 = vpop.f32.mrf.mxu1 }
 0x10f   : > { %1213 = vst [vmem:[%s1638_s19] sm:$0xff] %v1212_v50   ;;  %1296 = vst [vmem:[%s1638_s19 + $0x40] sm:$0xff] %v1252_v51  }
 0x110   : > { %v627_v54 = vpop.f32.mrf.mxu0  ;;  %v691_v55 = vpop.f32.mrf.mxu1 }
 0x112   : > { %v1351_v56 = vpop.f32.mrf.mxu0  ;;  %v1367_v57 = vpop.f32.mrf.mxu1 }
 0x113   : > { %v1227_v58 = vpack.c.bf16 %v1351_v56, %v1350_v52  ;;  %v1267_v59 = vpack.c.bf16 %v1367_v57, %v1366_v53 }
 0x114   : > { %v630_v60 = vpop.f32.mrf.mxu0  ;;  %v694_v61 = vpop.f32.mrf.mxu1 }
 0x115   : > { %1291 = vst [vmem:[%s1638_s19 + $0x18] sm:$0xff] %v1227_v58   ;;  %1299 = vst [vmem:[%s1638_s19 + $0x58] sm:$0xff] %v1267_v59   ;;  %v1222_v62 = vpack.c.bf16 %v630_v60, %v627_v54  ;;  %v1262_v63 = vpack.c.bf16 %v694_v61, %v691_v55 }
 0x116   : > { %v1354_v0 = vpop.f32.mrf.mxu0  ;;  %v1370_v1 = vpop.f32.mrf.mxu1 }
 0x117   : > { %1290 = vst [vmem:[%s1638_s19 + $0x10] sm:$0xff] %v1222_v62   ;;  %1298 = vst [vmem:[%s1638_s19 + $0x50] sm:$0xff] %v1262_v63  }
 0x118   : > { %v643_v2 = vpop.f32.mrf.mxu0  ;;  %v707_v3 = vpop.f32.mrf.mxu1 }
 0x11a   : > { %v1355_v4 = vpop.f32.mrf.mxu0  ;;  %v1371_v5 = vpop.f32.mrf.mxu1 }
 0x11b   : > { %v1237_v6 = vpack.c.bf16 %v1355_v4, %v1354_v0  ;;  %v1277_v7 = vpack.c.bf16 %v1371_v5, %v1370_v1 }
 0x11c   : > { %v646_v8 = vpop.f32.mrf.mxu0  ;;  %v710_v9 = vpop.f32.mrf.mxu1 }
 0x11d   : > { %1293 = vst [vmem:[%s1638_s19 + $0x28] sm:$0xff] %v1237_v6   ;;  %1301 = vst [vmem:[%s1638_s19 + $0x68] sm:$0xff] %v1277_v7   ;;  %v1232_v10 = vpack.c.bf16 %v646_v8, %v643_v2  ;;  %v1272_v11 = vpack.c.bf16 %v710_v9, %v707_v3 }
 0x11e   : > { %v1358_v12 = vpop.f32.mrf.mxu0  ;;  %v1374_v13 = vpop.f32.mrf.mxu1 }
 0x11f   : > { %1292 = vst [vmem:[%s1638_s19 + $0x20] sm:$0xff] %v1232_v10   ;;  %1300 = vst [vmem:[%s1638_s19 + $0x60] sm:$0xff] %v1272_v11  }
 0x120   : > { %v659_v14 = vpop.f32.mrf.mxu0  ;;  %v723_v15 = vpop.f32.mrf.mxu1 }
 0x122   : > { %v1359_v16 = vpop.f32.mrf.mxu0  ;;  %v1375_v17 = vpop.f32.mrf.mxu1 }
 0x123   : > { %v1247_v18 = vpack.c.bf16 %v1359_v16, %v1358_v12  ;;  %v1287_v19 = vpack.c.bf16 %v1375_v17, %v1374_v13 }
 0x124   : > { %v662_v20 = vpop.f32.mrf.mxu0  ;;  %v726_v21 = vpop.f32.mrf.mxu1 }
 0x125   : > { %1295 = vst [vmem:[%s1638_s19 + $0x38] sm:$0xff] %v1247_v18   ;;  %1303 = vst [vmem:[%s1638_s19 + $0x78] sm:$0xff] %v1287_v19   ;;  %v1242_v22 = vpack.c.bf16 %v662_v20, %v659_v14  ;;  %v1282_v23 = vpack.c.bf16 %v726_v21, %v723_v15 }
 0x127   : > { %1294 = vst [vmem:[%s1638_s19 + $0x30] sm:$0xff] %v1242_v22   ;;  %1302 = vst [vmem:[%s1638_s19 + $0x70] sm:$0xff] %v1282_v23  }
 0x128 PF: > { %s12_s13 = sadd.s32 1, %s1494_s13   ;;  %s1674_s9 = smov %s1482_s10 }
 0x129   : > { %p9_p10 = scmp.ge.s32.totalorder %s12_s13, 6   ;;  %s1675_s10 = smov %s1546_s17 }
 0x12a   : > { %s1676_s11 = smov %s1490_s12  ;;  %s1677_s12 = smov %s1679_s14 }
 0x12b   :  { %11 = sbr.rel (!%p9_p10) target bundleno = 3 (0x3), region = 115 }

// kernel: dao_mla_forward.8
= control target key start
LH: loop header
LB: loop body
LE: loop exit
PB: predicated region body
PF: predicated region fallthrough
CT: control target
= control target key end

     0   :  { %s3116_s12 = smov 0   ;;  %s3118_s13 = smov 0   ;;  %s3644_s0 = inlined_call_operand.vmem [shape: bf16[2,256,128], index: 0, kind: input, shape index: {}]   ;;  %s3645_s1 = inlined_call_operand.vmem [shape: bf16[4,256,128], index: 1, kind: input, shape index: {}, may-alias: {1,2}]   ;;  %s3646_s2 = inlined_call_operand.vmem [shape: bf16[4,256,128], index: 2, kind: input, shape index: {}, may-alias: {1,2}]   ;;  %s3647_s3 = inlined_call_operand.vmem [shape: bf16[2,256,128], index: 3, kind: output, shape index: {}]  }
   0x1   :  { %s3120_s14 = smov 0   ;;  %s3122_s15 = smov 0  }
   0x2   :  { %s3124_s16 = smov 0  }
   0x3 LB: > { %s35_s17 = sadd.s32 1, %s3083_s14  ;;  %s39_s18 = sadd.s32 1, %s3087_s15  ;;  %s3091_s16 = sphi %s3124_s16, %s13_s16   ;;  %s3087_s15 = sphi %s3122_s15, %s3665_s15   ;;  %s3083_s14 = sphi %s3120_s14, %s3664_s14   ;;  %s3079_s13 = sphi %s3118_s13, %s3663_s13   ;;  %s3075_s12 = sphi %s3116_s12, %s3662_s12  }
   0x4   : > { %p37_p0 = scmp.ge.s32.totalorder %s35_s17, 2  ;;  %p2650_p1 = scmp.ge.s32.totalorder %s3091_s16, 1 }
   0x5   : > { %p240_p2 = scmp.lt.s32.totalorder %s3091_s16, 5 }
   0x6   : > { %s3667_s17 = smov (%p37_p0, %s35_s17), 0  ;;  %s3669_s18 = smov (!%p37_p0, %s39_s18), %s3087_s15 }
   0x7   : > { %p241_p3 = pnand %p2650_p1, %p240_p2  ;;  %p41_p4 = scmp.ge.s32.totalorder %s3669_s18, 2 }
   0x8   : > { %s2651_s19 = sshll.u32 (!%p241_p3), %s3079_s13, 4  ;;  %p315_p5 = scmp.lt.s32.totalorder (!%p241_p3), %s3075_s12, 3 }
   0x9   : > { %s3671_s18 = smov (%p41_p4, %s3669_s18), 0  ;;  %244 = sbr.rel (%p241_p3) target bundleno = 905 (0x389), region = 32 }
   0xa   : > { %p303_p6 = scmp.lt.s32.totalorder (!%p241_p3), %s2651_s19, 31  ;;  %p301_p7 = scmp.lt.s32.totalorder (!%p241_p3), %s3075_s12, 1 }
   0xb   : > { %s327_s7 = sadd.s32 (!%p241_p3), 2, %s3075_s12 }
   0xc   : > { %p332_p8 = scmp.lt.s32.totalorder (!%p241_p3), %s327_s7, 3 }
   0xe   : > { %s316_s20 = scalar_select %p315_p5, %s3075_s12, 3  ;;  %vm362_vm0 = vcmask 7168   ;;  %v3093_v16 = vmov -inf   ;;  %v1583_v17 = vlaneseq  ;;  %v3094_v50 = vmov 0  }
   0xf   : > { %s3673_s19 = smov (!%p303_p6, %s2651_s19), 31  ;;  %365 = vst.msk [vmem:[#allocation2 + $0x10] sm:$0xff] %vm362_vm0, %v3093_v16  ;;  %363 = vst.msk [vmem:[#allocation2] sm:$0xff] %vm362_vm0, %v3093_v16  ;;  %2932 = vset.pattern.permute.xlu1 %v3094_v50  ;;  %2931 = vset.pattern.permute.xlu0 %v3094_v50  ;;  %s3675_s7 = smov (!%p332_p8, %s327_s7), 3 }
  0x10   : > { %s2655_s21 = sshll.u32 %s316_s20, 5  ;;  %364 = vst.msk [vmem:[#allocation2 + $0x8] sm:$0xff] %vm362_vm0, %v3093_v16  ;;  %366 = vst.msk [vmem:[#allocation2 + $0x18] sm:$0xff] %vm362_vm0, %v3093_v16  ;;  %v3193_v18 = vshrl.u32 %v1583_v17, 7  ;;  %v3196_v20 = vand.u32 127, %v1583_v17  ;;  %s2658_s8 = sshll.u32 %s3675_s7, 5 }
  0x11   : > { %s320_s22 = sadd.s32 %s2655_s21, %s3673_s19  ;;  %367 = vst.msk [vmem:[#allocation2 + $0x20] sm:$0xff] %vm362_vm0, %v3093_v16  ;;  %368 = vst.msk [vmem:[#allocation2 + $0x28] sm:$0xff] %vm362_vm0, %v3093_v16  ;;  %s337_s9 = sadd.s32 %s2658_s8, %s3673_s19 }
  0x12   : > { %s2656_s23 = sshll.u32 %s320_s22, 2  ;;  %369 = vst.msk [vmem:[#allocation2 + $0x30] sm:$0xff] %vm362_vm0, %v3093_v16  ;;  %370 = vst.msk [vmem:[#allocation2 + $0x38] sm:$0xff] %vm362_vm0, %v3093_v16  ;;  %v1586_v19 = vadd.s32 16, %v3193_v18  ;;  %v1587_v22 = vadd.s32 24, %v3193_v18  ;;  %vm1602_vm2 = vcmp.le.s32.totalorder %v3196_v20, %v3193_v18  ;;  %v1585_v25 = vadd.s32 8, %v3193_v18 }
  0x13   : > { %s322_s26 = scalar_lea.vmem %s3645_s1, %s2656_s23  ;;  %371 = vst.msk [vmem:[#allocation2 + $0x40] sm:$0xff] %vm362_vm0, %v3093_v16  ;;  %372 = vst.msk [vmem:[#allocation2 + $0x48] sm:$0xff] %vm362_vm0, %v3093_v16  ;;  %v1588_v32 = vadd.s32 32, %v3193_v18  ;;  %v1591_v36 = vadd.s32 56, %v3193_v18  ;;  %v1590_v39 = vadd.s32 48, %v3193_v18  ;;  %v1589_v42 = vadd.s32 40, %v3193_v18 }
  0x14   : > { %v2933_v0 = vld [vmem:[%s322_s26 + $0x38] sm:$0xff]   ;;  %s302_s27 = scalar_select %p301_p7, %s3075_s12, 1  ;;  %v2934_v1 = vld [vmem:[%s322_s26 + $0x30] sm:$0xff]   ;;  %v2935_v2 = vld [vmem:[%s322_s26 + $0x28] sm:$0xff]   ;;  %373 = vst.msk [vmem:[#allocation2 + $0x50] sm:$0xff] %vm362_vm0, %v3093_v16  ;;  %vm1604_vm1 = vcmp.le.s32.totalorder %v3196_v20, %v1586_v19  ;;  %vm1605_vm3 = vcmp.le.s32.totalorder %v3196_v20, %v1587_v22  ;;  %vm1603_vm4 = vcmp.le.s32.totalorder %v3196_v20, %v1585_v25  ;;  %v1592_v47 = vadd.s32 64, %v3193_v18 }
  0x15   : > { %2824 = vmatprep.subr.bf16.mxu0 %v2933_v0  ;;  %v2936_v4 = vld [vmem:[%s322_s26 + $0x20] sm:$0xff]   ;;  %v2937_v5 = vld [vmem:[%s322_s26 + $0x18] sm:$0xff]   ;;  %v2938_v6 = vld [vmem:[%s322_s26 + $0x10] sm:$0xff]   ;;  %374 = vst.msk [vmem:[#allocation2 + $0x58] sm:$0xff] %vm362_vm0, %v3093_v16  ;;  %vm1606_vm5 = vcmp.le.s32.totalorder %v3196_v20, %v1588_v32  ;;  %vm1609_vm6 = vcmp.le.s32.totalorder %v3196_v20, %v1591_v36  ;;  %vm1608_vm7 = vcmp.le.s32.totalorder %v3196_v20, %v1590_v39  ;;  %v1595_v52 = vadd.s32 88, %v3193_v18  ;;  %s2659_s10 = sshll.u32 %s337_s9, 2 }
  0x16   : > { %s2652_s28 = sshll.u32 %s302_s27, 5  ;;  %2825 = vmatpush3.bf16.xpose.msra.mxu0 %v2933_v0  ;;  %v2939_v7 = vld [vmem:[%s322_s26 + $0x8] sm:$0xff]   ;;  %v2940_v8 = vld [vmem:[%s322_s26] sm:$0xff]   ;;  %375 = vst.msk [vmem:[#allocation2 + $0x60] sm:$0xff] %vm362_vm0, %v3093_v16  ;;  %376 = vst.msk [vmem:[#allocation2 + $0x68] sm:$0xff] %vm362_vm0, %v3093_v16  ;;  %vm1607_vm8 = vcmp.le.s32.totalorder %v3196_v20, %v1589_v42  ;;  %v1594_v53 = vadd.s32 80, %v3193_v18  ;;  %vm1610_vm9 = vcmp.le.s32.totalorder %v3196_v20, %v1592_v47  ;;  %s3302_s20 = scalar_lea.vmem %s3646_s2, %s2659_s10 }
  0x17   : > { %s3159_s29 = sadd.s32 %s2652_s28, %s3673_s19  ;;  %2826 = vmatprep.subr.bf16.mxu0 %v2934_v1  ;;  %377 = vst.msk [vmem:[#allocation2 + $0x70] sm:$0xff] %vm362_vm0, %v3093_v16  ;;  %378 = vst.msk [vmem:[#allocation2 + $0x78] sm:$0xff] %vm362_vm0, %v3093_v16  ;;  %vm1613_vm10 = vcmp.le.s32.totalorder %v3196_v20, %v1595_v52  ;;  %v1593_v60 = vadd.s32 72, %v3193_v18  ;;  %v1596_v0 = vadd.s32 96, %v3193_v18  ;;  %v3305_v22 = vld [vmem:[#allocation2 + $0x10] sm:$0xff]  ;;  %v3308_v25 = vld [vmem:[#allocation2] sm:$0xff] }
  0x18   : > { %s2653_s30 = sshll.u32 %s3159_s29, 2  ;;  %vm1612_vm11 = vcmp.le.s32.totalorder %v3196_v20, %v1594_v53  ;;  %v3324_v36 = vld [vmem:[#allocation2 + $0x8] sm:$0xff]  ;;  %v2953_v50 = vld [vmem:[%s3302_s20 + $0x18] sm:$0xff]  }
  0x19   : > { %s3167_s6 = scalar_lea.vmem %s3644_s0, %s2653_s30  ;;  %vm1611_vm12 = vcmp.le.s32.totalorder %v3196_v20, %v1593_v60  ;;  %vm1614_vm13 = vcmp.le.s32.totalorder %v3196_v20, %v1596_v0  ;;  %v3356_v53 = vld [vmem:[#allocation2 + $0x30] sm:$0xff]  ;;  %s3613_s21 = scalar_lea.vmem %s3647_s3, %s2653_s30 }
  0x1a   : > { %v2941_v3 = vld [vmem:[%s3167_s6] sm:$0xff]   ;;  %v2942_v9 = vld [vmem:[%s3167_s6 + $0x8] sm:$0xff]   ;;  %v2943_v10 = vld [vmem:[%s3167_s6 + $0x10] sm:$0xff]  }
  0x1b   : > { %2840 = vmatprep.mubr.bf16.mxu0 %v2941_v3  ;;  %v2944_v11 = vld [vmem:[%s3167_s6 + $0x18] sm:$0xff]   ;;  %v2945_v12 = vld [vmem:[%s3167_s6 + $0x20] sm:$0xff]   ;;  %v2946_v13 = vld [vmem:[%s3167_s6 + $0x28] sm:$0xff]  }
  0x1c   : > { %v2947_v14 = vld [vmem:[%s3167_s6 + $0x30] sm:$0xff]   ;;  %v2948_v15 = vld [vmem:[%s3167_s6 + $0x38] sm:$0xff]  }
  0x1d   : > { %v2954_v60 = vld [vmem:[%s3302_s20 + $0x10] sm:$0xff]  }
  0x1e   : > { %2827 = vmatpush3.bf16.xpose.msra.mxu0 %v2934_v1 }
  0x1f   : > { %2828 = vmatprep.subr.bf16.mxu0 %v2935_v2 }
  0x26   : > { %2829 = vmatpush3.bf16.xpose.msra.mxu0 %v2935_v2 }
  0x27   : > { %2830 = vmatprep.subr.bf16.mxu0 %v2936_v4 }
  0x2e   : > { %2831 = vmatpush3.bf16.xpose.msra.mxu0 %v2936_v4 }
  0x2f   : > { %2832 = vmatprep.subr.bf16.mxu0 %v2937_v5 }
  0x36   : > { %2833 = vmatpush3.bf16.xpose.msra.mxu0 %v2937_v5  ;;  %v1599_v5 = vadd.s32 120, %v3193_v18 }
  0x37   : > { %2834 = vmatprep.subr.bf16.mxu0 %v2938_v6 }
  0x38   : > { %vm1617_vm14 = vcmp.le.s32.totalorder %v3196_v20, %v1599_v5 }
  0x3e   : > { %2835 = vmatpush3.bf16.xpose.msra.mxu0 %v2938_v6  ;;  %v1598_v6 = vadd.s32 112, %v3193_v18 }
  0x3f   : > { %2836 = vmatprep.subr.bf16.mxu0 %v2939_v7 }
  0x40   : > { %vm1616_vm15 = vcmp.le.s32.totalorder %v3196_v20, %v1598_v6 }
  0x46   : > { %2837 = vmatpush3.bf16.xpose.msra.mxu0 %v2939_v7 }
  0x47   : > { %2838 = vmatprep.subr.bf16.mxu0 %v2940_v8 }
  0x4e   : > { %2839 = vmatpush3.bf16.xpose.msra.mxu0 %v2940_v8  ;;  %v3095_v8 = vmov 0.0  }
  0x4f   : > { %381 = vst.msk [vmem:[#allocation3 + $0x10] sm:$0xff] %vm362_vm0, %v3095_v8  ;;  %379 = vst.msk [vmem:[#allocation3] sm:$0xff] %vm362_vm0, %v3095_v8 }
  0x50   : > { %380 = vst.msk [vmem:[#allocation3 + $0x8] sm:$0xff] %vm362_vm0, %v3095_v8  ;;  %382 = vst.msk [vmem:[#allocation3 + $0x18] sm:$0xff] %vm362_vm0, %v3095_v8 }
  0x51   : > { %383 = vst.msk [vmem:[#allocation3 + $0x20] sm:$0xff] %vm362_vm0, %v3095_v8  ;;  %384 = vst.msk [vmem:[#allocation3 + $0x28] sm:$0xff] %vm362_vm0, %v3095_v8 }
  0x52   : > { %385 = vst.msk [vmem:[#allocation3 + $0x30] sm:$0xff] %vm362_vm0, %v3095_v8  ;;  %386 = vst.msk [vmem:[#allocation3 + $0x38] sm:$0xff] %vm362_vm0, %v3095_v8 }
  0x53   : > { %387 = vst.msk [vmem:[#allocation3 + $0x40] sm:$0xff] %vm362_vm0, %v3095_v8  ;;  %388 = vst.msk [vmem:[#allocation3 + $0x48] sm:$0xff] %vm362_vm0, %v3095_v8 }
  0x54   : > { %389 = vst.msk [vmem:[#allocation3 + $0x50] sm:$0xff] %vm362_vm0, %v3095_v8  ;;  %390 = vst.msk [vmem:[#allocation3 + $0x58] sm:$0xff] %vm362_vm0, %v3095_v8 }
  0x55   : > { %2841 = vmatmul.mubr.bf16.vlgmr.msra.gmra.mxu0 %v2942_v9  ;;  %391 = vst.msk [vmem:[#allocation3 + $0x60] sm:$0xff] %vm362_vm0, %v3095_v8  ;;  %392 = vst.msk [vmem:[#allocation3 + $0x68] sm:$0xff] %vm362_vm0, %v3095_v8 }
  0x56   : > { %2844 = vmatprep.mubr.bf16.mxu0 %v2943_v10  ;;  %393 = vst.msk [vmem:[#allocation3 + $0x70] sm:$0xff] %vm362_vm0, %v3095_v8  ;;  %394 = vst.msk [vmem:[#allocation3 + $0x78] sm:$0xff] %vm362_vm0, %v3095_v8  ;;  %v2955_v8 = vld [vmem:[%s3302_s20 + $0x8] sm:$0xff]  }
  0x5d   : > { %2845 = vmatmul.mubr.bf16.gmra.mxu0 %v2944_v11 }
  0x5e   : > { %2848 = vmatprep.mubr.bf16.mxu0 %v2945_v12 }
  0x65   : > { %2849 = vmatmul.mubr.bf16.gmra.mxu0 %v2946_v13  ;;  %v1597_v13 = vadd.s32 104, %v3193_v18 }
  0x66   : > { %2852 = vmatprep.mubr.bf16.mxu0 %v2947_v14 }
  0x6d   : > { %2853 = vmatmul.mubr.bf16.gmra.mxu0 %v2948_v15 }
 0x115   : > { %v2842_v21 = vpop.f32.mrf.mxu0 }
 0x116   : > { %v1569_v23 = vmul.f32 0.088388346, %v2842_v21 }
 0x117   : > { %v1504_v24 = vpop.f32.mrf.mxu0 }
 0x118   : > { %v1567_v26 = vmul.f32 0.088388346, %v1504_v24  ;;  %v3203_v27 = vsel %vm1604_vm1, %v1569_v23, -1e+30  ;;  %vm1615_vm1 = vcmp.le.s32.totalorder %v3196_v20, %v1597_v13  ;;  %v2949_v20 = vld [vmem:[%s3302_s20 + $0x38] sm:$0xff]   ;;  %v2950_v23 = vld [vmem:[%s3302_s20 + $0x30] sm:$0xff]  }
 0x119   : > { %1654 = vmax.xlane.f32.xlu1 %v3203_v27  ;;  %v2843_v28 = vpop.f32.mrf.mxu0  ;;  %2856 = vmatprep.subr.bf16.mxu1 %v2949_v20  ;;  %v3395_v13 = vld [vmem:[#allocation2 + $0x50] sm:$0xff] }
 0x11a   : > { %v1570_v29 = vmul.f32 0.088388346, %v2843_v28  ;;  %v3207_v30 = vsel %vm1602_vm2, %v1567_v26, -1e+30  ;;  %2857 = vmatpush3.bf16.msra.mxu1 %v2949_v20  ;;  %v3405_v20 = vld [vmem:[#allocation2 + $0x48] sm:$0xff] }
 0x11b   : > { %1650 = vmax.xlane.f32.xlu0 %v3207_v30  ;;  %v1507_v31 = vpop.f32.mrf.mxu0  ;;  %2858 = vmatprep.subr.bf16.mxu1 %v2950_v23 }
 0x11c   : > { %v1568_v33 = vmul.f32 0.088388346, %v1507_v31  ;;  %v3212_v34 = vsel %vm1605_vm3, %v1570_v29, -1e+30  ;;  %v3313_v29 = vld [vmem:[#allocation2 + $0x18] sm:$0xff]  ;;  %v2951_v31 = vld [vmem:[%s3302_s20 + $0x28] sm:$0xff]  }
 0x11d   : > { %1656 = vmax.xlane.f32.xlu1 %v3212_v34  ;;  %v2846_v35 = vpop.f32.mrf.mxu0 }
 0x11e   : > { %v3216_v37 = vsel %vm1603_vm4, %v1568_v33, -1e+30  ;;  %v1573_v43 = vmul.f32 0.088388346, %v2846_v35  ;;  %2859 = vmatpush3.bf16.msra.mxu1 %v2950_v23  ;;  %v2956_v23 = vld [vmem:[%s3302_s20] sm:$0xff]  }
 0x11f   : > { %1652 = vmax.xlane.f32.xlu0 %v3216_v37  ;;  %v1520_v38 = vpop.f32.mrf.mxu0  ;;  %2860 = vmatprep.subr.bf16.mxu1 %v2951_v31 }
 0x120   : > { %v1571_v40 = vmul.f32 0.088388346, %v1520_v38  ;;  %v3234_v54 = vsel %vm1608_vm7, %v1573_v43, -1e+30 }
 0x121   : > { %v2847_v41 = vpop.f32.mrf.mxu0 }
 0x122   : > { %v1574_v44 = vmul.f32 0.088388346, %v2847_v41  ;;  %v3223_v45 = vsel %vm1606_vm5, %v1571_v40, -1e+30  ;;  %2861 = vmatpush3.bf16.msra.mxu1 %v2951_v31  ;;  %v2952_v41 = vld [vmem:[%s3302_s20 + $0x20] sm:$0xff]  }
 0x123   : > { %1658 = vmax.xlane.f32.xlu0 %v3223_v45  ;;  %v1523_v46 = vpop.f32.mrf.mxu0  ;;  %2862 = vmatprep.subr.bf16.mxu1 %v2952_v41 }
 0x124   : > { %v1572_v48 = vmul.f32 0.088388346, %v1523_v46  ;;  %v3228_v49 = vsel %vm1609_vm6, %v1574_v44, -1e+30  ;;  %v3343_v44 = vld [vmem:[#allocation2 + $0x20] sm:$0xff] }
 0x125   : > { %1664 = vmax.xlane.f32.xlu1 %v3228_v49  ;;  %v2850_v51 = vpop.f32.mrf.mxu0 }
 0x126   : > { %v1577_v56 = vmul.f32 0.088388346, %v2850_v51  ;;  %v3238_v58 = vsel %vm1607_vm8, %v1572_v48, -1e+30  ;;  %2863 = vmatpush3.bf16.msra.mxu1 %v2952_v41  ;;  %v3349_v48 = vld [vmem:[#allocation2 + $0x38] sm:$0xff] }
 0x127   : > { %1662 = vmax.xlane.f32.xlu0 %v3234_v54  ;;  %v1536_v55 = vpop.f32.mrf.mxu0  ;;  %2864 = vmatprep.subr.bf16.mxu1 %v2953_v50 }
 0x128   : > { %v1575_v57 = vmul.f32 0.088388346, %v1536_v55  ;;  %v3250_v3 = vsel %vm1612_vm11, %v1577_v56, -1e+30 }
 0x129   : > { %1660 = vmax.xlane.f32.xlu1 %v3238_v58  ;;  %v2851_v59 = vpop.f32.mrf.mxu0 }
 0x12a   : > { %v1578_v61 = vmul.f32 0.088388346, %v2851_v59  ;;  %v3244_v62 = vsel %vm1610_vm9, %v1575_v57, -1e+30  ;;  %2865 = vmatpush3.bf16.msra.mxu1 %v2953_v50  ;;  %v3365_v59 = vld [vmem:[#allocation2 + $0x28] sm:$0xff]  ;;  %v3425_v50 = vld [vmem:[#allocation2 + $0x78] sm:$0xff] }
 0x12b   : > { %1666 = vmax.xlane.f32.xlu0 %v3244_v62  ;;  %v1539_v63 = vpop.f32.mrf.mxu0  ;;  %2866 = vmatprep.subr.bf16.mxu1 %v2954_v60 }
 0x12c   : > { %v1576_v1 = vmul.f32 0.088388346, %v1539_v63  ;;  %v3248_v2 = vsel %vm1613_vm10, %v1578_v61, -1e+30 }
 0x12d   : > { %1672 = vmax.xlane.f32.xlu1 %v3248_v2  ;;  %v2854_v4 = vpop.f32.mrf.mxu0 }
 0x12e   : > { %v1581_v9 = vmul.f32 0.088388346, %v2854_v4  ;;  %v3276_v11 = vsel %vm1611_vm12, %v1576_v1, -1e+30  ;;  %v3375_v1 = vld [vmem:[#allocation2 + $0x40] sm:$0xff]  ;;  %2867 = vmatpush3.bf16.msra.mxu1 %v2954_v60 }
 0x12f   : > { %1670 = vmax.xlane.f32.xlu0 %v3250_v3  ;;  %v1552_v7 = vpop.f32.mrf.mxu0  ;;  %2868 = vmatprep.subr.bf16.mxu1 %v2955_v8 }
 0x130   : > { %v1579_v10 = vmul.f32 0.088388346, %v1552_v7  ;;  %v3289_v21 = vsel %vm1616_vm15, %v1581_v9, -1e+30  ;;  %v3385_v7 = vld [vmem:[#allocation2 + $0x58] sm:$0xff] }
 0x131   : > { %1668 = vmax.xlane.f32.xlu1 %v3276_v11  ;;  %v2855_v12 = vpop.f32.mrf.mxu0 }
 0x132   : > { %v1582_v14 = vmul.f32 0.088388346, %v2855_v12  ;;  %v3284_v15 = vsel %vm1614_vm13, %v1579_v10, -1e+30  ;;  %2869 = vmatpush3.bf16.msra.mxu1 %v2955_v8 }
 0x133   : > { %1674 = vmax.xlane.f32.xlu0 %v3284_v15  ;;  %v1555_v16 = vpop.f32.mrf.mxu0  ;;  %2870 = vmatprep.subr.bf16.mxu1 %v2956_v23 }
 0x134   : > { %v1580_v17 = vmul.f32 0.088388346, %v1555_v16  ;;  %v3287_v19 = vsel %vm1617_vm14, %v1582_v14, -1e+30 }
 0x135   : > { %1680 = vmax.xlane.f32.xlu1 %v3287_v19 }
 0x136   : > { %v3294_v18 = vsel %vm1615_vm1, %v1580_v17, -1e+30  ;;  %2871 = vmatpush3.bf16.msra.mxu1 %v2956_v23 }
 0x137   : > { %1678 = vmax.xlane.f32.xlu0 %v3289_v21 }
 0x139   : > { %1676 = vmax.xlane.f32.xlu1 %v3294_v18 }
 0x1a2   : > { %v1655_v24 = vpop.xlane.xlu1 %1654 }
 0x1a3   : > { %v3311_v26 = vmax.f32 %v3305_v22, %v1655_v24 }
 0x1a4   : > { %v1651_v28 = vpop.xlane.xlu0 %1650 }
 0x1a5   : > { %v1700_v32 = vsub.f32 %v3305_v22, %v3311_v26  ;;  %2270 = vst.msk [vmem:[#allocation2 + $0x10] sm:$0xff] %vm362_vm0, %v3311_v26  ;;  %v3321_v33 = vmax.f32 %v3308_v25, %v1651_v28  ;;  %1758 = vperm.xlu1 %2932, %v3311_v26  }
 0x1a6   : > { %v1657_v35 = vpop.xlane.xlu1 %1656 }
 0x1a7   : > { %2268 = vst.msk [vmem:[#allocation2] sm:$0xff] %vm362_vm0, %v3321_v33  ;;  %v3331_v39 = vmax.f32 %v3313_v29, %v1657_v35  ;;  %1748 = vperm.xlu0 %2931, %v3321_v33   ;;  %v3415_v35 = vld [vmem:[#allocation2 + $0x60] sm:$0xff] }
 0x1a8   : > { %v1653_v40 = vpop.xlane.xlu0 %1652 }
 0x1a9   : > { %2271 = vst.msk [vmem:[#allocation2 + $0x18] sm:$0xff] %vm362_vm0, %v3331_v39  ;;  %v3340_v43 = vmax.f32 %v3324_v36, %v1653_v40  ;;  %1763 = vperm.xlu1 %2932, %v3331_v39  }
 0x1ab   : > { %v1699_v46 = vsub.f32 %v3324_v36, %v3340_v43  ;;  %2269 = vst.msk [vmem:[#allocation2 + $0x8] sm:$0xff] %vm362_vm0, %v3340_v43  ;;  %v3650_v36 = vsub.f32 %v3313_v29, %v3331_v39 }
 0x1ac   : > { %v1659_v47 = vpop.xlane.xlu0 %1658 }
 0x1ad   : > { %v3353_v51 = vmax.f32 %v3343_v44, %v1659_v47  ;;  %1753 = vperm.xlu1 %2932, %v3340_v43   ;;  %v1720_v43 = vmul.f32 1.442695, %v3650_v36 }
 0x1ae   : > { %v1665_v52 = vpop.xlane.xlu1 %1664 }
 0x1af   : > { %2272 = vst.msk [vmem:[#allocation2 + $0x20] sm:$0xff] %vm362_vm0, %v3353_v51  ;;  %v3363_v56 = vmax.f32 %v3349_v48, %v1665_v52 }
 0x1b0   : > { %v1663_v57 = vpop.xlane.xlu0 %1662 }
 0x1b1   : > { %2275 = vst.msk [vmem:[#allocation2 + $0x38] sm:$0xff] %vm362_vm0, %v3363_v56  ;;  %v3373_v63 = vmax.f32 %v3356_v53, %v1663_v57  ;;  %v3654_v29 = vsub.f32 %v3349_v48, %v3363_v56 }
 0x1b2   : > { %v1661_v0 = vpop.xlane.xlu1 %1660 }
 0x1b3   : > { %2274 = vst.msk [vmem:[#allocation2 + $0x30] sm:$0xff] %vm362_vm0, %v3373_v63  ;;  %v3382_v5 = vmax.f32 %v3365_v59, %v1661_v0  ;;  %1778 = vperm.xlu1 %2932, %v3373_v63   ;;  %v3435_v0 = vld [vmem:[#allocation2 + $0x70] sm:$0xff]  ;;  %v3651_v22 = vsub.f32 %v3356_v53, %v3373_v63  ;;  %v1728_v39 = vmul.f32 1.442695, %v3654_v29  ;;  %v1879_v29 = vld [vmem:[#allocation3 + $0x28] sm:$0xff] }
 0x1b4   : > { %v1667_v6 = vpop.xlane.xlu0 %1666 }
 0x1b5   : > { %2273 = vst.msk [vmem:[#allocation2 + $0x28] sm:$0xff] %vm362_vm0, %v3382_v5  ;;  %v3393_v10 = vmax.f32 %v3375_v1, %v1667_v6  ;;  %v1726_v26 = vmul.f32 1.442695, %v3651_v22 }
 0x1b6   : > { %v1673_v12 = vpop.xlane.xlu1 %1672 }
 0x1b7   : > { %2276 = vst.msk [vmem:[#allocation2 + $0x40] sm:$0xff] %vm362_vm0, %v3393_v10  ;;  %v3402_v16 = vmax.f32 %v3385_v7, %v1673_v12  ;;  %1768 = vperm.xlu1 %2932, %v3353_v51  }
 0x1b8   : > { %v1671_v17 = vpop.xlane.xlu0 %1670 }
 0x1b9   : > { %2279 = vst.msk [vmem:[#allocation2 + $0x58] sm:$0xff] %vm362_vm0, %v3402_v16  ;;  %v3413_v28 = vmax.f32 %v3395_v13, %v1671_v17  ;;  %v3445_v17 = vld [vmem:[#allocation2 + $0x68] sm:$0xff] }
 0x1ba   : > { %v1669_v31 = vpop.xlane.xlu1 %1668 }
 0x1bb   : > { %2278 = vst.msk [vmem:[#allocation2 + $0x50] sm:$0xff] %vm362_vm0, %v3413_v28  ;;  %v3422_v41 = vmax.f32 %v3405_v20, %v1669_v31  ;;  %1773 = vperm.xlu1 %2932, %v3382_v5  }
 0x1bc   : > { %v1675_v47 = vpop.xlane.xlu0 %1674 }
 0x1bd   : > { %2277 = vst.msk [vmem:[#allocation2 + $0x48] sm:$0xff] %vm362_vm0, %v3422_v41  ;;  %v3432_v57 = vmax.f32 %v3415_v35, %v1675_v47  ;;  %1793 = vperm.xlu0 %2931, %v3422_v41   ;;  %v3656_v63 = vsub.f32 %v3405_v20, %v3422_v41 }
 0x1be   : > { %v1681_v60 = vpop.xlane.xlu1 %1680 }
 0x1bf   : > { %2280 = vst.msk [vmem:[#allocation2 + $0x60] sm:$0xff] %vm362_vm0, %v3432_v57  ;;  %v3442_v8 = vmax.f32 %v3425_v50, %v1681_v60  ;;  %1783 = vperm.xlu1 %2932, %v3363_v56   ;;  %v3657_v48 = vsub.f32 %v3415_v35, %v3432_v57 }
 0x1c0   : > { %v1679_v12 = vpop.xlane.xlu0 %1678 }
 0x1c1   : > { %2283 = vst.msk [vmem:[#allocation2 + $0x78] sm:$0xff] %vm362_vm0, %v3442_v8  ;;  %v3452_v31 = vmax.f32 %v3435_v0, %v1679_v12  ;;  %1803 = vperm.xlu0 %2931, %v3402_v16   ;;  %v1738_v56 = vmul.f32 1.442695, %v3657_v48  ;;  %v1885_v48 = vld [vmem:[#allocation3 + $0x58] sm:$0xff] }
 0x1c2   : > { %v1677_v47 = vpop.xlane.xlu1 %1676 }
 0x1c3   : > { %2282 = vst.msk [vmem:[#allocation2 + $0x70] sm:$0xff] %vm362_vm0, %v3452_v31  ;;  %v3460_v24 = vmax.f32 %v3445_v17, %v1677_v47  ;;  %1788 = vperm.xlu1 %2932, %v3393_v10   ;;  %v3659_v20 = vsub.f32 %v3435_v0, %v3452_v31 }
 0x1c5   : > { %2281 = vst.msk [vmem:[#allocation2 + $0x68] sm:$0xff] %vm362_vm0, %v3460_v24  ;;  %1813 = vperm.xlu0 %2931, %v3460_v24   ;;  %v1742_v41 = vmul.f32 1.442695, %v3659_v20  ;;  %v3660_v35 = vsub.f32 %v3445_v17, %v3460_v24 }
 0x1c7   : > { %1798 = vperm.xlu1 %2932, %v3413_v28  }
 0x1c9   : > { %1823 = vperm.xlu0 %2931, %v3442_v8  }
 0x1cb   : > { %1808 = vperm.xlu1 %2932, %v3432_v57   ;;  %v1740_v57 = vmul.f32 1.442695, %v3660_v35 }
 0x1cf   : > { %1818 = vperm.xlu1 %2932, %v3452_v31  }
 0x220   : > { %v1759_v12 = vpop.permute.xlu1 %1758 }
 0x221   : > { %v1828_v47 = vsub.f32 %v3203_v27, %v1759_v12 }
 0x222   : > { %v1749_v60 = vpop.permute.xlu0 %1748 }
 0x223   : > { %v1846_v6 = vmul.f32 1.442695, %v1828_v47  ;;  %v1826_v23 = vsub.f32 %v3207_v30, %v1749_v60 }
 0x224   : > { %v1764_v52 = vpop.permute.xlu1 %1763 }
 0x225   : > { %2957 = vpow2.f32 %v1846_v6  ;;  %v1842_v40 = vmul.f32 1.442695, %v1826_v23  ;;  %v1829_v61 = vsub.f32 %v3212_v34, %v1764_v52 }
 0x227   : > { %2959 = vpow2.f32 %v1842_v40  ;;  %v1848_v14 = vmul.f32 1.442695, %v1829_v61 }
 0x228   : > { %v1754_v9 = vpop.permute.xlu1 %1753 }
 0x229   : > { %v1827_v4 = vsub.f32 %v3216_v37, %v1754_v9  ;;  %2961 = vpow2.f32 %v1848_v14 }
 0x22b   : > { %v1844_v42 = vmul.f32 1.442695, %v1827_v4 }
 0x22d   : > { %2963 = vpow2.f32 %v1844_v42 }
 0x22e   : > { %v1779_v55 = vpop.permute.xlu1 %1778 }
 0x22f   : > { %v1832_v27 = vsub.f32 %v3234_v54, %v1779_v55 }
 0x231   : > { %v1854_v12 = vmul.f32 1.442695, %v1832_v27 }
 0x232   : > { %v2958_v47 = vpop.eup %2957  ;;  %v1769_v38 = vpop.permute.xlu1 %1768 }
 0x233   : > { %2965 = vpow2.f32 %v1854_v12  ;;  %v1830_v30 = vsub.f32 %v3223_v45, %v1769_v38  ;;  %1910 = vadd.xlane.f32.xlu0 %v2958_v47 }
 0x234   : > { %v2960_v6 = vpop.eup %2959 }
 0x235   : > { %v1850_v34 = vmul.f32 1.442695, %v1830_v30  ;;  %1906 = vadd.xlane.f32.xlu1 %v2960_v6 }
 0x236   : > { %v1774_v61 = vpop.permute.xlu1 %1773  ;;  %v2962_v9 = vpop.eup %2961 }
 0x237   : > { %2967 = vpow2.f32 %v1850_v34  ;;  %v1831_v37 = vsub.f32 %v3238_v58, %v1774_v61  ;;  %v2084_v52 = vpack.c.bf16 %v2962_v9, %v2958_v47 }
 0x238   : > { %v1794_v4 = vpop.permute.xlu0 %1793 }
 0x239   : > { %v1852_v42 = vmul.f32 1.442695, %v1831_v37  ;;  %1912 = vadd.xlane.f32.xlu1 %v2962_v9  ;;  %v1835_v54 = vsub.f32 %v3276_v11, %v1794_v4 }
 0x23a   : > { %v2964_v14 = vpop.eup %2963  ;;  %v1784_v55 = vpop.permute.xlu1 %1783 }
 0x23b   : > { %2969 = vpow2.f32 %v1852_v42  ;;  %v1833_v40 = vsub.f32 %v3228_v49, %v1784_v55  ;;  %1908 = vadd.xlane.f32.xlu0 %v2964_v14  ;;  %v2083_v45 = vpack.c.bf16 %v2964_v14, %v2960_v6  ;;  %v1860_v60 = vmul.f32 1.442695, %v1835_v54 }
 0x23c   : > { %v1804_v38 = vpop.permute.xlu0 %1803 }
 0x23d   : > { %v1856_v23 = vmul.f32 1.442695, %v1833_v40  ;;  %2872 = vmatprep.mubr.bf16.mxu1 %v2083_v45  ;;  %v1837_v58 = vsub.f32 %v3248_v2, %v1804_v38 }
 0x23e   : > { %2873 = vmatmul.mubr.bf16.vlgmr.msra.gmra.mxu1 %v2084_v52  ;;  %v1789_v27 = vpop.permute.xlu1 %1788 }
 0x23f   : > { %2971 = vpow2.f32 %v1856_v23  ;;  %v1834_v12 = vsub.f32 %v3244_v62, %v1789_v27  ;;  %v1864_v49 = vmul.f32 1.442695, %v1837_v58 }
 0x240   : > { %v2966_v30 = vpop.eup %2965  ;;  %v1814_v11 = vpop.permute.xlu0 %1813  ;;  %2973 = vpow2.f32 %v1860_v60 }
 0x241   : > { %v1858_v34 = vmul.f32 1.442695, %v1834_v12  ;;  %1918 = vadd.xlane.f32.xlu0 %v2966_v30  ;;  %v1839_v6 = vsub.f32 %v3294_v18, %v1814_v11 }
 0x242   : > { %v1799_v61 = vpop.permute.xlu1 %1798 }
 0x243   : > { %2975 = vpow2.f32 %v1858_v34  ;;  %v1836_v47 = vsub.f32 %v3250_v3, %v1799_v61  ;;  %v1868_v4 = vmul.f32 1.442695, %v1839_v6  ;;  %v1716_v61 = vmul.f32 1.442695, %v1699_v46 }
 0x244   : > { %v2968_v37 = vpop.eup %2967  ;;  %v1824_v9 = vpop.permute.xlu0 %1823  ;;  %2977 = vpow2.f32 %v1864_v49 }
 0x245   : > { %v1862_v2 = vmul.f32 1.442695, %v1836_v47  ;;  %1914 = vadd.xlane.f32.xlu0 %v2968_v37  ;;  %v1841_v62 = vsub.f32 %v3287_v19, %v1824_v9  ;;  %v1718_v47 = vmul.f32 1.442695, %v1700_v32 }
 0x246   : > { %v1809_v42 = vpop.permute.xlu1 %1808 }
 0x247   : > { %2979 = vpow2.f32 %v1862_v2  ;;  %v1838_v14 = vsub.f32 %v3284_v15, %v1809_v42  ;;  %v1872_v18 = vmul.f32 1.442695, %v1841_v62  ;;  %v3649_v2 = vsub.f32 %v3343_v44, %v3353_v51 }
 0x248   : > { %v2970_v54 = vpop.eup %2969  ;;  %2981 = vpow2.f32 %v1868_v4  ;;  %v3655_v51 = vsub.f32 %v3395_v13, %v3413_v28  ;;  %v3658_v13 = vsub.f32 %v3385_v7, %v3402_v16  ;;  %v3661_v16 = vsub.f32 %v3425_v50, %v3442_v8 }
 0x249   : > { %v1866_v55 = vmul.f32 1.442695, %v1838_v14  ;;  %v2085_v40 = vpack.c.bf16 %v2970_v54, %v2968_v37  ;;  %v3648_v37 = vsub.f32 %v3308_v25, %v3321_v33  ;;  %v1722_v4 = vmul.f32 1.442695, %v3649_v2 }
 0x24a   : > { %v1819_v45 = vpop.permute.xlu1 %1818  ;;  %v3652_v25 = vsub.f32 %v3365_v59, %v3382_v5  ;;  %v3653_v33 = vsub.f32 %v3375_v1, %v3393_v10  ;;  %v1734_v53 = vmul.f32 1.442695, %v3655_v51  ;;  %v1732_v1 = vmul.f32 1.442695, %v3656_v63 }
 0x24b   : > { %2983 = vpow2.f32 %v1866_v55  ;;  %v1840_v3 = vsub.f32 %v3289_v21, %v1819_v45  ;;  %2876 = vmatprep.mubr.bf16.mxu1 %v2085_v40  ;;  %v1714_v9 = vmul.f32 1.442695, %v3648_v37  ;;  %v1736_v28 = vmul.f32 1.442695, %v3658_v13  ;;  %v1874_v45 = vld [vmem:[#allocation3] sm:$0xff] }
 0x24c   : > { %v2972_v38 = vpop.eup %2971  ;;  %2985 = vpow2.f32 %v1872_v18  ;;  %v1724_v32 = vmul.f32 1.442695, %v3652_v25  ;;  %v1730_v44 = vmul.f32 1.442695, %v3653_v33  ;;  %v1876_v18 = vld [vmem:[#allocation3 + $0x10] sm:$0xff]  ;;  %v1881_v25 = vld [vmem:[#allocation3 + $0x38] sm:$0xff] }
 0x24d   : > { %v1870_v52 = vmul.f32 1.442695, %v1840_v3  ;;  %1920 = vadd.xlane.f32.xlu1 %v2972_v38  ;;  %v2086_v23 = vpack.c.bf16 %v2972_v38, %v2966_v30  ;;  %v2974_v19 = vpop.eup %2973 }
 0x24f   : > { %2987 = vpow2.f32 %v1870_v52  ;;  %2877 = vmatmul.mubr.bf16.gmra.mxu1 %v2086_v23 }
 0x250   : > { %v2976_v60 = vpop.eup %2975  ;;  %2989 = vpow2.f32 %v1716_v61 }
 0x251   : > { %1916 = vadd.xlane.f32.xlu1 %v2970_v54  ;;  %v2087_v15 = vpack.c.bf16 %v2974_v19, %v2976_v60  ;;  %v2978_v58 = vpop.eup %2977  ;;  %2991 = vpow2.f32 %v1718_v47  ;;  %v1744_v54 = vmul.f32 1.442695, %v3661_v16 }
 0x252   : > { %2993 = vpow2.f32 %v1714_v9  ;;  %v1878_v9 = vld [vmem:[#allocation3 + $0x20] sm:$0xff] }
 0x253   : > { %2880 = vmatprep.mubr.bf16.mxu1 %v2087_v15  ;;  %2995 = vpow2.f32 %v1722_v4 }
 0x254   : > { %v2980_v27 = vpop.eup %2979  ;;  %2997 = vpow2.f32 %v1720_v43 }
 0x255   : > { %1928 = vadd.xlane.f32.xlu1 %v2978_v58  ;;  %1926 = vadd.xlane.f32.xlu0 %v2980_v27  ;;  %v2088_v12 = vpack.c.bf16 %v2978_v58, %v2980_v27  ;;  %v2982_v11 = vpop.eup %2981  ;;  %2999 = vpow2.f32 %v1726_v26  ;;  %v1875_v58 = vld [vmem:[#allocation3 + $0x8] sm:$0xff] }
 0x256   : > { %3001 = vpow2.f32 %v1724_v32 }
 0x257   : > { %2881 = vmatmul.mubr.bf16.gmra.mxu1 %v2088_v12  ;;  %3003 = vpow2.f32 %v1730_v44 }
 0x258   : > { %v2984_v21 = vpop.eup %2983  ;;  %3005 = vpow2.f32 %v1728_v39 }
 0x259   : > { %1924 = vadd.xlane.f32.xlu1 %v2974_v19  ;;  %1922 = vadd.xlane.f32.xlu0 %v2976_v60  ;;  %v2089_v34 = vpack.c.bf16 %v2982_v11, %v2984_v21  ;;  %v2986_v30 = vpop.eup %2985  ;;  %3007 = vpow2.f32 %v1734_v53  ;;  %v1877_v60 = vld [vmem:[#allocation3 + $0x18] sm:$0xff] }
 0x25a   : > { %3009 = vpow2.f32 %v1732_v1 }
 0x25b   : > { %2884 = vmatprep.mubr.bf16.mxu1 %v2089_v34  ;;  %3011 = vpow2.f32 %v1738_v56 }
 0x25c   : > { %v2988_v49 = vpop.eup %2987  ;;  %3013 = vpow2.f32 %v1736_v28 }
 0x25d   : > { %1936 = vadd.xlane.f32.xlu1 %v2986_v30  ;;  %1930 = vadd.xlane.f32.xlu0 %v2984_v21  ;;  %v2090_v6 = vpack.c.bf16 %v2986_v30, %v2988_v49  ;;  %v3512_v46 = vpop.eup %2989  ;;  %3015 = vpow2.f32 %v1742_v41  ;;  %v1882_v41 = vld [vmem:[#allocation3 + $0x40] sm:$0xff] }
 0x25e   : > { %v2992_v59 = vpop.eup %2991  ;;  %3017 = vpow2.f32 %v1740_v57  ;;  %v1891_v21 = vmul.f32 %v3512_v46, %v1875_v58  ;;  %v1887_v58 = vld [vmem:[#allocation3 + $0x68] sm:$0xff] }
 0x25f   : > { %2885 = vmatmul.mubr.bf16.gmra.mxu1 %v2090_v6  ;;  %v2994_v5 = vpop.eup %2993  ;;  %3019 = vpow2.f32 %v1744_v54  ;;  %v1892_v3 = vmul.f32 %v2992_v59, %v1876_v18  ;;  %v1886_v18 = vld [vmem:[#allocation3 + $0x60] sm:$0xff] }
 0x260   : > { %v3527_v10 = vpop.eup %2995  ;;  %v1890_v23 = vmul.f32 %v2994_v5, %v1874_v45  ;;  %v1889_v45 = vld [vmem:[#allocation3 + $0x78] sm:$0xff] }
 0x261   : > { %1932 = vadd.xlane.f32.xlu1 %v2982_v11  ;;  %1934 = vadd.xlane.f32.xlu0 %v2988_v49  ;;  %v2998_v62 = vpop.eup %2997  ;;  %v1880_v49 = vld [vmem:[#allocation3 + $0x30] sm:$0xff]  ;;  %v1894_v36 = vmul.f32 %v3527_v10, %v1878_v9 }
 0x262   : > { %v3000_v42 = vpop.eup %2999  ;;  %v1893_v27 = vmul.f32 %v2998_v62, %v1877_v60 }
 0x263   : > { %v3539_v14 = vpop.eup %3001  ;;  %v1896_v47 = vmul.f32 %v3000_v42, %v1880_v49 }
 0x264   : > { %v3542_v7 = vpop.eup %3003 }
 0x265   : > { %v3006_v0 = vpop.eup %3005  ;;  %v1898_v16 = vmul.f32 %v3542_v7, %v1882_v41 }
 0x266   : > { %v3548_v31 = vpop.eup %3007  ;;  %v1897_v44 = vmul.f32 %v3006_v0, %v1881_v25 }
 0x267   : > { %v3550_v24 = vpop.eup %3009 }
 0x268   : > { %v3554_v17 = vpop.eup %3011 }
 0x269   : > { %v3556_v55 = vpop.eup %3013 }
 0x26a   : > { %v3560_v50 = vpop.eup %3015  ;;  %v1901_v13 = vmul.f32 %v3556_v55, %v1885_v48 }
 0x26b   : > { %v3562_v8 = vpop.eup %3017 }
 0x26c   : > { %v3566_v40 = vpop.eup %3019 }
 0x272   : > { %1994 = vperm.xlu1 %2932, %v3512_v46  }
 0x276   : > { %1999 = vperm.xlu1 %2932, %v2992_v59   ;;  %v1895_v59 = vmul.f32 %v3539_v14, %v1879_v29 }
 0x277   : > { %1989 = vperm.xlu0 %2931, %v2994_v5   ;;  %v1884_v5 = vld [vmem:[#allocation3 + $0x50] sm:$0xff] }
 0x27a   : > { %2009 = vperm.xlu1 %2932, %v3527_v10   ;;  %v1900_v10 = vmul.f32 %v3548_v31, %v1884_v5 }
 0x27b   : > { %2004 = vperm.xlu0 %2931, %v2998_v62  }
 0x27e   : > { %2019 = vperm.xlu1 %2932, %v3000_v42   ;;  %v1883_v42 = vld [vmem:[#allocation3 + $0x48] sm:$0xff] }
 0x27f   : > { %2014 = vperm.xlu0 %2931, %v3539_v14   ;;  %v1899_v54 = vmul.f32 %v3550_v24, %v1883_v42 }
 0x282   : > { %2029 = vperm.xlu1 %2932, %v3542_v7   ;;  %v1905_v7 = vmul.f32 %v3566_v40, %v1889_v45 }
 0x283   : > { %2024 = vperm.xlu0 %2931, %v3006_v0  }
 0x286   : > { %2039 = vperm.xlu1 %2932, %v3548_v31  }
 0x287   : > { %2034 = vperm.xlu0 %2931, %v3550_v24  }
 0x28a   : > { %2049 = vperm.xlu1 %2932, %v3554_v17  }
 0x28b   : > { %2044 = vperm.xlu0 %2931, %v3556_v55  }
 0x28e   : > { %2059 = vperm.xlu1 %2932, %v3560_v50  }
 0x28f   : > { %2054 = vperm.xlu0 %2931, %v3562_v8  }
 0x293   : > { %2064 = vperm.xlu0 %2931, %v3566_v40  }
 0x2bc   : > { %v1911_v38 = vpop.xlane.xlu0 %1910 }
 0x2bd   : > { %v1940_v52 = vadd.f32 %v1911_v38, %v1892_v3 }
 0x2be   : > { %v1907_v19 = vpop.xlane.xlu1 %1906 }
 0x2bf   : > { %1957 = vst.msk [vmem:[#allocation3 + $0x10] sm:$0xff] %vm362_vm0, %v1940_v52  ;;  %v1938_v15 = vadd.f32 %v1907_v19, %v1890_v23  ;;  %v1902_v23 = vmul.f32 %v3554_v17, %v1886_v18  ;;  %v1903_v17 = vmul.f32 %v3562_v8, %v1887_v58 }
 0x2c1   : > { %1955 = vst.msk [vmem:[#allocation3] sm:$0xff] %vm362_vm0, %v1938_v15  ;;  %v1888_v15 = vld [vmem:[#allocation3 + $0x70] sm:$0xff] }
 0x2c2   : > { %v1913_v12 = vpop.xlane.xlu1 %1912 }
 0x2c3   : > { %v1941_v11 = vadd.f32 %v1913_v12, %v1893_v27 }
 0x2c4   : > { %v1909_v34 = vpop.xlane.xlu0 %1908 }
 0x2c5   : > { %1958 = vst.msk [vmem:[#allocation3 + $0x18] sm:$0xff] %vm362_vm0, %v1941_v11  ;;  %v1939_v30 = vadd.f32 %v1909_v34, %v1891_v21  ;;  %v1904_v34 = vmul.f32 %v3560_v50, %v1888_v15 }
 0x2c6   : > { %v2289_v6 = vld [vmem:[#allocation3 + $0x10] sm:$0xff] }
 0x2c7   : > { %1956 = vst.msk [vmem:[#allocation3 + $0x8] sm:$0xff] %vm362_vm0, %v1939_v30  ;;  %3021 = vrcp.f32 %v2289_v6 }
 0x2c8   : > { %v2287_v61 = vld [vmem:[#allocation3] sm:$0xff] }
 0x2c9   : > { %3023 = vrcp.f32 %v2287_v61 }
 0x2ca   : > { %v1919_v37 = vpop.xlane.xlu0 %1918 }
 0x2cb   : > { %v1944_v2 = vadd.f32 %v1919_v37, %v1896_v47 }
 0x2cc   : > { %v2290_v4 = vld [vmem:[#allocation3 + $0x18] sm:$0xff] }
 0x2cd   : > { %1961 = vst.msk [vmem:[#allocation3 + $0x30] sm:$0xff] %vm362_vm0, %v1944_v2  ;;  %3025 = vrcp.f32 %v2290_v4 }
 0x2ce   : > { %v1915_v43 = vpop.xlane.xlu0 %1914  ;;  %v2288_v22 = vld [vmem:[#allocation3 + $0x8] sm:$0xff] }
 0x2cf   : > { %v1942_v26 = vadd.f32 %v1915_v43, %v1894_v36  ;;  %3027 = vrcp.f32 %v2288_v22 }
 0x2d1   : > { %1959 = vst.msk [vmem:[#allocation3 + $0x20] sm:$0xff] %vm362_vm0, %v1942_v26 }
 0x2d4   : > { %v3022_v32 = vpop.eup %3021  ;;  %v2293_v33 = vld [vmem:[#allocation3 + $0x30] sm:$0xff] }
 0x2d5   : > { %2347 = vperm.xlu1 %2932, %v3022_v32   ;;  %3029 = vrcp.f32 %v2293_v33 }
 0x2d6   : > { %v1921_v46 = vpop.xlane.xlu1 %1920  ;;  %v3024_v51 = vpop.eup %3023 }
 0x2d7   : > { %v1945_v39 = vadd.f32 %v1921_v46, %v1897_v44 }
 0x2d8   : > { %v2291_v53 = vld [vmem:[#allocation3 + $0x20] sm:$0xff] }
 0x2d9   : > { %1962 = vst.msk [vmem:[#allocation3 + $0x38] sm:$0xff] %vm362_vm0, %v1945_v39  ;;  %2337 = vperm.xlu1 %2932, %v3024_v51   ;;  %3031 = vrcp.f32 %v2291_v53 }
 0x2da   : > { %v3026_v63 = vpop.eup %3025  ;;  %v1917_v1 = vpop.xlane.xlu1 %1916 }
 0x2db   : > { %v1943_v56 = vadd.f32 %v1917_v1, %v1895_v59  ;;  %2352 = vperm.xlu0 %2931, %v3026_v63  }
 0x2dc   : > { %v3028_v28 = vpop.eup %3027 }
 0x2dd   : > { %1960 = vst.msk [vmem:[#allocation3 + $0x28] sm:$0xff] %vm362_vm0, %v1943_v56 }
 0x2de   : > { %v1927_v62 = vpop.xlane.xlu0 %1926  ;;  %v1929_v20 = vpop.xlane.xlu1 %1928 }
 0x2df   : > { %v1948_v35 = vadd.f32 %v1927_v62, %v1900_v10  ;;  %v1949_v57 = vadd.f32 %v1929_v20, %v1901_v13  ;;  %2342 = vperm.xlu0 %2931, %v3028_v28  }
 0x2e0   : > { %v2294_v14 = vld [vmem:[#allocation3 + $0x38] sm:$0xff] }
 0x2e1   : > { %1965 = vst.msk [vmem:[#allocation3 + $0x50] sm:$0xff] %vm362_vm0, %v1948_v35  ;;  %1966 = vst.msk [vmem:[#allocation3 + $0x58] sm:$0xff] %vm362_vm0, %v1949_v57  ;;  %3033 = vrcp.f32 %v2294_v14 }
 0x2e2   : > { %v3030_v0 = vpop.eup %3029  ;;  %v1923_v31 = vpop.xlane.xlu0 %1922 }
 0x2e3   : > { %v1925_v55 = vpop.xlane.xlu1 %1924  ;;  %v1946_v3 = vadd.f32 %v1923_v31, %v1898_v16  ;;  %2367 = vperm.xlu1 %2932, %v3030_v0  }
 0x2e4   : > { %v1947_v38 = vadd.f32 %v1925_v55, %v1899_v54  ;;  %v2292_v52 = vld [vmem:[#allocation3 + $0x28] sm:$0xff] }
 0x2e5   : > { %1963 = vst.msk [vmem:[#allocation3 + $0x40] sm:$0xff] %vm362_vm0, %v1946_v3  ;;  %3035 = vrcp.f32 %v2292_v52 }
 0x2e6   : > { %1964 = vst.msk [vmem:[#allocation3 + $0x48] sm:$0xff] %vm362_vm0, %v1947_v38  ;;  %v3032_v24 = vpop.eup %3031  ;;  %v1931_v19 = vpop.xlane.xlu0 %1930 }
 0x2e7   : > { %v1937_v60 = vpop.xlane.xlu1 %1936  ;;  %v1950_v27 = vadd.f32 %v1931_v19, %v1902_v23  ;;  %2357 = vperm.xlu1 %2932, %v3032_v24  }
 0x2e8   : > { %v1953_v12 = vadd.f32 %v1937_v60, %v1905_v7  ;;  %v2297_v11 = vld [vmem:[#allocation3 + $0x50] sm:$0xff]  ;;  %v2298_v21 = vld [vmem:[#allocation3 + $0x58] sm:$0xff] }
 0x2e9   : > { %1967 = vst.msk [vmem:[#allocation3 + $0x60] sm:$0xff] %vm362_vm0, %v1950_v27  ;;  %3037 = vrcp.f32 %v2297_v11 }
 0x2ea   : > { %1970 = vst.msk [vmem:[#allocation3 + $0x78] sm:$0xff] %vm362_vm0, %v1953_v12  ;;  %v1935_v40 = vpop.xlane.xlu0 %1934  ;;  %3039 = vrcp.f32 %v2298_v21 }
 0x2eb   : > { %v1933_v30 = vpop.xlane.xlu1 %1932  ;;  %v1952_v49 = vadd.f32 %v1935_v40, %v1904_v34 }
 0x2ec   : > { %v1951_v6 = vadd.f32 %v1933_v30, %v1903_v17  ;;  %v2295_v61 = vld [vmem:[#allocation3 + $0x40] sm:$0xff] }
 0x2ed   : > { %v2296_v47 = vld [vmem:[#allocation3 + $0x48] sm:$0xff]  ;;  %1969 = vst.msk [vmem:[#allocation3 + $0x70] sm:$0xff] %vm362_vm0, %v1952_v49  ;;  %3041 = vrcp.f32 %v2295_v61 }
 0x2ee   : > { %1968 = vst.msk [vmem:[#allocation3 + $0x68] sm:$0xff] %vm362_vm0, %v1951_v6  ;;  %v3034_v37 = vpop.eup %3033  ;;  %3043 = vrcp.f32 %v2296_v47 }
 0x2ef   : > { %2372 = vperm.xlu0 %2931, %v3034_v37   ;;  %v1995_v46 = vpop.permute.xlu1 %1994 }
 0x2f0   : > { %v2299_v9 = vld [vmem:[#allocation3 + $0x60] sm:$0xff]  ;;  %v2068_v3 = vmul.f32 0.0, %v1995_v46 }
 0x2f1   : > { %3045 = vrcp.f32 %v2299_v9  ;;  %v2302_v43 = vld [vmem:[#allocation3 + $0x78] sm:$0xff] }
 0x2f2   : > { %v3036_v50 = vpop.eup %3035  ;;  %v1990_v29 = vpop.permute.xlu0 %1989 }
 0x2f3   : > { %2362 = vperm.xlu0 %2931, %v3036_v50   ;;  %v2000_v39 = vpop.permute.xlu1 %1999  ;;  %v2067_v38 = vmul.f32 0.0, %v1990_v29 }
 0x2f4   : > { %v2301_v8 = vld [vmem:[#allocation3 + $0x70] sm:$0xff]  ;;  %v2069_v54 = vmul.f32 0.0, %v2000_v39 }
 0x2f5   : > { %v2300_v2 = vld [vmem:[#allocation3 + $0x68] sm:$0xff]  ;;  %3047 = vrcp.f32 %v2301_v8 }
 0x2f6   : > { %v3038_v4 = vpop.eup %3037  ;;  %3049 = vrcp.f32 %v2300_v2  ;;  %v2005_v51 = vpop.permute.xlu0 %2004 }
 0x2f7   : > { %v3040_v36 = vpop.eup %3039  ;;  %2387 = vperm.xlu1 %2932, %v3038_v4   ;;  %3051 = vrcp.f32 %v2302_v43  ;;  %v2010_v53 = vpop.permute.xlu1 %2009  ;;  %v2070_v0 = vmul.f32 0.0, %v2005_v51 }
 0x2f8   : > { %2392 = vperm.xlu0 %2931, %v3040_v36   ;;  %v2071_v9 = vmul.f32 0.0, %v2010_v53 }
 0x2fa   : > { %v3042_v22 = vpop.eup %3041  ;;  %v2015_v59 = vpop.permute.xlu0 %2014 }
 0x2fb   : > { %v3044_v26 = vpop.eup %3043  ;;  %2377 = vperm.xlu1 %2932, %v3042_v22   ;;  %v2020_v63 = vpop.permute.xlu1 %2019  ;;  %v2072_v50 = vmul.f32 0.0, %v2015_v59 }
 0x2fc   : > { %2382 = vperm.xlu0 %2931, %v3044_v26   ;;  %v2073_v30 = vmul.f32 0.0, %v2020_v63 }
 0x2fe   : > { %v3046_v25 = vpop.eup %3045  ;;  %v2025_v1 = vpop.permute.xlu0 %2024 }
 0x2ff   : > { %2397 = vperm.xlu1 %2932, %v3046_v25   ;;  %v3596_v5 = vpop.permute.xlu1 %2029  ;;  %v2874_v56 = vpop.f32.mrf.mxu1  ;;  %v2074_v49 = vmul.f32 0.0, %v2025_v1 }
 0x300   : > { %v2238_v55 = vadd.f32 %v2874_v56, %v2069_v54  ;;  %v2075_v59 = vmul.f32 0.0, %v3596_v5 }
 0x301   : > { %v2173_v13 = vpop.f32.mrf.mxu1 }
 0x302   : > { %v3048_v32 = vpop.eup %3047  ;;  %v3598_v48 = vpop.permute.xlu0 %2034  ;;  %v2236_v19 = vadd.f32 %v2173_v13, %v2067_v38 }
 0x303   : > { %v3050_v33 = vpop.eup %3049  ;;  %2407 = vperm.xlu1 %2932, %v3048_v32   ;;  %v2040_v10 = vpop.permute.xlu1 %2039 }
 0x304   : > { %2402 = vperm.xlu0 %2931, %v3050_v33   ;;  %v3052_v44 = vpop.eup %3051  ;;  %v2875_v20 = vpop.f32.mrf.mxu1  ;;  %v2077_v32 = vmul.f32 0.0, %v2040_v10 }
 0x305   : > { %v2239_v18 = vadd.f32 %v2875_v20, %v2070_v0  ;;  %v2076_v20 = vmul.f32 0.0, %v3598_v48 }
 0x306   : > { %v2045_v28 = vpop.permute.xlu0 %2044  ;;  %v2176_v42 = vpop.f32.mrf.mxu1 }
 0x307   : > { %v3600_v62 = vpop.permute.xlu1 %2049  ;;  %v2237_v60 = vadd.f32 %v2176_v42, %v2068_v3  ;;  %v2078_v29 = vmul.f32 0.0, %v2045_v28 }
 0x308   : > { %2412 = vperm.xlu0 %2931, %v3052_v44   ;;  %v2079_v3 = vmul.f32 0.0, %v3600_v62 }
 0x30a   : > { %v3602_v41 = vpop.permute.xlu0 %2054 }
 0x30b   : > { %v3604_v35 = vpop.permute.xlu1 %2059  ;;  %v2080_v38 = vmul.f32 0.0, %v3602_v41 }
 0x30e   : > { %v3606_v14 = vpop.permute.xlu0 %2064 }
 0x30f   : > { %v2878_v57 = vpop.f32.mrf.mxu1 }
 0x310   : > { %v2242_v61 = vadd.f32 %v2878_v57, %v2073_v30 }
 0x311   : > { %v2189_v31 = vpop.f32.mrf.mxu1 }
 0x312   : > { %v2240_v43 = vadd.f32 %v2189_v31, %v2071_v9 }
 0x313   : > { %v2879_v52 = vpop.f32.mrf.mxu1 }
 0x314   : > { %v2243_v47 = vadd.f32 %v2879_v52, %v2074_v49 }
 0x315   : > { %v2192_v27 = vpop.f32.mrf.mxu1 }
 0x316   : > { %v2241_v22 = vadd.f32 %v2192_v27, %v2072_v50 }
 0x317   : > { %v2882_v34 = vpop.f32.mrf.mxu1 }
 0x318   : > { %v2246_v39 = vadd.f32 %v2882_v34, %v2077_v32 }
 0x319   : > { %v2205_v17 = vpop.f32.mrf.mxu1 }
 0x31a   : > { %v2244_v42 = vadd.f32 %v2205_v17, %v2075_v59 }
 0x31b   : > { %v2883_v6 = vpop.f32.mrf.mxu1 }
 0x31c   : > { %v2247_v63 = vadd.f32 %v2883_v6, %v2078_v29 }
 0x31d   : > { %v2208_v8 = vpop.f32.mrf.mxu1 }
 0x31e   : > { %v2245_v57 = vadd.f32 %v2208_v8, %v2076_v20 }
 0x31f   : > { %v2886_v33 = vpop.f32.mrf.mxu1 }
 0x321   : > { %v2221_v1 = vpop.f32.mrf.mxu1 }
 0x322   : > { %v2248_v48 = vadd.f32 %v2221_v1, %v2079_v3 }
 0x323   : > { %v2887_v28 = vpop.f32.mrf.mxu1 }
 0x350   : > { %v2348_v16 = vpop.permute.xlu1 %2347 }
 0x351   : > { %v2417_v23 = vmul.f32 %v2348_v16, %v2238_v55 }
 0x354   : > { %v2338_v24 = vpop.permute.xlu1 %2337 }
 0x355   : > { %v2415_v12 = vmul.f32 %v2338_v24, %v2236_v19  ;;  %v2082_v24 = vmul.f32 0.0, %v3606_v14 }
 0x356   : > { %v2353_v45 = vpop.permute.xlu0 %2352 }
 0x357   : > { %v2418_v7 = vmul.f32 %v2353_v45, %v2239_v18  ;;  %v2224_v45 = vpop.f32.mrf.mxu1  ;;  %v2251_v27 = vadd.f32 %v2887_v28, %v2082_v24 }
 0x358   : > { %v2249_v52 = vadd.f32 %v2224_v45, %v2080_v38 }
 0x359   : > { %v2753_v15 = vpack.c.bf16 %v2418_v7, %v2417_v23  ;;  %v2081_v7 = vmul.f32 0.0, %v3604_v35 }
 0x35a   : > { %v2343_v58 = vpop.permute.xlu0 %2342 }
 0x35b   : > { %2785 = vst [vmem:[%s3613_s21 + $0x8] sm:$0xff] %v2753_v15   ;;  %v2416_v11 = vmul.f32 %v2343_v58, %v2237_v60  ;;  %v2250_v58 = vadd.f32 %v2886_v33, %v2081_v7 }
 0x35d   : > { %v2748_v21 = vpack.c.bf16 %v2416_v11, %v2415_v12 }
 0x35e   : > { %v2368_v40 = vpop.permute.xlu1 %2367 }
 0x35f   : > { %2749 = vst [vmem:[%s3613_s21] sm:$0xff] %v2748_v21   ;;  %v2421_v2 = vmul.f32 %v2368_v40, %v2242_v61 }
 0x362   : > { %v2358_v36 = vpop.permute.xlu1 %2357 }
 0x363   : > { %v2419_v44 = vmul.f32 %v2358_v36, %v2240_v43 }
 0x36a   : > { %v2373_v37 = vpop.permute.xlu0 %2372 }
 0x36b   : > { %v2422_v4 = vmul.f32 %v2373_v37, %v2243_v47 }
 0x36d   : > { %v2763_v26 = vpack.c.bf16 %v2422_v4, %v2421_v2 }
 0x36e   : > { %v2363_v25 = vpop.permute.xlu0 %2362 }
 0x36f   : > { %2787 = vst [vmem:[%s3613_s21 + $0x18] sm:$0xff] %v2763_v26   ;;  %v2420_v46 = vmul.f32 %v2363_v25, %v2241_v22 }
 0x371   : > { %v2758_v51 = vpack.c.bf16 %v2420_v46, %v2419_v44 }
 0x372   : > { %v2388_v53 = vpop.permute.xlu1 %2387 }
 0x373   : > { %2786 = vst [vmem:[%s3613_s21 + $0x10] sm:$0xff] %v2758_v51   ;;  %v2393_v56 = vpop.permute.xlu0 %2392  ;;  %v2425_v13 = vmul.f32 %v2388_v53, %v2246_v39 }
 0x374   : > { %v2426_v10 = vmul.f32 %v2393_v56, %v2247_v63 }
 0x376   : > { %v2773_v16 = vpack.c.bf16 %v2426_v10, %v2425_v13  ;;  %v2378_v54 = vpop.permute.xlu1 %2377 }
 0x377   : > { %v2383_v0 = vpop.permute.xlu0 %2382  ;;  %v2423_v31 = vmul.f32 %v2378_v54, %v2244_v42 }
 0x378   : > { %2789 = vst [vmem:[%s3613_s21 + $0x28] sm:$0xff] %v2773_v16   ;;  %v2424_v55 = vmul.f32 %v2383_v0, %v2245_v57 }
 0x37a   : > { %v2768_v18 = vpack.c.bf16 %v2424_v55, %v2423_v31  ;;  %v2398_v5 = vpop.permute.xlu1 %2397 }
 0x37b   : > { %v2427_v19 = vmul.f32 %v2398_v5, %v2248_v48 }
 0x37c   : > { %2788 = vst [vmem:[%s3613_s21 + $0x20] sm:$0xff] %v2768_v18  }
 0x37e   : > { %v2408_v15 = vpop.permute.xlu1 %2407 }
 0x37f   : > { %v2403_v23 = vpop.permute.xlu0 %2402  ;;  %v2429_v62 = vmul.f32 %v2408_v15, %v2250_v58 }
 0x380   : > { %v2428_v60 = vmul.f32 %v2403_v23, %v2249_v52 }
 0x382   : > { %v2778_v12 = vpack.c.bf16 %v2428_v60, %v2427_v19 }
 0x383   : > { %v2413_v11 = vpop.permute.xlu0 %2412 }
 0x384   : > { %2790 = vst [vmem:[%s3613_s21 + $0x30] sm:$0xff] %v2778_v12   ;;  %v2430_v21 = vmul.f32 %v2413_v11, %v2251_v27 }
 0x386   : > { %v2783_v41 = vpack.c.bf16 %v2430_v21, %v2429_v62 }
 0x388   : > { %2791 = vst [vmem:[%s3613_s21 + $0x38] sm:$0xff] %v2783_v41  }
 0x389 PF: > { %s13_s16 = sadd.s32 1, %s3091_s16   ;;  %s3662_s12 = smov %s3083_s14 }
 0x38a   : > { %p10_p9 = scmp.ge.s32.totalorder %s13_s16, 6   ;;  %s3663_s13 = smov %s3087_s15 }
 0x38b   : > { %s3664_s14 = smov %s3667_s17  ;;  %s3665_s15 = smov %s3671_s18 }
 0x38c   :  { %12 = sbr.rel (!%p10_p9) target bundleno = 3 (0x3), region = 84 }

// kernel: dao_mla_forward.9
= control target key start
LH: loop header
LB: loop body
LE: loop exit
PB: predicated region body
PF: predicated region fallthrough
CT: control target
= control target key end

     0   :  { %7 = vsyncpa [#allocation4], 0  ;;  %s1412_s0 = inlined_call_operand.vmem [shape: bf16[2,256,128], index: 0, kind: input, shape index: {}]   ;;  %s1413_s1 = inlined_call_operand.vmem [shape: bf16[256,256], index: 1, kind: input, shape index: {}]   ;;  %s1414_s2 = inlined_call_operand.hbm [shape: bf16[256,256], index: 2, kind: output, shape index: {}]  }
   0x1   :  { %9 = vsyncpa [#allocation4 + $0x1], 0  ;;  %s1212_s9 = smov 0   ;;  %s1214_s10 = smov 0  }
   0x2   :  { %s1216_s11 = smov 0   ;;  %s1218_s12 = smov 0  }
   0x3   :  { %s1220_s13 = smov 0   ;;  %s1222_s14 = smov 0  }
   0x4   :  { %s1224_s15 = smov 0   ;;  %s1226_s16 = smov 0  }
   0x5 LB: > { %s896_s17 = sadd.s32 4294967295, %s1190_s16   ;;  %s897_s18 = sadd.s32 4294967294, %s1190_s16   ;;  %s1190_s16 = sphi %s1226_s16, %s15_s16   ;;  %s1186_s15 = sphi %s1224_s15, %s1425_s15   ;;  %s1182_s14 = sphi %s1222_s14, %s1424_s14   ;;  %s1178_s13 = sphi %s1220_s13, %s1423_s13   ;;  %s1174_s12 = sphi %s1218_s12, %s1422_s12   ;;  %s1170_s11 = sphi %s1216_s11, %s1421_s11   ;;  %s1166_s10 = sphi %s1214_s10, %s1420_s10   ;;  %s1162_s9 = sphi %s1212_s9, %s1419_s9  }
   0x6   : > { %s27_s19 = sadd.s32 1, %s1182_s14  ;;  %s34_s20 = sadd.s32 1, %s1186_s15 }
   0x7   : > { %p28_p0 = scmp.ge.s32.totalorder %s27_s19, 2  ;;  %p109_p1 = scmp.ne.s32.totalorder %s1170_s11, %s1166_s10 }
   0x8   : > { %p110_p2 = scmp.eq.s32.totalorder %s896_s17, 3  ;;  %p115_p4 = scmp.ne.s32.totalorder %s1166_s10, %s1162_s9 }
   0x9   : > { %s1427_s19 = smov (%p28_p0, %s27_s19), 0  ;;  %s1429_s20 = smov (!%p28_p0, %s34_s20), %s1186_s15 }
   0xa   : > { %p1261_p3 = por %p110_p2, %p109_p1  ;;  %p36_p5 = scmp.ge.s32.totalorder %s1429_s20, 2 }
   0xb   : > { %p116_p6 = scmp.eq.s32.totalorder %s897_s18, 3  ;;  %p900_p7 = scmp.ge.s32.totalorder %s1190_s16, 1 }
   0xc   : > { %p162_p8 = scmp.lt.s32.totalorder %s1190_s16, 5  ;;  %s1431_s20 = smov (%p36_p5, %s1429_s20), 0 }
   0xd   : > { %p1271_p9 = por %p116_p6, %p115_p4  ;;  %s94_s23 = ssub.s32 %s1186_s15, %s1431_s20 }
   0xe   : > { %p163_p10 = pnand %p900_p7, %p162_p8  ;;  %s99_s24 = sadd.s32 1, %s1170_s11 }
   0xf   : > { %p97_p11 = scmp.eq.s32.totalorder %s94_s23, 0  ;;  %s1415_s26 = sand.u32 (!%p163_p10), 1, %s1166_s10  }
  0x10   : > { %166 = sbr.rel (%p163_p10) target bundleno = 349 (0x15d), region = 28  ;;  %s902_s27 = sshll.u32 (!%p163_p10), %s1178_s13, 4 }
  0x11   : > { %s1279_s25 = scalar_select %p97_p11, %s1170_s11, %s99_s24  }
  0x12   : > { %s901_s28 = sshll.u32 (!%p163_p10), %s1415_s26, 7  ;;  %p199_p12 = scmp.lt.s32.totalorder (!%p163_p10), %s1174_s12, 1 }
  0x13   : > { %p201_p13 = scmp.lt.s32.totalorder (!%p163_p10), %s902_s27, 31  ;;  %s905_s3 = sshll.u32 (!%p163_p10), %s1174_s12, 4 }
  0x14   : > { %p210_p0 = scmp.lt.s32.totalorder (!%p163_p10), %s905_s3, 31  ;;  %s1298_s26 = scalar_lea.vmem (!%p163_p10), [#allocation3], %s901_s28 }
  0x15   : > { %s200_s29 = scalar_select %p199_p12, %s1174_s12, 1 }
  0x16   : > { %s1433_s27 = smov (!%p201_p13, %s902_s27), 31  ;;  %s1435_s3 = smov (!%p210_p0, %s905_s3), 31 }
  0x17   : > { %s903_s30 = sshll.u32 %s200_s29, 5  ;;  %s956_s17 = sshll.u32 %s1435_s3, 3 }
  0x18   : > { %s204_s4 = sadd.s32 %s903_s30, %s1433_s27  ;;  %s1296_s24 = scalar_lea.vmem %s1413_s1, %s956_s17 }
  0x19   : > { %s904_s5 = sshll.u32 %s204_s4, 2  ;;  %p908_p1 = scmp.ne.s32.totalorder %s1174_s12, 0 }
  0x1a   : > { %s1291_s8 = scalar_lea.vmem %s1412_s0, %s904_s5 }
  0x1b   : > { %226 = sbr.rel (%p908_p1) target bundleno = 49 (0x31), region = 32 }
  0x20   : > { %v1192_v0 = vmov 0.0  }
  0x21   : > { %227 = vst [vmem:[#allocation2 + $0xb0] sm:$0xff] %v1192_v0  ;;  %228 = vst [vmem:[#allocation2] sm:$0xff] %v1192_v0 }
  0x22   : > { %229 = vst [vmem:[#allocation2 + $0xd8] sm:$0xff] %v1192_v0  ;;  %230 = vst [vmem:[#allocation2 + $0x18] sm:$0xff] %v1192_v0 }
  0x23   : > { %231 = vst [vmem:[#allocation2 + $0x50] sm:$0xff] %v1192_v0  ;;  %232 = vst [vmem:[#allocation2 + $0x68] sm:$0xff] %v1192_v0 }
  0x24   : > { %233 = vst [vmem:[#allocation2 + $0x30] sm:$0xff] %v1192_v0  ;;  %234 = vst [vmem:[#allocation2 + $0x48] sm:$0xff] %v1192_v0 }
  0x25   : > { %235 = vst [vmem:[#allocation2 + $0x80] sm:$0xff] %v1192_v0  ;;  %236 = vst [vmem:[#allocation2 + $0x88] sm:$0xff] %v1192_v0 }
  0x26   : > { %237 = vst [vmem:[#allocation2 + $0xe8] sm:$0xff] %v1192_v0  ;;  %238 = vst [vmem:[#allocation2 + $0xb8] sm:$0xff] %v1192_v0 }
  0x27   : > { %239 = vst [vmem:[#allocation2 + $0x60] sm:$0xff] %v1192_v0  ;;  %240 = vst [vmem:[#allocation2 + $0xf0] sm:$0xff] %v1192_v0 }
  0x28   : > { %241 = vst [vmem:[#allocation2 + $0x8] sm:$0xff] %v1192_v0  ;;  %242 = vst [vmem:[#allocation2 + $0x78] sm:$0xff] %v1192_v0 }
  0x29   : > { %243 = vst [vmem:[#allocation2 + $0x38] sm:$0xff] %v1192_v0  ;;  %244 = vst [vmem:[#allocation2 + $0x58] sm:$0xff] %v1192_v0 }
  0x2a   : > { %245 = vst [vmem:[#allocation2 + $0x40] sm:$0xff] %v1192_v0  ;;  %246 = vst [vmem:[#allocation2 + $0xc8] sm:$0xff] %v1192_v0 }
  0x2b   : > { %247 = vst [vmem:[#allocation2 + $0xe0] sm:$0xff] %v1192_v0  ;;  %248 = vst [vmem:[#allocation2 + $0x90] sm:$0xff] %v1192_v0 }
  0x2c   : > { %249 = vst [vmem:[#allocation2 + $0x70] sm:$0xff] %v1192_v0  ;;  %250 = vst [vmem:[#allocation2 + $0xc0] sm:$0xff] %v1192_v0 }
  0x2d   : > { %251 = vst [vmem:[#allocation2 + $0xa8] sm:$0xff] %v1192_v0  ;;  %252 = vst [vmem:[#allocation2 + $0xd0] sm:$0xff] %v1192_v0 }
  0x2e   : > { %253 = vst [vmem:[#allocation2 + $0x10] sm:$0xff] %v1192_v0  ;;  %254 = vst [vmem:[#allocation2 + $0x28] sm:$0xff] %v1192_v0 }
  0x2f   : > { %255 = vst [vmem:[#allocation2 + $0xa0] sm:$0xff] %v1192_v0  ;;  %256 = vst [vmem:[#allocation2 + $0xf8] sm:$0xff] %v1192_v0 }
  0x30   : > { %257 = vst [vmem:[#allocation2 + $0x20] sm:$0xff] %v1192_v0  ;;  %258 = vst [vmem:[#allocation2 + $0x98] sm:$0xff] %v1192_v0 }
  0x31 PF: > { %v1066_v1 = vld [vmem:[%s1296_s24 + $0x74] ss:$8 sps:$4 sm:$0xff]   ;;  %v1068_v2 = vld [vmem:[%s1296_s24 + $0x70] ss:$8 sps:$4 sm:$0xff]   ;;  %v1193_v3 = vmov 0   ;;  %v1090_v18 = vld [vmem:[%s1291_s8] sm:$0xff]  }
  0x32   : > { %483 = vmatprep.mubr.bf16.mxu0 %v1193_v3  ;;  %523 = vmatprep.mubr.bf16.mxu1 %v1193_v3  ;;  %v1069_v4 = vld [vmem:[%s1296_s24 + $0x64] ss:$8 sps:$4 sm:$0xff]   ;;  %v1071_v5 = vld [vmem:[%s1296_s24 + $0x60] ss:$8 sps:$4 sm:$0xff]   ;;  %v1072_v6 = vld [vmem:[%s1296_s24 + $0x54] ss:$8 sps:$4 sm:$0xff]  }
  0x33   : > { %451 = vmatprep.subr.bf16.mxu0 %v1066_v1  ;;  %975 = vmatprep.subr.bf16.mxu1 %v1066_v1  ;;  %v1074_v7 = vld [vmem:[%s1296_s24 + $0x50] ss:$8 sps:$4 sm:$0xff]   ;;  %v1075_v8 = vld [vmem:[%s1296_s24 + $0x44] ss:$8 sps:$4 sm:$0xff]   ;;  %v1077_v9 = vld [vmem:[%s1296_s24 + $0x40] ss:$8 sps:$4 sm:$0xff]  }
  0x34   : > { %452 = vmatpush1.bf16.msra.mxu0 %v1068_v2  ;;  %983 = vmatpush1.bf16.msra.mxu1 %v1068_v2  ;;  %v1078_v10 = vld [vmem:[%s1296_s24 + $0x34] ss:$8 sps:$4 sm:$0xff]   ;;  %v1080_v11 = vld [vmem:[%s1296_s24 + $0x30] ss:$8 sps:$4 sm:$0xff]   ;;  %v1081_v12 = vld [vmem:[%s1296_s24 + $0x24] ss:$8 sps:$4 sm:$0xff]  }
  0x35   : > { %453 = vmatprep.subr.bf16.mxu0 %v1069_v4  ;;  %976 = vmatprep.subr.bf16.mxu1 %v1069_v4  ;;  %v1083_v13 = vld [vmem:[%s1296_s24 + $0x20] ss:$8 sps:$4 sm:$0xff]   ;;  %v1084_v14 = vld [vmem:[%s1296_s24 + $0x14] ss:$8 sps:$4 sm:$0xff]   ;;  %v1086_v15 = vld [vmem:[%s1296_s24 + $0x10] ss:$8 sps:$4 sm:$0xff]  }
  0x36   : > { %v1087_v16 = vld [vmem:[%s1296_s24 + $0x4] ss:$8 sps:$4 sm:$0xff]   ;;  %v1089_v17 = vld [vmem:[%s1296_s24] ss:$8 sps:$4 sm:$0xff]   ;;  %v1094_v22 = vld [vmem:[%s1291_s8 + $0x10] sm:$0xff]   ;;  %p933_p2 = scmp.ne.s32.totalorder %s1174_s12, 1 }
  0x37   : > { %v1091_v19 = vld [vmem:[%s1291_s8 + $0x20] sm:$0xff]   ;;  %v1092_v20 = vld [vmem:[%s1291_s8 + $0x8] sm:$0xff]   ;;  %v1095_v23 = vld [vmem:[%s1291_s8 + $0x30] sm:$0xff]  }
  0x38   : > { %454 = vmatpush1.bf16.msra.mxu0 %v1071_v5  ;;  %984 = vmatpush1.bf16.msra.mxu1 %v1071_v5  ;;  %v1093_v21 = vld [vmem:[%s1291_s8 + $0x28] sm:$0xff]   ;;  %v1096_v24 = vld [vmem:[%s1291_s8 + $0x18] sm:$0xff]   ;;  %v259_v26 = vld [vmem:[#allocation2 + $0xb0] sm:$0xff] }
  0x39   : > { %455 = vmatprep.subr.bf16.mxu0 %v1072_v6  ;;  %977 = vmatprep.subr.bf16.mxu1 %v1072_v6  ;;  %v1097_v25 = vld [vmem:[%s1291_s8 + $0x38] sm:$0xff]   ;;  %v260_v30 = vld [vmem:[#allocation2] sm:$0xff]  ;;  %v278_v43 = vld [vmem:[#allocation2 + $0xc8] sm:$0xff] }
  0x3a   : > { %v275_v27 = vld [vmem:[#allocation2 + $0x38] sm:$0xff]  ;;  %v277_v37 = vld [vmem:[#allocation2 + $0x40] sm:$0xff]  ;;  %v263_v48 = vld [vmem:[#allocation2 + $0x50] sm:$0xff] }
  0x3b   : > { %v276_v31 = vld [vmem:[#allocation2 + $0x58] sm:$0xff]  ;;  %v279_v49 = vld [vmem:[#allocation2 + $0xe0] sm:$0xff]  ;;  %v264_v54 = vld [vmem:[#allocation2 + $0x68] sm:$0xff] }
  0x3c   : > { %456 = vmatpush1.bf16.msra.mxu0 %v1074_v7  ;;  %985 = vmatpush1.bf16.msra.mxu1 %v1074_v7  ;;  %v261_v36 = vld [vmem:[#allocation2 + $0xd8] sm:$0xff]  ;;  %v280_v55 = vld [vmem:[#allocation2 + $0x90] sm:$0xff]  ;;  %v266_v2 = vld [vmem:[#allocation2 + $0x48] sm:$0xff] }
  0x3d   : > { %457 = vmatprep.subr.bf16.mxu0 %v1075_v8  ;;  %978 = vmatprep.subr.bf16.mxu1 %v1075_v8  ;;  %v262_v42 = vld [vmem:[#allocation2 + $0x18] sm:$0xff]  ;;  %v265_v60 = vld [vmem:[#allocation2 + $0x30] sm:$0xff]  ;;  %v267_v8 = vld [vmem:[#allocation2 + $0x80] sm:$0xff] }
  0x3e   : > { %v281_v61 = vld [vmem:[#allocation2 + $0x70] sm:$0xff] }
  0x40   : > { %458 = vmatpush1.bf16.msra.mxu0 %v1077_v9  ;;  %986 = vmatpush1.bf16.msra.mxu1 %v1077_v9  ;;  %v283_v9 = vld [vmem:[#allocation2 + $0xa8] sm:$0xff] }
  0x41   : > { %459 = vmatprep.subr.bf16.mxu0 %v1078_v10  ;;  %979 = vmatprep.subr.bf16.mxu1 %v1078_v10 }
  0x44   : > { %460 = vmatpush1.bf16.msra.mxu0 %v1080_v11  ;;  %987 = vmatpush1.bf16.msra.mxu1 %v1080_v11 }
  0x45   : > { %461 = vmatprep.subr.bf16.mxu0 %v1081_v12  ;;  %980 = vmatprep.subr.bf16.mxu1 %v1081_v12 }
  0x48   : > { %462 = vmatpush1.bf16.msra.mxu0 %v1083_v13  ;;  %988 = vmatpush1.bf16.msra.mxu1 %v1083_v13 }
  0x49   : > { %463 = vmatprep.subr.bf16.mxu0 %v1084_v14  ;;  %981 = vmatprep.subr.bf16.mxu1 %v1084_v14  ;;  %v268_v14 = vld [vmem:[#allocation2 + $0x88] sm:$0xff] }
  0x4c   : > { %464 = vmatpush1.bf16.msra.mxu0 %v1086_v15  ;;  %989 = vmatpush1.bf16.msra.mxu1 %v1086_v15  ;;  %v284_v15 = vld [vmem:[#allocation2 + $0xd0] sm:$0xff] }
  0x4d   : > { %465 = vmatprep.subr.bf16.mxu0 %v1087_v16  ;;  %982 = vmatprep.subr.bf16.mxu1 %v1087_v16 }
  0x50   : > { %466 = vmatpush1.bf16.msra.mxu0 %v1089_v17  ;;  %990 = vmatpush1.bf16.msra.mxu1 %v1089_v17 }
  0x53   : > { %484 = vmatmul.mubr.bf16.vlgmr.msra.gmra.mxu0 %v1090_v18  ;;  %524 = vmatmul.mubr.bf16.vlgmr.msra.gmra.mxu1 %v1091_v19 }
  0x54   : > { %493 = vmatprep.mubr.bf16.mxu0 %v1193_v3  ;;  %533 = vmatprep.mubr.bf16.mxu1 %v1193_v3 }
  0x5b   : > { %494 = vmatmul.mubr.bf16.gmra.mxu0 %v1092_v20  ;;  %534 = vmatmul.mubr.bf16.gmra.mxu1 %v1093_v21  ;;  %v269_v20 = vld [vmem:[#allocation2 + $0xe8] sm:$0xff]  ;;  %v285_v21 = vld [vmem:[#allocation2 + $0x10] sm:$0xff] }
  0x5c   : > { %503 = vmatprep.mubr.bf16.mxu0 %v1193_v3  ;;  %543 = vmatprep.mubr.bf16.mxu1 %v1193_v3 }
  0x63   : > { %504 = vmatmul.mubr.bf16.gmra.mxu0 %v1094_v22  ;;  %544 = vmatmul.mubr.bf16.gmra.mxu1 %v1095_v23 }
  0x64   : > { %513 = vmatprep.mubr.bf16.mxu0 %v1193_v3  ;;  %553 = vmatprep.mubr.bf16.mxu1 %v1193_v3  ;;  %v282_v3 = vld [vmem:[#allocation2 + $0xc0] sm:$0xff] }
  0x6b   : > { %514 = vmatmul.mubr.bf16.gmra.mxu0 %v1096_v24  ;;  %554 = vmatmul.mubr.bf16.gmra.mxu1 %v1097_v25 }
 0x113   : > { %v485_v28 = vpop.f32.mrf.mxu0  ;;  %v525_v29 = vpop.f32.mrf.mxu1 }
 0x114   : > { %v564_v32 = vadd.f32 %v485_v28, %v259_v26  ;;  %v580_v33 = vadd.f32 %v525_v29, %v275_v27  ;;  %v270_v26 = vld [vmem:[#allocation2 + $0xb8] sm:$0xff]  ;;  %v286_v27 = vld [vmem:[#allocation2 + $0x28] sm:$0xff] }
 0x115   : > { %v487_v34 = vpop.f32.mrf.mxu0  ;;  %v527_v35 = vpop.f32.mrf.mxu1 }
 0x116   : > { %596 = vst [vmem:[#allocation2 + $0xb0] sm:$0xff] %v564_v32  ;;  %612 = vst [vmem:[#allocation2 + $0x38] sm:$0xff] %v580_v33  ;;  %v565_v38 = vadd.f32 %v487_v34, %v260_v30  ;;  %v581_v39 = vadd.f32 %v527_v35, %v276_v31  ;;  %v271_v32 = vld [vmem:[#allocation2 + $0x60] sm:$0xff] }
 0x117   : > { %v489_v40 = vpop.f32.mrf.mxu0  ;;  %v529_v41 = vpop.f32.mrf.mxu1  ;;  %v287_v33 = vld [vmem:[#allocation2 + $0xa0] sm:$0xff] }
 0x118   : > { %597 = vst [vmem:[#allocation2] sm:$0xff] %v565_v38  ;;  %613 = vst [vmem:[#allocation2 + $0x58] sm:$0xff] %v581_v39  ;;  %v566_v44 = vadd.f32 %v489_v40, %v261_v36  ;;  %v582_v45 = vadd.f32 %v529_v41, %v277_v37  ;;  %v272_v38 = vld [vmem:[#allocation2 + $0xf0] sm:$0xff]  ;;  %v288_v39 = vld [vmem:[#allocation2 + $0xf8] sm:$0xff] }
 0x119   : > { %v491_v46 = vpop.f32.mrf.mxu0  ;;  %v531_v47 = vpop.f32.mrf.mxu1 }
 0x11a   : > { %598 = vst [vmem:[#allocation2 + $0xd8] sm:$0xff] %v566_v44  ;;  %614 = vst [vmem:[#allocation2 + $0x40] sm:$0xff] %v582_v45  ;;  %v567_v50 = vadd.f32 %v491_v46, %v262_v42  ;;  %v583_v51 = vadd.f32 %v531_v47, %v278_v43  ;;  %v273_v44 = vld [vmem:[#allocation2 + $0x8] sm:$0xff]  ;;  %v289_v45 = vld [vmem:[#allocation2 + $0x20] sm:$0xff] }
 0x11b   : > { %v495_v52 = vpop.f32.mrf.mxu0  ;;  %v535_v53 = vpop.f32.mrf.mxu1 }
 0x11c   : > { %599 = vst [vmem:[#allocation2 + $0x18] sm:$0xff] %v567_v50  ;;  %615 = vst [vmem:[#allocation2 + $0xc8] sm:$0xff] %v583_v51  ;;  %v568_v56 = vadd.f32 %v495_v52, %v263_v48  ;;  %v584_v57 = vadd.f32 %v535_v53, %v279_v49  ;;  %v274_v50 = vld [vmem:[#allocation2 + $0x78] sm:$0xff] }
 0x11d   : > { %v497_v58 = vpop.f32.mrf.mxu0  ;;  %v537_v59 = vpop.f32.mrf.mxu1  ;;  %v290_v51 = vld [vmem:[#allocation2 + $0x98] sm:$0xff] }
 0x11e   : > { %600 = vst [vmem:[#allocation2 + $0x50] sm:$0xff] %v568_v56  ;;  %616 = vst [vmem:[#allocation2 + $0xe0] sm:$0xff] %v584_v57  ;;  %v569_v62 = vadd.f32 %v497_v58, %v264_v54  ;;  %v585_v63 = vadd.f32 %v537_v59, %v280_v55 }
 0x11f   : > { %v499_v0 = vpop.f32.mrf.mxu0  ;;  %v539_v1 = vpop.f32.mrf.mxu1 }
 0x120   : > { %601 = vst [vmem:[#allocation2 + $0x68] sm:$0xff] %v569_v62  ;;  %617 = vst [vmem:[#allocation2 + $0x90] sm:$0xff] %v585_v63  ;;  %v570_v4 = vadd.f32 %v499_v0, %v265_v60  ;;  %v586_v5 = vadd.f32 %v539_v1, %v281_v61 }
 0x121   : > { %v501_v6 = vpop.f32.mrf.mxu0  ;;  %v541_v7 = vpop.f32.mrf.mxu1 }
 0x122   : > { %602 = vst [vmem:[#allocation2 + $0x30] sm:$0xff] %v570_v4  ;;  %618 = vst [vmem:[#allocation2 + $0x70] sm:$0xff] %v586_v5  ;;  %v571_v10 = vadd.f32 %v501_v6, %v266_v2  ;;  %v587_v11 = vadd.f32 %v541_v7, %v282_v3 }
 0x123   : > { %v505_v12 = vpop.f32.mrf.mxu0  ;;  %v545_v13 = vpop.f32.mrf.mxu1 }
 0x124   : > { %603 = vst [vmem:[#allocation2 + $0x48] sm:$0xff] %v571_v10  ;;  %619 = vst [vmem:[#allocation2 + $0xc0] sm:$0xff] %v587_v11  ;;  %v572_v16 = vadd.f32 %v505_v12, %v267_v8  ;;  %v588_v17 = vadd.f32 %v545_v13, %v283_v9 }
 0x125   : > { %v507_v18 = vpop.f32.mrf.mxu0  ;;  %v547_v19 = vpop.f32.mrf.mxu1 }
 0x126   : > { %604 = vst [vmem:[#allocation2 + $0x80] sm:$0xff] %v572_v16  ;;  %620 = vst [vmem:[#allocation2 + $0xa8] sm:$0xff] %v588_v17  ;;  %v573_v22 = vadd.f32 %v507_v18, %v268_v14  ;;  %v589_v23 = vadd.f32 %v547_v19, %v284_v15 }
 0x127   : > { %v509_v24 = vpop.f32.mrf.mxu0  ;;  %v549_v25 = vpop.f32.mrf.mxu1 }
 0x128   : > { %605 = vst [vmem:[#allocation2 + $0x88] sm:$0xff] %v573_v22  ;;  %621 = vst [vmem:[#allocation2 + $0xd0] sm:$0xff] %v589_v23  ;;  %v574_v28 = vadd.f32 %v509_v24, %v269_v20  ;;  %v590_v29 = vadd.f32 %v549_v25, %v285_v21 }
 0x129   : > { %v511_v30 = vpop.f32.mrf.mxu0  ;;  %v551_v31 = vpop.f32.mrf.mxu1 }
 0x12a   : > { %606 = vst [vmem:[#allocation2 + $0xe8] sm:$0xff] %v574_v28  ;;  %622 = vst [vmem:[#allocation2 + $0x10] sm:$0xff] %v590_v29  ;;  %v575_v34 = vadd.f32 %v511_v30, %v270_v26  ;;  %v591_v35 = vadd.f32 %v551_v31, %v286_v27 }
 0x12b   : > { %v515_v36 = vpop.f32.mrf.mxu0  ;;  %v555_v37 = vpop.f32.mrf.mxu1 }
 0x12c   : > { %607 = vst [vmem:[#allocation2 + $0xb8] sm:$0xff] %v575_v34  ;;  %623 = vst [vmem:[#allocation2 + $0x28] sm:$0xff] %v591_v35  ;;  %v576_v40 = vadd.f32 %v515_v36, %v271_v32  ;;  %v592_v41 = vadd.f32 %v555_v37, %v287_v33 }
 0x12d   : > { %v517_v42 = vpop.f32.mrf.mxu0  ;;  %v557_v43 = vpop.f32.mrf.mxu1 }
 0x12e   : > { %608 = vst [vmem:[#allocation2 + $0x60] sm:$0xff] %v576_v40  ;;  %624 = vst [vmem:[#allocation2 + $0xa0] sm:$0xff] %v592_v41  ;;  %v577_v46 = vadd.f32 %v517_v42, %v272_v38  ;;  %v593_v47 = vadd.f32 %v557_v43, %v288_v39 }
 0x12f   : > { %v519_v48 = vpop.f32.mrf.mxu0  ;;  %v559_v49 = vpop.f32.mrf.mxu1 }
 0x130   : > { %609 = vst [vmem:[#allocation2 + $0xf0] sm:$0xff] %v577_v46  ;;  %625 = vst [vmem:[#allocation2 + $0xf8] sm:$0xff] %v593_v47  ;;  %v578_v52 = vadd.f32 %v519_v48, %v273_v44  ;;  %v594_v53 = vadd.f32 %v559_v49, %v289_v45  ;;  %631 = sbr.rel (%p933_p2) target bundleno = 324 (0x144), region = 36 }
 0x131   : > { %v521_v54 = vpop.f32.mrf.mxu0  ;;  %v561_v55 = vpop.f32.mrf.mxu1 }
 0x132   : > { %610 = vst [vmem:[#allocation2 + $0x8] sm:$0xff] %v578_v52  ;;  %626 = vst [vmem:[#allocation2 + $0x20] sm:$0xff] %v594_v53  ;;  %v579_v56 = vadd.f32 %v521_v54, %v274_v50  ;;  %v595_v57 = vadd.f32 %v561_v55, %v290_v51 }
 0x134   : > { %611 = vst [vmem:[#allocation2 + $0x78] sm:$0xff] %v579_v56  ;;  %627 = vst [vmem:[#allocation2 + $0x98] sm:$0xff] %v595_v57 }
 0x135   : > { %v632_v58 = vld [vmem:[#allocation2 + $0xb0] sm:$0xff]  ;;  %v633_v59 = vld [vmem:[#allocation2] sm:$0xff]  ;;  %v634_v60 = vld [vmem:[#allocation2 + $0xd8] sm:$0xff] }
 0x136   : > { %v957_v61 = vpack.c.bf16 %v633_v59, %v632_v58  ;;  %v635_v62 = vld [vmem:[#allocation2 + $0x18] sm:$0xff]  ;;  %v636_v63 = vld [vmem:[#allocation2 + $0x50] sm:$0xff]  ;;  %v637_v0 = vld [vmem:[#allocation2 + $0x68] sm:$0xff] }
 0x137   : > { %v958_v1 = vpack.c.bf16 %v635_v62, %v634_v60  ;;  %v959_v2 = vpack.c.bf16 %v637_v0, %v636_v63  ;;  %v638_v3 = vld [vmem:[#allocation2 + $0x30] sm:$0xff]  ;;  %v639_v4 = vld [vmem:[#allocation2 + $0x48] sm:$0xff]  ;;  %v640_v5 = vld [vmem:[#allocation2 + $0x80] sm:$0xff] }
 0x138   : > { %760 = vst [vmem:[%s1298_s26] sm:$0xff] %v957_v61  ;;  %v960_v6 = vpack.c.bf16 %v639_v4, %v638_v3  ;;  %v641_v7 = vld [vmem:[#allocation2 + $0x88] sm:$0xff]  ;;  %v643_v9 = vld [vmem:[#allocation2 + $0xb8] sm:$0xff]  ;;  %v644_v12 = vld [vmem:[#allocation2 + $0x60] sm:$0xff] }
 0x139   : > { %v642_v8 = vld [vmem:[#allocation2 + $0xe8] sm:$0xff]  ;;  %761 = vst [vmem:[%s1298_s26 + $0x8] sm:$0xff] %v958_v1  ;;  %762 = vst [vmem:[%s1298_s26 + $0x10] sm:$0xff] %v959_v2  ;;  %v961_v10 = vpack.c.bf16 %v641_v7, %v640_v5  ;;  %v645_v13 = vld [vmem:[#allocation2 + $0xf0] sm:$0xff] }
 0x13a   : > { %v962_v11 = vpack.c.bf16 %v643_v9, %v642_v8  ;;  %v646_v14 = vld [vmem:[#allocation2 + $0x8] sm:$0xff]  ;;  %763 = vst [vmem:[%s1298_s26 + $0x18] sm:$0xff] %v960_v6  ;;  %v963_v15 = vpack.c.bf16 %v645_v13, %v644_v12  ;;  %v648_v17 = vld [vmem:[#allocation2 + $0x38] sm:$0xff]  ;;  %v650_v21 = vld [vmem:[#allocation2 + $0x40] sm:$0xff] }
 0x13b   : > { %v647_v16 = vld [vmem:[#allocation2 + $0x78] sm:$0xff]  ;;  %764 = vst [vmem:[%s1298_s26 + $0x20] sm:$0xff] %v961_v10  ;;  %v651_v22 = vld [vmem:[#allocation2 + $0xc8] sm:$0xff]  ;;  %v652_v23 = vld [vmem:[#allocation2 + $0xe0] sm:$0xff] }
 0x13c   : > { %v649_v18 = vld [vmem:[#allocation2 + $0x58] sm:$0xff]  ;;  %765 = vst [vmem:[%s1298_s26 + $0x28] sm:$0xff] %v962_v11  ;;  %v964_v19 = vpack.c.bf16 %v647_v16, %v646_v14  ;;  %766 = vst [vmem:[%s1298_s26 + $0x30] sm:$0xff] %v963_v15  ;;  %v966_v24 = vpack.c.bf16 %v651_v22, %v650_v21  ;;  %v653_v25 = vld [vmem:[#allocation2 + $0x90] sm:$0xff] }
 0x13d   : > { %v965_v20 = vpack.c.bf16 %v649_v18, %v648_v17  ;;  %v654_v26 = vld [vmem:[#allocation2 + $0x70] sm:$0xff]  ;;  %v655_v27 = vld [vmem:[#allocation2 + $0xc0] sm:$0xff]  ;;  %v967_v28 = vpack.c.bf16 %v653_v25, %v652_v23  ;;  %v656_v30 = vld [vmem:[#allocation2 + $0xa8] sm:$0xff] }
 0x13e   : > { %767 = vst [vmem:[%s1298_s26 + $0x38] sm:$0xff] %v964_v19  ;;  %v968_v29 = vpack.c.bf16 %v655_v27, %v654_v26  ;;  %v657_v31 = vld [vmem:[#allocation2 + $0xd0] sm:$0xff]  ;;  %769 = vst [vmem:[%s1298_s26 + $0x48] sm:$0xff] %v966_v24  ;;  %v659_v34 = vld [vmem:[#allocation2 + $0x28] sm:$0xff] }
 0x13f   : > { %768 = vst [vmem:[%s1298_s26 + $0x40] sm:$0xff] %v965_v20  ;;  %v658_v32 = vld [vmem:[#allocation2 + $0x10] sm:$0xff]  ;;  %v969_v33 = vpack.c.bf16 %v657_v31, %v656_v30  ;;  %v660_v35 = vld [vmem:[#allocation2 + $0xa0] sm:$0xff]  ;;  %v661_v36 = vld [vmem:[#allocation2 + $0xf8] sm:$0xff] }
 0x140   : > { %770 = vst [vmem:[%s1298_s26 + $0x50] sm:$0xff] %v967_v28  ;;  %771 = vst [vmem:[%s1298_s26 + $0x58] sm:$0xff] %v968_v29  ;;  %v970_v37 = vpack.c.bf16 %v659_v34, %v658_v32  ;;  %v971_v38 = vpack.c.bf16 %v661_v36, %v660_v35  ;;  %v662_v39 = vld [vmem:[#allocation2 + $0x20] sm:$0xff]  ;;  %v663_v40 = vld [vmem:[#allocation2 + $0x98] sm:$0xff] }
 0x141   : > { %772 = vst [vmem:[%s1298_s26 + $0x60] sm:$0xff] %v969_v33  ;;  %v972_v41 = vpack.c.bf16 %v663_v40, %v662_v39 }
 0x142   : > { %773 = vst [vmem:[%s1298_s26 + $0x68] sm:$0xff] %v970_v37  ;;  %774 = vst [vmem:[%s1298_s26 + $0x70] sm:$0xff] %v971_v38 }
 0x143   : > { %775 = vst [vmem:[%s1298_s26 + $0x78] sm:$0xff] %v972_v41 }
 0x144 PF: > { %s974_s12 = sshll.u32 %s1178_s13, 11  ;;  %s793_s30 = sshll.u32 %s1298_s26, 4  ;;  %s1357_s30 = int_to_ptr.vmem [resolvable:$true] %s793_s30 }
 0x145   : > { %s1354_s29 = scalar_lea.hbm %s1414_s2, %s974_s12  ;;  %s1418_s3 = sand.u32 1, %s1166_s10  }
 0x146   : > { %s1361_s4 = scalar_lea.sflag [#allocation4], %s1418_s3  ;;  %s1098_s5 = scalar_lea.vmem %s1357_s30, 2048 }
 0x147   : > { %p1099_p4 = scmp.ne.s32.totalorder %s1357_s30, %s1098_s5  ;;  %s1194_s13 = smov [#allocation3]  }
 0x148   : > { %s1102_s6 = sshll.u32 %s1194_s13, 4  ;;  %s1103_s6 = int_to_ptr.vmem [resolvable:$false] %s1102_s6 }
 0x149   : > { %p1100_p5 = pnand %p1099_p4, %p1261_p3  ;;  %s1104_s7 = scalar_lea.vmem %s1103_s6, 4096 }
 0x14a   : > { %p1105_p7 = scmp.lt.s32.totalorder %s1357_s30, %s1103_s6  ;;  %p1106_p8 = scmp.lt.s32.totalorder %s1104_s7, %s1098_s5 }
 0x14b   : > { %p1101_p6 = pneg %p1100_p5 }
 0x14c   : > { %p1107_p10 = por %p1106_p8, %p1105_p7 }
 0x14e   : > { %p1108_p11 = pnand %p1107_p10, %p1101_p6 }
 0x150   : > { %1111 = shalt.err (!%p1108_p11)
}
 0x151   : > { %s1112_s26 = scalar_lea.hbm %s1354_s29, 2048  ;;  %s1116_s18 = scalar_lea.hbm %s1414_s2, 4096 }
 0x152   : > { %p1113_p12 = scmp.ne.s32.totalorder %s1354_s29, %s1112_s26  ;;  %p1117_p1 = scmp.lt.s32.totalorder %s1354_s29, %s1414_s2 }
 0x153   : > { %p1118_p2 = scmp.lt.s32.totalorder %s1116_s18, %s1112_s26 }
 0x154   : > { %p1114_p13 = pnand %p1113_p12, %p1261_p3 }
 0x155   : > { %p1119_p4 = por %p1118_p2, %p1117_p1 }
 0x156   : > { %p1115_p0 = pneg %p1114_p13 }
 0x158   : > { %p1120_p5 = pnand %p1119_p4, %p1115_p0 }
 0x15a   : > { %1123 = shalt.err (!%p1120_p5)
}
 0x15b   : > { %s1195_s12 = smov 128   ;;  %s1196_s27 = smov 8  }
 0x15c   : > { %991 = dma.vmem_to_hbm [thread:$0]  (%p1261_p3), %s1357_s30, 2048, %s1354_s29, %s1361_s4, %s1195_s12, %s1195_s12, %s1196_s27  }
 0x15d PF: > { %p997_p6 = scmp.ge.s32.totalorder %s1190_s16, 2  ;;  %s808_s28 = sand.u32 1, %s1162_s9  }
 0x15e   : > { %s809_s3 = scalar_lea.sflag [#allocation4], %s808_s28 }
 0x15f   : > { %p994_p7 = pnand %p997_p6, %p1271_p9 }
 0x161   : > { %p995_p8 = pneg %p994_p7 }
 0x163   : > { %1157 = dma.done.wait (%p995_p8), %s809_s3, 2048  }
 0x164   : > { %1159 = vsyncadd (%p995_p8), %s809_s3, 4294965248  ;;  %s15_s16 = sadd.s32 1, %s1190_s16   ;;  %s1419_s9 = smov %s1166_s10 }
 0x165   : > { %p12_p10 = scmp.ge.s32.totalorder %s15_s16, 6   ;;  %s1420_s10 = smov %s1170_s11 }
 0x166   : > { %s1421_s11 = smov %s1279_s25  ;;  %s1422_s12 = smov %s1182_s14 }
 0x167   : > { %s1423_s13 = smov %s1186_s15  ;;  %s1424_s14 = smov %s1427_s19 }
 0x168   : > { %s1425_s15 = smov %s1431_s20  ;;  %14 = sbr.rel (!%p12_p10) target bundleno = 5 (0x5), region = 74 }
 0x16d   :  { %814 = vsyncpa [#allocation4], 1 }
 0x16e   :  { %816 = vsyncpa [#allocation4 + $0x1], 1 }

</bundles_post_ra>
